<compile_context>
chip_gen: v6e
topology: v6e:2x2x1
jax: 0.10.0
libtpu: 0.0.40
codegen_flags: <defaults>
</compile_context>

<pallas_src>
import math

import jax
import jax.numpy as jnp
import numpy as np
from jax.experimental import pallas as pl
from jax.experimental.pallas import tpu as pltpu

MATMUL_DTYPE = jnp.bfloat16  # MXU operand dtype; accumulation stays f32.


def _dot(a, b):
    """2-D matmul on the MXU: bf16 operands, f32 accumulation."""
    return jnp.dot(a.astype(MATMUL_DTYPE), b.astype(MATMUL_DTYPE),
                   preferred_element_type=jnp.float32)


# -----------------------------------------------------------------------------
# In-kernel building blocks (everything lives in VMEM).
# Activation layout: (C, L*BT) f32 with columns ordered time-major:
#   col = t*BT + n,  n = b*enc_in + d  (samples on the lane axis).
# -----------------------------------------------------------------------------
def _causal_conv(a, w_ref, b_ref, *, K, d, L, BT):
    """Causal dilated Conv1d as ONE im2col matmul.

    a     : (Cin, L*BT) f32, columns ordered t*BT + n (time-major).
    w_ref : (Fo, K*Cin)   torch weight (Fo, Cin, K) -> transpose(0,2,1).reshape
    b_ref : (Fo, 1)
    """
    Cin = a.shape[0]
    pad = (K - 1) * d
    # Pad once (left, causal).  Because the sample index n is minor within
    # each time step, a time shift is a *static lane slice* of the padded buf.
    ap = jnp.concatenate([jnp.zeros((Cin, pad * BT), a.dtype), a], axis=1)
    cols = jnp.concatenate(
        [ap[:, k * d * BT: k * d * BT + L * BT] for k in range(K)], axis=0)
    return _dot(w_ref[...], cols) + b_ref[...]            # (Fo, L*BT) f32


def _tcn_block(z, refs, *, K, d, relu2, has_conv3, L, BT):
    if has_conv3:
        w1, b1, w2, b2, w3, b3 = refs
    else:
        w1, b1, w2, b2 = refs
    h = jnp.maximum(_causal_conv(z, w1, b1, K=K, d=d, L=L, BT=BT), 0.0)
    y = _causal_conv(h, w2, b2, K=K, d=d, L=L, BT=BT)
    if relu2:
        y = jnp.maximum(y, 0.0)
    res = (_dot(w3[...], z) + b3[...]) if has_conv3 else z
    return y + res                                        # (Cout, L*BT)


def _kan_layer(h, g_ref, wb_ref, ws_ref, *, spline_order, grid_size, h_step):
    """efficient-KAN KANLinear (transposed): Wb@silu(x) + Ws@b_splines(x).

    h : (In, BT) f32  ->  (Out, BT) f32.
    Fully 2-D Cox-de Boor recurrence; uniform-grid identity removes divides.
    """
    n_knots = grid_size + 2 * spline_order + 1
    g = g_ref[...]                                        # (In, n_knots) f32
    diffs = [h - g[:, j:j + 1] for j in range(n_knots)]   # each (In, BT)

    # degree-0 bases: 1 on [g_j, g_{j+1})
    bases = [jnp.logical_and(diffs[j] >= 0.0,
                             diffs[j + 1] < 0.0).astype(jnp.float32)
             for j in range(n_knots - 1)]
    for p in range(1, spline_order + 1):
        inv = 1.0 / (p * h_step)                          # exact trace-time
        bases = [(diffs[j] * bases[j] - diffs[j + p + 1] * bases[j + 1]) * inv
                 for j in range(len(bases) - 1)]
    # len(bases) == grid_size + spline_order == J; rows ordered j*In + i.
    bases2d = jnp.concatenate(bases, axis=0)              # (J*In, BT)

    sx = h * (1.0 / (1.0 + jnp.exp(-h)))                  # SiLU (f32, EUP)
    return _dot(wb_ref[...], sx) + _dot(ws_ref[...], bases2d)


# -----------------------------------------------------------------------------
# Fused kernel: all TCN blocks + both KAN layers in a single pallas_call body.
# -----------------------------------------------------------------------------
def _make_fused_kernel(tcn_desc, kan_desc, L, BT):
    n_refs = [6 if d["has_conv3"] else 4 for d in tcn_desc]

    def kernel(z_ref, *refs):
        params, out_ref = refs[:-1], refs[-1]
        z3 = z_ref[...]                                   # (C0, L, BT)
        # -> (C0, L*BT) time-major columns (L static slices + one lane concat).
        z = jnp.concatenate([z3[:, t, :] for t in range(L)], axis=1)

        i = 0
        for desc, n in zip(tcn_desc, n_refs):
            z = _tcn_block(z, params[i:i + n], K=desc["K"], d=desc["d"],
                           relu2=desc["relu2"], has_conv3=desc["has_conv3"],
                           L=L, BT=BT)
            i += n

        # TCN output (C, L*BT) -> KAN input (L*C, BT); row order t*C + c.
        # KAN layer-0 weight/grid rows were permuted host-side to match
        # torch's c*L + t flatten order (see init_params).
        hkan = jnp.concatenate([z[:, t * BT:(t + 1) * BT] for t in range(L)],
                               axis=0)
        for desc in kan_desc:
            g_ref, wb_ref, ws_ref = params[i:i + 3]
            i += 3
            hkan = _kan_layer(hkan, g_ref, wb_ref, ws_ref,
                              spline_order=desc["spline_order"],
                              grid_size=desc["grid_size"],
                              h_step=desc["h_step"])
        out_ref[...] = hkan.astype(out_ref.dtype)

    return kernel


def _pick_block(bt, target=512):
    rup = lambda v, m: ((v + m - 1) // m) * m
    if bt <= target:
        bt_pad = rup(max(bt, 1), 8)
        return bt_pad, bt_pad          # single block == full lane extent
    bt_pad = rup(bt, target)           # target is a multiple of 128
    return target, bt_pad


def backbone_forward(x, params, cfg):
    B, S, D = x.shape
    P, stride = cfg["patch_len"], cfg["stride"]
    pn1 = cfg["patch_num"] - 1
    pred_len = cfg["pred_len"]
    Bt = B * D

    # --- patching: single gather (no per-patch stack) --------------------
    t_idx = jnp.arange(pn1)[:, None] * stride + jnp.arange(P)[None, :]
    patches = x[:, t_idx, :]                              # (B, pn1, P, D)
    # kernel layout: channels/time leading, samples (Bt) on the lane axis
    z0 = jnp.transpose(patches, (1, 2, 0, 3)).reshape(pn1, P, Bt)
    z0 = z0.astype(jnp.float32)

    BT_BLK, Bt_pad = _pick_block(Bt)
    if Bt_pad != Bt:
        z0 = jnp.pad(z0, ((0, 0), (0, 0), (0, Bt_pad - Bt)))

    flat = params["flat"]
    kernel = _make_fused_kernel(params["tcn_desc"], params["kan_desc"],
                                P, BT_BLK)

    def _const_spec(a):
        nd = a.ndim
        return pl.BlockSpec(a.shape, lambda i, _nd=nd: (0,) * _nd)

    out = pl.pallas_call(
        kernel,
        out_shape=jax.ShapeDtypeStruct((pred_len, Bt_pad), jnp.float32),
        grid=(Bt_pad // BT_BLK,),
        in_specs=[pl.BlockSpec((pn1, P, BT_BLK), lambda i: (0, 0, i))]
                 + [_const_spec(a) for a in flat],
        out_specs=pl.BlockSpec((pred_len, BT_BLK), lambda i: (0, i)),
        compiler_params=pltpu.CompilerParams(
            dimension_semantics=("parallel",)),
    )(z0, *flat)

    out = out[:, :Bt]                                     # drop lane padding
    # (pred_len, B*D) -> (B, pred_len, D)   (matches torch .permute(0, 2, 1))
    return jnp.transpose(out.reshape(pred_len, B, D), (1, 0, 2))


# -----------------------------------------------------------------------------
# Deterministic synthetic parameters:
#   * "flat"      : pre-reshaped / pre-permuted tensors fed to the kernel,
#   * "ref"       : torch-layout tensors used by the pure-JAX reference.
# -----------------------------------------------------------------------------
def init_params(key, cfg):
    pn1 = cfg["patch_num"] - 1
    nf = cfg["n_filters"]
    K = cfg["kernel_size"]
    nl = cfg["num_layers"]
    P = cfg["patch_len"]
    pred_len = cfg["pred_len"]

    keys = jax.random.split(key, 64)
    kit = iter(keys)

    def nrm(shape, scale=0.1):
        return scale * jax.random.normal(next(kit), shape, jnp.float32)

    flat, tcn_desc, ref_tcn = [], [], []
    for i in range(nl):
        cin = pn1 if i == 0 else nf
        cout = pn1 if i == nl - 1 else nf
        has_conv3 = cin != cout
        d = cfg["dilation_base"] ** i
        relu2 = i < nl - 1
        # torch-layout conv weights (Fo, Cin, K)
        w1 = nrm((nf, cin, K))
        b1 = nrm((nf,))
        w2 = nrm((cout, nf, K))
        b2 = nrm((cout,))
        flat += [
            jnp.transpose(w1, (0, 2, 1)).reshape(nf, K * cin).astype(MATMUL_DTYPE),
            b1[:, None],
            jnp.transpose(w2, (0, 2, 1)).reshape(cout, K * nf).astype(MATMUL_DTYPE),
            b2[:, None],
        ]
        blk_ref = dict(w1=w1, b1=b1, w2=w2, b2=b2, d=d, K=K,
                       relu2=relu2, has_conv3=has_conv3)
        if has_conv3:
            w3 = nrm((cout, cin))                         # 1x1 conv as matmul
            b3 = nrm((cout,))
            flat += [w3.astype(MATMUL_DTYPE), b3[:, None]]
            blk_ref.update(w3=w3, b3=b3)
        ref_tcn.append(blk_ref)
        tcn_desc.append(dict(K=K, d=d, relu2=relu2, has_conv3=has_conv3))

    # efficient-KAN defaults: grid_size=5, spline_order=3, grid_range=[-1, 1]
    G, so = 5, 3
    J = G + so
    h_step = 2.0 / G
    base_grid = jnp.arange(-so, G + so + 1, dtype=jnp.float32) * h_step - 1.0
    dims = [P * pn1, 10, pred_len]

    # Kernel feeds KAN layer 0 with TCN features in row order r = t*C + c;
    # torch flattens (C, P) as c*P + t.  Permute layer-0 input rows to match.
    r = jnp.arange(dims[0])
    perm0 = (r % pn1) * P + (r // pn1)

    kan_desc, ref_kan = [], []
    for li, (din, dout) in enumerate(zip(dims[:-1], dims[1:])):
        grid = jnp.tile(base_grid[None, :], (din, 1))     # (din, G + 2*so + 1)
        wb = nrm((dout, din))                             # base_weight
        sw = nrm((dout, din, J))                          # spline_weight
        sc = 1.0 + nrm((dout, din))                       # spline_scaler
        scaled = sw * sc[..., None]                       # (dout, din, J)

        # reference uses torch-order flatten: column = i*J + j
        ref_kan.append(dict(grid=grid, wb=wb,
                            ws_flat=scaled.reshape(dout, din * J), so=so))

        if li == 0:                                       # match kernel row order
            grid_k, wb_k, sc_k = grid[perm0], wb[:, perm0], scaled[:, perm0, :]
        else:
            grid_k, wb_k, sc_k = grid, wb, scaled
        # kernel uses basis-major flatten: column = j*din + i
        ws_k = jnp.transpose(sc_k, (0, 2, 1)).reshape(dout, J * din)
        flat += [grid_k, wb_k.astype(MATMUL_DTYPE), ws_k.astype(MATMUL_DTYPE)]
        kan_desc.append(dict(spline_order=so, grid_size=G, h_step=h_step))

    return dict(flat=flat, tcn_desc=tcn_desc, kan_desc=kan_desc,
                ref=dict(tcn=ref_tcn, kan=ref_kan))


# -----------------------------------------------------------------------------
# Structurally independent pure-JAX reference (mirrors the torch forward).
# Operands are rounded to bf16 at matmul/conv sites to match kernel numerics.
# -----------------------------------------------------------------------------
def _r16(a):
    return a.astype(jnp.bfloat16).astype(jnp.float32)


def backbone_reference(x, params, cfg):
    B, S, D = x.shape
    P, stride = cfg["patch_len"], cfg["stride"]
    pn1 = cfg["patch_num"] - 1

    t_idx = jnp.arange(pn1)[:, None] * stride + jnp.arange(P)[None, :]
    patches = x[:, t_idx, :]                              # (B, pn1, P, D)
    z = jnp.transpose(patches, (0, 3, 1, 2)).reshape(B * D, pn1, P)
    z = z.astype(jnp.float32)

    ref = params["ref"]
    for blk in ref["tcn"]:
        d, K = blk["d"], blk["K"]
        pad = (K - 1) * d

        def conv(a, w, b):
            out = jax.lax.conv_general_dilated(
                _r16(a), _r16(w), window_strides=(1,), padding=[(pad, 0)],
                rhs_dilation=(d,), dimension_numbers=("NCH", "OIH", "NCH"))
            return out + b[None, :, None]

        h = jax.nn.relu(conv(z, blk["w1"], blk["b1"]))
        y = conv(h, blk["w2"], blk["b2"])
        if blk["relu2"]:
            y = jax.nn.relu(y)
        if blk["has_conv3"]:
            res = jnp.einsum("oc,ncl->nol", _r16(blk["w3"]), _r16(z)) \
                  + blk["b3"][None, :, None]
        else:
            res = z
        z = y + res

    h = z.reshape(B, D, pn1 * P)                          # torch flat: c*P + t
    for lyr in ref["kan"]:
        g, k = lyr["grid"], lyr["so"]
        x_ = h[..., None]                                 # (B, D, In, 1)
        bases = jnp.logical_and(x_ >= g[:, :-1], x_ < g[:, 1:]).astype(jnp.float32)
        for p in range(1, k + 1):
            bases = ((x_ - g[:, :-(p + 1)]) / (g[:, p:-1] - g[:, :-(p + 1)])
                     * bases[..., :-1]
                     + (g[:, p + 1:] - x_) / (g[:, p + 1:] - g[:, 1:-p])
                     * bases[..., 1:])
        In, J = h.shape[-1], bases.shape[-1]
        bflat = bases.reshape(B, D, In * J)               # column = i*J + j
        sil = h * (1.0 / (1.0 + jnp.exp(-h)))
        h = (jnp.einsum("bdi,oi->bdo", _r16(sil), _r16(lyr["wb"]))
             + jnp.einsum("bdi,oi->bdo", _r16(bflat), _r16(lyr["ws_flat"])))
    return jnp.transpose(h, (0, 2, 1))                    # (B, pred_len, D)


# -----------------------------------------------------------------------------
if __name__ == "__main__":
    # Small config consistent with the module's __init__.
    seq_len, pred_len = 32, 8
    batch_size, enc_in = 2, 4
    patch_len, stride = 4, 4
    kernel_size, dilation_base, n_filters = 3, 2, 3

    patch_num = int((seq_len - patch_len) // stride) + 1
    patch_num = patch_num + 1                     # padding_patch == 'end'
    num_layers = math.ceil(
        math.log((patch_num - 1) * (dilation_base - 1) / (kernel_size - 1) / 2 + 1,
                 dilation_base))

    cfg = dict(seq_len=seq_len, pred_len=pred_len, batch_size=batch_size,
               enc_in=enc_in, patch_len=patch_len, stride=stride,
               patch_num=patch_num, num_layers=num_layers,
               kernel_size=kernel_size, dilation_base=dilation_base,
               n_filters=n_filters)

    key = jax.random.PRNGKey(0)
    kx, kp = jax.random.split(key)
    x = jax.random.normal(kx, (batch_size, seq_len, enc_in), jnp.float32)
    params = init_params(kp, cfg)

    fwd = jax.jit(lambda xx: backbone_forward(xx, params, cfg))
    y = jax.block_until_ready(fwd(x))
    assert y.shape == (batch_size, pred_len, enc_in), y.shape
    assert bool(jnp.all(jnp.isfinite(y)))

    # Correctness check against the structurally independent reference.
    y_ref = jax.block_until_ready(
        jax.jit(lambda xx: backbone_reference(xx, params, cfg))(x))
    np.testing.assert_allclose(np.asarray(y), np.asarray(y_ref),
                               rtol=2e-2, atol=1e-2)
    print("KERNEL_OK")
</pallas_src>

<mosaic_0001>
module attributes {stable_mosaic.version = 11 : i64} {
  func.func @kernel(%arg0: i32, %arg1: memref<8x4x8xf32, #tpu.memory_space<vmem>>, %arg2: memref<3x24xbf16, #tpu.memory_space<vmem>>, %arg3: memref<3x1xf32, #tpu.memory_space<vmem>>, %arg4: memref<3x9xbf16, #tpu.memory_space<vmem>>, %arg5: memref<3x1xf32, #tpu.memory_space<vmem>>, %arg6: memref<3x8xbf16, #tpu.memory_space<vmem>>, %arg7: memref<3x1xf32, #tpu.memory_space<vmem>>, %arg8: memref<3x9xbf16, #tpu.memory_space<vmem>>, %arg9: memref<3x1xf32, #tpu.memory_space<vmem>>, %arg10: memref<8x9xbf16, #tpu.memory_space<vmem>>, %arg11: memref<8x1xf32, #tpu.memory_space<vmem>>, %arg12: memref<8x3xbf16, #tpu.memory_space<vmem>>, %arg13: memref<8x1xf32, #tpu.memory_space<vmem>>, %arg14: memref<32x12xf32, #tpu.memory_space<vmem>>, %arg15: memref<10x32xbf16, #tpu.memory_space<vmem>>, %arg16: memref<10x256xbf16, #tpu.memory_space<vmem>>, %arg17: memref<10x12xf32, #tpu.memory_space<vmem>>, %arg18: memref<8x10xbf16, #tpu.memory_space<vmem>>, %arg19: memref<8x80xbf16, #tpu.memory_space<vmem>>, %arg20: memref<8x8xf32, #tpu.memory_space<vmem>>) attributes {dimension_semantics = [#tpu.dimension_semantics<parallel>], iteration_bounds = array<i64: 1>, scalar_prefetch = 0 : i64, scratch_operands = 0 : i64, tpu.core_type = #tpu.core_type<tc>, window_params = [{transform_indices = @transform_0, window_bounds = array<i64: 8, 4, 8>}, {pipeline_mode = #tpu.pipeline_mode<synchronous>, transform_indices = @transform_1, window_bounds = array<i64: 3, 24>}, {pipeline_mode = #tpu.pipeline_mode<synchronous>, transform_indices = @transform_2, window_bounds = array<i64: 3, 1>}, {pipeline_mode = #tpu.pipeline_mode<synchronous>, transform_indices = @transform_3, window_bounds = array<i64: 3, 9>}, {pipeline_mode = #tpu.pipeline_mode<synchronous>, transform_indices = @transform_4, window_bounds = array<i64: 3, 1>}, {pipeline_mode = #tpu.pipeline_mode<synchronous>, transform_indices = @transform_5, window_bounds = array<i64: 3, 8>}, {pipeline_mode = #tpu.pipeline_mode<synchronous>, transform_indices = @transform_6, window_bounds = array<i64: 3, 1>}, {pipeline_mode = #tpu.pipeline_mode<synchronous>, transform_indices = @transform_7, window_bounds = array<i64: 3, 9>}, {pipeline_mode = #tpu.pipeline_mode<synchronous>, transform_indices = @transform_8, window_bounds = array<i64: 3, 1>}, {pipeline_mode = #tpu.pipeline_mode<synchronous>, transform_indices = @transform_9, window_bounds = array<i64: 8, 9>}, {pipeline_mode = #tpu.pipeline_mode<synchronous>, transform_indices = @transform_10, window_bounds = array<i64: 8, 1>}, {pipeline_mode = #tpu.pipeline_mode<synchronous>, transform_indices = @transform_11, window_bounds = array<i64: 8, 3>}, {pipeline_mode = #tpu.pipeline_mode<synchronous>, transform_indices = @transform_12, window_bounds = array<i64: 8, 1>}, {pipeline_mode = #tpu.pipeline_mode<synchronous>, transform_indices = @transform_13, window_bounds = array<i64: 32, 12>}, {pipeline_mode = #tpu.pipeline_mode<synchronous>, transform_indices = @transform_14, window_bounds = array<i64: 10, 32>}, {pipeline_mode = #tpu.pipeline_mode<synchronous>, transform_indices = @transform_15, window_bounds = array<i64: 10, 256>}, {pipeline_mode = #tpu.pipeline_mode<synchronous>, transform_indices = @transform_16, window_bounds = array<i64: 10, 12>}, {pipeline_mode = #tpu.pipeline_mode<synchronous>, transform_indices = @transform_17, window_bounds = array<i64: 8, 10>}, {pipeline_mode = #tpu.pipeline_mode<synchronous>, transform_indices = @transform_18, window_bounds = array<i64: 8, 80>}, {transform_indices = @transform_19, window_bounds = array<i64: 8, 8>}]} {
    %c0 = arith.constant 0 : index
    %c0_0 = arith.constant 0 : index
    %c0_1 = arith.constant 0 : index
    %0 = vector.load %arg1[%c0, %c0_0, %c0_1] : memref<8x4x8xf32, #tpu.memory_space<vmem>>, vector<8x4x8xf32>
    %1 = vector.extract_strided_slice %0 {offsets = [0, 0, 0], sizes = [8, 1, 8], strides = [1, 1, 1]} : vector<8x4x8xf32> to vector<8x1x8xf32>
    %2 = vector.shape_cast %1 : vector<8x1x8xf32> to vector<8x8xf32>
    %3 = vector.extract_strided_slice %0 {offsets = [0, 1, 0], sizes = [8, 1, 8], strides = [1, 1, 1]} : vector<8x4x8xf32> to vector<8x1x8xf32>
    %4 = vector.shape_cast %3 : vector<8x1x8xf32> to vector<8x8xf32>
    %5 = vector.extract_strided_slice %0 {offsets = [0, 2, 0], sizes = [8, 1, 8], strides = [1, 1, 1]} : vector<8x4x8xf32> to vector<8x1x8xf32>
    %6 = vector.shape_cast %5 : vector<8x1x8xf32> to vector<8x8xf32>
    %7 = vector.extract_strided_slice %0 {offsets = [0, 3, 0], sizes = [8, 1, 8], strides = [1, 1, 1]} : vector<8x4x8xf32> to vector<8x1x8xf32>
    %8 = vector.shape_cast %7 : vector<8x1x8xf32> to vector<8x8xf32>
    %9 = tpu.concatenate %2, %4, %6, %8 in 1 : vector<8x8xf32>, vector<8x8xf32>, vector<8x8xf32>, vector<8x8xf32> -> vector<8x32xf32>
    %cst = arith.constant 0.000000e+00 : f32
    %10 = vector.broadcast %cst : f32 to vector<8x16xf32>
    %11 = tpu.concatenate %10, %9 in 1 : vector<8x16xf32>, vector<8x32xf32> -> vector<8x48xf32>
    %12 = vector.extract_strided_slice %11 {offsets = [0, 0], sizes = [8, 32], strides = [1, 1]} : vector<8x48xf32> to vector<8x32xf32>
    %13 = vector.extract_strided_slice %11 {offsets = [0, 8], sizes = [8, 32], strides = [1, 1]} : vector<8x48xf32> to vector<8x32xf32>
    %14 = vector.extract_strided_slice %11 {offsets = [0, 16], sizes = [8, 32], strides = [1, 1]} : vector<8x48xf32> to vector<8x32xf32>
    %15 = tpu.concatenate %12, %13, %14 in 0 : vector<8x32xf32>, vector<8x32xf32>, vector<8x32xf32> -> vector<24x32xf32>
    %c0_2 = arith.constant 0 : index
    %c0_3 = arith.constant 0 : index
    %16 = vector.load %arg2[%c0_2, %c0_3] : memref<3x24xbf16, #tpu.memory_space<vmem>>, vector<3x24xbf16>
    %17 = arith.truncf %15 : vector<24x32xf32> to vector<24x32xbf16>
    %cst_4 = arith.constant dense<0.000000e+00> : vector<3x32xf32>
    %18 = tpu.matmul %16, %17, %cst_4 {dimension_numbers = #tpu.dot_dimension_numbers<[1], [0], [0], [1], [0, 0, 1, 1], [], []>} : vector<3x24xbf16>, vector<24x32xbf16>, vector<3x32xf32> -> vector<3x32xf32>
    %c0_5 = arith.constant 0 : index
    %c0_6 = arith.constant 0 : index
    %19 = vector.load %arg3[%c0_5, %c0_6] : memref<3x1xf32, #tpu.memory_space<vmem>>, vector<3x1xf32>
    %20 = vector.broadcast %19 : vector<3x1xf32> to vector<3x32xf32>
    %21 = arith.addf %18, %20 : vector<3x32xf32>
    %cst_7 = arith.constant 0.000000e+00 : f32
    %22 = vector.broadcast %cst_7 : f32 to vector<3x32xf32>
    %23 = arith.maximumf %21, %22 : vector<3x32xf32>
    %cst_8 = arith.constant 0.000000e+00 : f32
    %24 = vector.broadcast %cst_8 : f32 to vector<3x16xf32>
    %25 = tpu.concatenate %24, %23 in 1 : vector<3x16xf32>, vector<3x32xf32> -> vector<3x48xf32>
    %26 = vector.extract_strided_slice %25 {offsets = [0, 0], sizes = [3, 32], strides = [1, 1]} : vector<3x48xf32> to vector<3x32xf32>
    %27 = vector.extract_strided_slice %25 {offsets = [0, 8], sizes = [3, 32], strides = [1, 1]} : vector<3x48xf32> to vector<3x32xf32>
    %28 = vector.extract_strided_slice %25 {offsets = [0, 16], sizes = [3, 32], strides = [1, 1]} : vector<3x48xf32> to vector<3x32xf32>
    %29 = tpu.concatenate %26, %27, %28 in 0 : vector<3x32xf32>, vector<3x32xf32>, vector<3x32xf32> -> vector<9x32xf32>
    %c0_9 = arith.constant 0 : index
    %c0_10 = arith.constant 0 : index
    %30 = vector.load %arg4[%c0_9, %c0_10] : memref<3x9xbf16, #tpu.memory_space<vmem>>, vector<3x9xbf16>
    %31 = arith.truncf %29 : vector<9x32xf32> to vector<9x32xbf16>
    %cst_11 = arith.constant dense<0.000000e+00> : vector<3x32xf32>
    %32 = tpu.matmul %30, %31, %cst_11 {dimension_numbers = #tpu.dot_dimension_numbers<[1], [0], [0], [1], [0, 0, 1, 1], [], []>} : vector<3x9xbf16>, vector<9x32xbf16>, vector<3x32xf32> -> vector<3x32xf32>
    %c0_12 = arith.constant 0 : index
    %c0_13 = arith.constant 0 : index
    %33 = vector.load %arg5[%c0_12, %c0_13] : memref<3x1xf32, #tpu.memory_space<vmem>>, vector<3x1xf32>
    %34 = vector.broadcast %33 : vector<3x1xf32> to vector<3x32xf32>
    %35 = arith.addf %32, %34 : vector<3x32xf32>
    %cst_14 = arith.constant 0.000000e+00 : f32
    %36 = vector.broadcast %cst_14 : f32 to vector<3x32xf32>
    %37 = arith.maximumf %35, %36 : vector<3x32xf32>
    %c0_15 = arith.constant 0 : index
    %c0_16 = arith.constant 0 : index
    %38 = vector.load %arg6[%c0_15, %c0_16] : memref<3x8xbf16, #tpu.memory_space<vmem>>, vector<3x8xbf16>
    %39 = arith.truncf %9 : vector<8x32xf32> to vector<8x32xbf16>
    %cst_17 = arith.constant dense<0.000000e+00> : vector<3x32xf32>
    %40 = tpu.matmul %38, %39, %cst_17 {dimension_numbers = #tpu.dot_dimension_numbers<[1], [0], [0], [1], [0, 0, 1, 1], [], []>} : vector<3x8xbf16>, vector<8x32xbf16>, vector<3x32xf32> -> vector<3x32xf32>
    %c0_18 = arith.constant 0 : index
    %c0_19 = arith.constant 0 : index
    %41 = vector.load %arg7[%c0_18, %c0_19] : memref<3x1xf32, #tpu.memory_space<vmem>>, vector<3x1xf32>
    %42 = vector.broadcast %41 : vector<3x1xf32> to vector<3x32xf32>
    %43 = arith.addf %40, %42 : vector<3x32xf32>
    %44 = arith.addf %37, %43 : vector<3x32xf32>
    %cst_20 = arith.constant 0.000000e+00 : f32
    %45 = vector.broadcast %cst_20 : f32 to vector<3x32xf32>
    %46 = tpu.concatenate %45, %44 in 1 : vector<3x32xf32>, vector<3x32xf32> -> vector<3x64xf32>
    %47 = vector.extract_strided_slice %46 {offsets = [0, 0], sizes = [3, 32], strides = [1, 1]} : vector<3x64xf32> to vector<3x32xf32>
    %48 = vector.extract_strided_slice %46 {offsets = [0, 16], sizes = [3, 32], strides = [1, 1]} : vector<3x64xf32> to vector<3x32xf32>
    %49 = vector.extract_strided_slice %46 {offsets = [0, 32], sizes = [3, 32], strides = [1, 1]} : vector<3x64xf32> to vector<3x32xf32>
    %50 = tpu.concatenate %47, %48, %49 in 0 : vector<3x32xf32>, vector<3x32xf32>, vector<3x32xf32> -> vector<9x32xf32>
    %c0_21 = arith.constant 0 : index
    %c0_22 = arith.constant 0 : index
    %51 = vector.load %arg8[%c0_21, %c0_22] : memref<3x9xbf16, #tpu.memory_space<vmem>>, vector<3x9xbf16>
    %52 = arith.truncf %50 : vector<9x32xf32> to vector<9x32xbf16>
    %cst_23 = arith.constant dense<0.000000e+00> : vector<3x32xf32>
    %53 = tpu.matmul %51, %52, %cst_23 {dimension_numbers = #tpu.dot_dimension_numbers<[1], [0], [0], [1], [0, 0, 1, 1], [], []>} : vector<3x9xbf16>, vector<9x32xbf16>, vector<3x32xf32> -> vector<3x32xf32>
    %c0_24 = arith.constant 0 : index
    %c0_25 = arith.constant 0 : index
    %54 = vector.load %arg9[%c0_24, %c0_25] : memref<3x1xf32, #tpu.memory_space<vmem>>, vector<3x1xf32>
    %55 = vector.broadcast %54 : vector<3x1xf32> to vector<3x32xf32>
    %56 = arith.addf %53, %55 : vector<3x32xf32>
    %cst_26 = arith.constant 0.000000e+00 : f32
    %57 = vector.broadcast %cst_26 : f32 to vector<3x32xf32>
    %58 = arith.maximumf %56, %57 : vector<3x32xf32>
    %cst_27 = arith.constant 0.000000e+00 : f32
    %59 = vector.broadcast %cst_27 : f32 to vector<3x32xf32>
    %60 = tpu.concatenate %59, %58 in 1 : vector<3x32xf32>, vector<3x32xf32> -> vector<3x64xf32>
    %61 = vector.extract_strided_slice %60 {offsets = [0, 0], sizes = [3, 32], strides = [1, 1]} : vector<3x64xf32> to vector<3x32xf32>
    %62 = vector.extract_strided_slice %60 {offsets = [0, 16], sizes = [3, 32], strides = [1, 1]} : vector<3x64xf32> to vector<3x32xf32>
    %63 = vector.extract_strided_slice %60 {offsets = [0, 32], sizes = [3, 32], strides = [1, 1]} : vector<3x64xf32> to vector<3x32xf32>
    %64 = tpu.concatenate %61, %62, %63 in 0 : vector<3x32xf32>, vector<3x32xf32>, vector<3x32xf32> -> vector<9x32xf32>
    %c0_28 = arith.constant 0 : index
    %c0_29 = arith.constant 0 : index
    %65 = vector.load %arg10[%c0_28, %c0_29] : memref<8x9xbf16, #tpu.memory_space<vmem>>, vector<8x9xbf16>
    %66 = arith.truncf %64 : vector<9x32xf32> to vector<9x32xbf16>
    %cst_30 = arith.constant dense<0.000000e+00> : vector<8x32xf32>
    %67 = tpu.matmul %65, %66, %cst_30 {dimension_numbers = #tpu.dot_dimension_numbers<[1], [0], [0], [1], [0, 0, 1, 1], [], []>} : vector<8x9xbf16>, vector<9x32xbf16>, vector<8x32xf32> -> vector<8x32xf32>
    %c0_31 = arith.constant 0 : index
    %c0_32 = arith.constant 0 : index
    %68 = vector.load %arg11[%c0_31, %c0_32] : memref<8x1xf32, #tpu.memory_space<vmem>>, vector<8x1xf32>
    %69 = vector.broadcast %68 : vector<8x1xf32> to vector<8x32xf32>
    %70 = arith.addf %67, %69 : vector<8x32xf32>
    %c0_33 = arith.constant 0 : index
    %c0_34 = arith.constant 0 : index
    %71 = vector.load %arg12[%c0_33, %c0_34] : memref<8x3xbf16, #tpu.memory_space<vmem>>, vector<8x3xbf16>
    %72 = arith.truncf %44 : vector<3x32xf32> to vector<3x32xbf16>
    %cst_35 = arith.constant dense<0.000000e+00> : vector<8x32xf32>
    %73 = tpu.matmul %71, %72, %cst_35 {dimension_numbers = #tpu.dot_dimension_numbers<[1], [0], [0], [1], [0, 0, 1, 1], [], []>} : vector<8x3xbf16>, vector<3x32xbf16>, vector<8x32xf32> -> vector<8x32xf32>
    %c0_36 = arith.constant 0 : index
    %c0_37 = arith.constant 0 : index
    %74 = vector.load %arg13[%c0_36, %c0_37] : memref<8x1xf32, #tpu.memory_space<vmem>>, vector<8x1xf32>
    %75 = vector.broadcast %74 : vector<8x1xf32> to vector<8x32xf32>
    %76 = arith.addf %73, %75 : vector<8x32xf32>
    %77 = arith.addf %70, %76 : vector<8x32xf32>
    %78 = vector.extract_strided_slice %77 {offsets = [0, 0], sizes = [8, 8], strides = [1, 1]} : vector<8x32xf32> to vector<8x8xf32>
    %79 = vector.extract_strided_slice %77 {offsets = [0, 8], sizes = [8, 8], strides = [1, 1]} : vector<8x32xf32> to vector<8x8xf32>
    %80 = vector.extract_strided_slice %77 {offsets = [0, 16], sizes = [8, 8], strides = [1, 1]} : vector<8x32xf32> to vector<8x8xf32>
    %81 = vector.extract_strided_slice %77 {offsets = [0, 24], sizes = [8, 8], strides = [1, 1]} : vector<8x32xf32> to vector<8x8xf32>
    %82 = tpu.concatenate %78, %79, %80, %81 in 0 : vector<8x8xf32>, vector<8x8xf32>, vector<8x8xf32>, vector<8x8xf32> -> vector<32x8xf32>
    %c0_38 = arith.constant 0 : index
    %c0_39 = arith.constant 0 : index
    %83 = vector.load %arg14[%c0_38, %c0_39] : memref<32x12xf32, #tpu.memory_space<vmem>>, vector<32x12xf32>
    %84 = vector.extract_strided_slice %83 {offsets = [0, 0], sizes = [32, 1], strides = [1, 1]} : vector<32x12xf32> to vector<32x1xf32>
    %85 = vector.broadcast %84 : vector<32x1xf32> to vector<32x8xf32>
    %86 = arith.subf %82, %85 : vector<32x8xf32>
    %87 = vector.extract_strided_slice %83 {offsets = [0, 1], sizes = [32, 1], strides = [1, 1]} : vector<32x12xf32> to vector<32x1xf32>
    %88 = vector.broadcast %87 : vector<32x1xf32> to vector<32x8xf32>
    %89 = arith.subf %82, %88 : vector<32x8xf32>
    %90 = vector.extract_strided_slice %83 {offsets = [0, 2], sizes = [32, 1], strides = [1, 1]} : vector<32x12xf32> to vector<32x1xf32>
    %91 = vector.broadcast %90 : vector<32x1xf32> to vector<32x8xf32>
    %92 = arith.subf %82, %91 : vector<32x8xf32>
    %93 = vector.extract_strided_slice %83 {offsets = [0, 3], sizes = [32, 1], strides = [1, 1]} : vector<32x12xf32> to vector<32x1xf32>
    %94 = vector.broadcast %93 : vector<32x1xf32> to vector<32x8xf32>
    %95 = arith.subf %82, %94 : vector<32x8xf32>
    %96 = vector.extract_strided_slice %83 {offsets = [0, 4], sizes = [32, 1], strides = [1, 1]} : vector<32x12xf32> to vector<32x1xf32>
    %97 = vector.broadcast %96 : vector<32x1xf32> to vector<32x8xf32>
    %98 = arith.subf %82, %97 : vector<32x8xf32>
    %99 = vector.extract_strided_slice %83 {offsets = [0, 5], sizes = [32, 1], strides = [1, 1]} : vector<32x12xf32> to vector<32x1xf32>
    %100 = vector.broadcast %99 : vector<32x1xf32> to vector<32x8xf32>
    %101 = arith.subf %82, %100 : vector<32x8xf32>
    %102 = vector.extract_strided_slice %83 {offsets = [0, 6], sizes = [32, 1], strides = [1, 1]} : vector<32x12xf32> to vector<32x1xf32>
    %103 = vector.broadcast %102 : vector<32x1xf32> to vector<32x8xf32>
    %104 = arith.subf %82, %103 : vector<32x8xf32>
    %105 = vector.extract_strided_slice %83 {offsets = [0, 7], sizes = [32, 1], strides = [1, 1]} : vector<32x12xf32> to vector<32x1xf32>
    %106 = vector.broadcast %105 : vector<32x1xf32> to vector<32x8xf32>
    %107 = arith.subf %82, %106 : vector<32x8xf32>
    %108 = vector.extract_strided_slice %83 {offsets = [0, 8], sizes = [32, 1], strides = [1, 1]} : vector<32x12xf32> to vector<32x1xf32>
    %109 = vector.broadcast %108 : vector<32x1xf32> to vector<32x8xf32>
    %110 = arith.subf %82, %109 : vector<32x8xf32>
    %111 = vector.extract_strided_slice %83 {offsets = [0, 9], sizes = [32, 1], strides = [1, 1]} : vector<32x12xf32> to vector<32x1xf32>
    %112 = vector.broadcast %111 : vector<32x1xf32> to vector<32x8xf32>
    %113 = arith.subf %82, %112 : vector<32x8xf32>
    %114 = vector.extract_strided_slice %83 {offsets = [0, 10], sizes = [32, 1], strides = [1, 1]} : vector<32x12xf32> to vector<32x1xf32>
    %115 = vector.broadcast %114 : vector<32x1xf32> to vector<32x8xf32>
    %116 = arith.subf %82, %115 : vector<32x8xf32>
    %117 = vector.extract_strided_slice %83 {offsets = [0, 11], sizes = [32, 1], strides = [1, 1]} : vector<32x12xf32> to vector<32x1xf32>
    %118 = vector.broadcast %117 : vector<32x1xf32> to vector<32x8xf32>
    %119 = arith.subf %82, %118 : vector<32x8xf32>
    %cst_40 = arith.constant 0.000000e+00 : f32
    %120 = vector.broadcast %cst_40 : f32 to vector<32x8xf32>
    %121 = arith.cmpf oge, %86, %120 : vector<32x8xf32>
    %cst_41 = arith.constant 0.000000e+00 : f32
    %122 = vector.broadcast %cst_41 : f32 to vector<32x8xf32>
    %123 = arith.cmpf olt, %89, %122 : vector<32x8xf32>
    %124 = arith.andi %121, %123 : vector<32x8xi1>
    %125 = arith.extui %124 : vector<32x8xi1> to vector<32x8xi32>
    %126 = arith.sitofp %125 : vector<32x8xi32> to vector<32x8xf32>
    %cst_42 = arith.constant 0.000000e+00 : f32
    %127 = vector.broadcast %cst_42 : f32 to vector<32x8xf32>
    %128 = arith.cmpf oge, %89, %127 : vector<32x8xf32>
    %cst_43 = arith.constant 0.000000e+00 : f32
    %129 = vector.broadcast %cst_43 : f32 to vector<32x8xf32>
    %130 = arith.cmpf olt, %92, %129 : vector<32x8xf32>
    %131 = arith.andi %128, %130 : vector<32x8xi1>
    %132 = arith.extui %131 : vector<32x8xi1> to vector<32x8xi32>
    %133 = arith.sitofp %132 : vector<32x8xi32> to vector<32x8xf32>
    %cst_44 = arith.constant 0.000000e+00 : f32
    %134 = vector.broadcast %cst_44 : f32 to vector<32x8xf32>
    %135 = arith.cmpf oge, %92, %134 : vector<32x8xf32>
    %cst_45 = arith.constant 0.000000e+00 : f32
    %136 = vector.broadcast %cst_45 : f32 to vector<32x8xf32>
    %137 = arith.cmpf olt, %95, %136 : vector<32x8xf32>
    %138 = arith.andi %135, %137 : vector<32x8xi1>
    %139 = arith.extui %138 : vector<32x8xi1> to vector<32x8xi32>
    %140 = arith.sitofp %139 : vector<32x8xi32> to vector<32x8xf32>
    %cst_46 = arith.constant 0.000000e+00 : f32
    %141 = vector.broadcast %cst_46 : f32 to vector<32x8xf32>
    %142 = arith.cmpf oge, %95, %141 : vector<32x8xf32>
    %cst_47 = arith.constant 0.000000e+00 : f32
    %143 = vector.broadcast %cst_47 : f32 to vector<32x8xf32>
    %144 = arith.cmpf olt, %98, %143 : vector<32x8xf32>
    %145 = arith.andi %142, %144 : vector<32x8xi1>
    %146 = arith.extui %145 : vector<32x8xi1> to vector<32x8xi32>
    %147 = arith.sitofp %146 : vector<32x8xi32> to vector<32x8xf32>
    %cst_48 = arith.constant 0.000000e+00 : f32
    %148 = vector.broadcast %cst_48 : f32 to vector<32x8xf32>
    %149 = arith.cmpf oge, %98, %148 : vector<32x8xf32>
    %cst_49 = arith.constant 0.000000e+00 : f32
    %150 = vector.broadcast %cst_49 : f32 to vector<32x8xf32>
    %151 = arith.cmpf olt, %101, %150 : vector<32x8xf32>
    %152 = arith.andi %149, %151 : vector<32x8xi1>
    %153 = arith.extui %152 : vector<32x8xi1> to vector<32x8xi32>
    %154 = arith.sitofp %153 : vector<32x8xi32> to vector<32x8xf32>
    %cst_50 = arith.constant 0.000000e+00 : f32
    %155 = vector.broadcast %cst_50 : f32 to vector<32x8xf32>
    %156 = arith.cmpf oge, %101, %155 : vector<32x8xf32>
    %cst_51 = arith.constant 0.000000e+00 : f32
    %157 = vector.broadcast %cst_51 : f32 to vector<32x8xf32>
    %158 = arith.cmpf olt, %104, %157 : vector<32x8xf32>
    %159 = arith.andi %156, %158 : vector<32x8xi1>
    %160 = arith.extui %159 : vector<32x8xi1> to vector<32x8xi32>
    %161 = arith.sitofp %160 : vector<32x8xi32> to vector<32x8xf32>
    %cst_52 = arith.constant 0.000000e+00 : f32
    %162 = vector.broadcast %cst_52 : f32 to vector<32x8xf32>
    %163 = arith.cmpf oge, %104, %162 : vector<32x8xf32>
    %cst_53 = arith.constant 0.000000e+00 : f32
    %164 = vector.broadcast %cst_53 : f32 to vector<32x8xf32>
    %165 = arith.cmpf olt, %107, %164 : vector<32x8xf32>
    %166 = arith.andi %163, %165 : vector<32x8xi1>
    %167 = arith.extui %166 : vector<32x8xi1> to vector<32x8xi32>
    %168 = arith.sitofp %167 : vector<32x8xi32> to vector<32x8xf32>
    %cst_54 = arith.constant 0.000000e+00 : f32
    %169 = vector.broadcast %cst_54 : f32 to vector<32x8xf32>
    %170 = arith.cmpf oge, %107, %169 : vector<32x8xf32>
    %cst_55 = arith.constant 0.000000e+00 : f32
    %171 = vector.broadcast %cst_55 : f32 to vector<32x8xf32>
    %172 = arith.cmpf olt, %110, %171 : vector<32x8xf32>
    %173 = arith.andi %170, %172 : vector<32x8xi1>
    %174 = arith.extui %173 : vector<32x8xi1> to vector<32x8xi32>
    %175 = arith.sitofp %174 : vector<32x8xi32> to vector<32x8xf32>
    %cst_56 = arith.constant 0.000000e+00 : f32
    %176 = vector.broadcast %cst_56 : f32 to vector<32x8xf32>
    %177 = arith.cmpf oge, %110, %176 : vector<32x8xf32>
    %cst_57 = arith.constant 0.000000e+00 : f32
    %178 = vector.broadcast %cst_57 : f32 to vector<32x8xf32>
    %179 = arith.cmpf olt, %113, %178 : vector<32x8xf32>
    %180 = arith.andi %177, %179 : vector<32x8xi1>
    %181 = arith.extui %180 : vector<32x8xi1> to vector<32x8xi32>
    %182 = arith.sitofp %181 : vector<32x8xi32> to vector<32x8xf32>
    %cst_58 = arith.constant 0.000000e+00 : f32
    %183 = vector.broadcast %cst_58 : f32 to vector<32x8xf32>
    %184 = arith.cmpf oge, %113, %183 : vector<32x8xf32>
    %cst_59 = arith.constant 0.000000e+00 : f32
    %185 = vector.broadcast %cst_59 : f32 to vector<32x8xf32>
    %186 = arith.cmpf olt, %116, %185 : vector<32x8xf32>
    %187 = arith.andi %184, %186 : vector<32x8xi1>
    %188 = arith.extui %187 : vector<32x8xi1> to vector<32x8xi32>
    %189 = arith.sitofp %188 : vector<32x8xi32> to vector<32x8xf32>
    %cst_60 = arith.constant 0.000000e+00 : f32
    %190 = vector.broadcast %cst_60 : f32 to vector<32x8xf32>
    %191 = arith.cmpf oge, %116, %190 : vector<32x8xf32>
    %cst_61 = arith.constant 0.000000e+00 : f32
    %192 = vector.broadcast %cst_61 : f32 to vector<32x8xf32>
    %193 = arith.cmpf olt, %119, %192 : vector<32x8xf32>
    %194 = arith.andi %191, %193 : vector<32x8xi1>
    %195 = arith.extui %194 : vector<32x8xi1> to vector<32x8xi32>
    %196 = arith.sitofp %195 : vector<32x8xi32> to vector<32x8xf32>
    %197 = arith.mulf %86, %126 : vector<32x8xf32>
    %198 = arith.mulf %92, %133 : vector<32x8xf32>
    %199 = arith.subf %197, %198 : vector<32x8xf32>
    %cst_62 = arith.constant 2.500000e+00 : f32
    %200 = vector.broadcast %cst_62 : f32 to vector<32x8xf32>
    %201 = arith.mulf %199, %200 : vector<32x8xf32>
    %202 = arith.mulf %89, %133 : vector<32x8xf32>
    %203 = arith.mulf %95, %140 : vector<32x8xf32>
    %204 = arith.subf %202, %203 : vector<32x8xf32>
    %cst_63 = arith.constant 2.500000e+00 : f32
    %205 = vector.broadcast %cst_63 : f32 to vector<32x8xf32>
    %206 = arith.mulf %204, %205 : vector<32x8xf32>
    %207 = arith.mulf %92, %140 : vector<32x8xf32>
    %208 = arith.mulf %98, %147 : vector<32x8xf32>
    %209 = arith.subf %207, %208 : vector<32x8xf32>
    %cst_64 = arith.constant 2.500000e+00 : f32
    %210 = vector.broadcast %cst_64 : f32 to vector<32x8xf32>
    %211 = arith.mulf %209, %210 : vector<32x8xf32>
    %212 = arith.mulf %95, %147 : vector<32x8xf32>
    %213 = arith.mulf %101, %154 : vector<32x8xf32>
    %214 = arith.subf %212, %213 : vector<32x8xf32>
    %cst_65 = arith.constant 2.500000e+00 : f32
    %215 = vector.broadcast %cst_65 : f32 to vector<32x8xf32>
    %216 = arith.mulf %214, %215 : vector<32x8xf32>
    %217 = arith.mulf %98, %154 : vector<32x8xf32>
    %218 = arith.mulf %104, %161 : vector<32x8xf32>
    %219 = arith.subf %217, %218 : vector<32x8xf32>
    %cst_66 = arith.constant 2.500000e+00 : f32
    %220 = vector.broadcast %cst_66 : f32 to vector<32x8xf32>
    %221 = arith.mulf %219, %220 : vector<32x8xf32>
    %222 = arith.mulf %101, %161 : vector<32x8xf32>
    %223 = arith.mulf %107, %168 : vector<32x8xf32>
    %224 = arith.subf %222, %223 : vector<32x8xf32>
    %cst_67 = arith.constant 2.500000e+00 : f32
    %225 = vector.broadcast %cst_67 : f32 to vector<32x8xf32>
    %226 = arith.mulf %224, %225 : vector<32x8xf32>
    %227 = arith.mulf %104, %168 : vector<32x8xf32>
    %228 = arith.mulf %110, %175 : vector<32x8xf32>
    %229 = arith.subf %227, %228 : vector<32x8xf32>
    %cst_68 = arith.constant 2.500000e+00 : f32
    %230 = vector.broadcast %cst_68 : f32 to vector<32x8xf32>
    %231 = arith.mulf %229, %230 : vector<32x8xf32>
    %232 = arith.mulf %107, %175 : vector<32x8xf32>
    %233 = arith.mulf %113, %182 : vector<32x8xf32>
    %234 = arith.subf %232, %233 : vector<32x8xf32>
    %cst_69 = arith.constant 2.500000e+00 : f32
    %235 = vector.broadcast %cst_69 : f32 to vector<32x8xf32>
    %236 = arith.mulf %234, %235 : vector<32x8xf32>
    %237 = arith.mulf %110, %182 : vector<32x8xf32>
    %238 = arith.mulf %116, %189 : vector<32x8xf32>
    %239 = arith.subf %237, %238 : vector<32x8xf32>
    %cst_70 = arith.constant 2.500000e+00 : f32
    %240 = vector.broadcast %cst_70 : f32 to vector<32x8xf32>
    %241 = arith.mulf %239, %240 : vector<32x8xf32>
    %242 = arith.mulf %113, %189 : vector<32x8xf32>
    %243 = arith.mulf %119, %196 : vector<32x8xf32>
    %244 = arith.subf %242, %243 : vector<32x8xf32>
    %cst_71 = arith.constant 2.500000e+00 : f32
    %245 = vector.broadcast %cst_71 : f32 to vector<32x8xf32>
    %246 = arith.mulf %244, %245 : vector<32x8xf32>
    %247 = arith.mulf %86, %201 : vector<32x8xf32>
    %248 = arith.mulf %95, %206 : vector<32x8xf32>
    %249 = arith.subf %247, %248 : vector<32x8xf32>
    %cst_72 = arith.constant 1.250000e+00 : f32
    %250 = vector.broadcast %cst_72 : f32 to vector<32x8xf32>
    %251 = arith.mulf %249, %250 : vector<32x8xf32>
    %252 = arith.mulf %89, %206 : vector<32x8xf32>
    %253 = arith.mulf %98, %211 : vector<32x8xf32>
    %254 = arith.subf %252, %253 : vector<32x8xf32>
    %cst_73 = arith.constant 1.250000e+00 : f32
    %255 = vector.broadcast %cst_73 : f32 to vector<32x8xf32>
    %256 = arith.mulf %254, %255 : vector<32x8xf32>
    %257 = arith.mulf %92, %211 : vector<32x8xf32>
    %258 = arith.mulf %101, %216 : vector<32x8xf32>
    %259 = arith.subf %257, %258 : vector<32x8xf32>
    %cst_74 = arith.constant 1.250000e+00 : f32
    %260 = vector.broadcast %cst_74 : f32 to vector<32x8xf32>
    %261 = arith.mulf %259, %260 : vector<32x8xf32>
    %262 = arith.mulf %95, %216 : vector<32x8xf32>
    %263 = arith.mulf %104, %221 : vector<32x8xf32>
    %264 = arith.subf %262, %263 : vector<32x8xf32>
    %cst_75 = arith.constant 1.250000e+00 : f32
    %265 = vector.broadcast %cst_75 : f32 to vector<32x8xf32>
    %266 = arith.mulf %264, %265 : vector<32x8xf32>
    %267 = arith.mulf %98, %221 : vector<32x8xf32>
    %268 = arith.mulf %107, %226 : vector<32x8xf32>
    %269 = arith.subf %267, %268 : vector<32x8xf32>
    %cst_76 = arith.constant 1.250000e+00 : f32
    %270 = vector.broadcast %cst_76 : f32 to vector<32x8xf32>
    %271 = arith.mulf %269, %270 : vector<32x8xf32>
    %272 = arith.mulf %101, %226 : vector<32x8xf32>
    %273 = arith.mulf %110, %231 : vector<32x8xf32>
    %274 = arith.subf %272, %273 : vector<32x8xf32>
    %cst_77 = arith.constant 1.250000e+00 : f32
    %275 = vector.broadcast %cst_77 : f32 to vector<32x8xf32>
    %276 = arith.mulf %274, %275 : vector<32x8xf32>
    %277 = arith.mulf %104, %231 : vector<32x8xf32>
    %278 = arith.mulf %113, %236 : vector<32x8xf32>
    %279 = arith.subf %277, %278 : vector<32x8xf32>
    %cst_78 = arith.constant 1.250000e+00 : f32
    %280 = vector.broadcast %cst_78 : f32 to vector<32x8xf32>
    %281 = arith.mulf %279, %280 : vector<32x8xf32>
    %282 = arith.mulf %107, %236 : vector<32x8xf32>
    %283 = arith.mulf %116, %241 : vector<32x8xf32>
    %284 = arith.subf %282, %283 : vector<32x8xf32>
    %cst_79 = arith.constant 1.250000e+00 : f32
    %285 = vector.broadcast %cst_79 : f32 to vector<32x8xf32>
    %286 = arith.mulf %284, %285 : vector<32x8xf32>
    %287 = arith.mulf %110, %241 : vector<32x8xf32>
    %288 = arith.mulf %119, %246 : vector<32x8xf32>
    %289 = arith.subf %287, %288 : vector<32x8xf32>
    %cst_80 = arith.constant 1.250000e+00 : f32
    %290 = vector.broadcast %cst_80 : f32 to vector<32x8xf32>
    %291 = arith.mulf %289, %290 : vector<32x8xf32>
    %292 = arith.mulf %86, %251 : vector<32x8xf32>
    %293 = arith.mulf %98, %256 : vector<32x8xf32>
    %294 = arith.subf %292, %293 : vector<32x8xf32>
    %cst_81 = arith.constant 0.833333313 : f32
    %295 = vector.broadcast %cst_81 : f32 to vector<32x8xf32>
    %296 = arith.mulf %294, %295 : vector<32x8xf32>
    %297 = arith.mulf %89, %256 : vector<32x8xf32>
    %298 = arith.mulf %101, %261 : vector<32x8xf32>
    %299 = arith.subf %297, %298 : vector<32x8xf32>
    %cst_82 = arith.constant 0.833333313 : f32
    %300 = vector.broadcast %cst_82 : f32 to vector<32x8xf32>
    %301 = arith.mulf %299, %300 : vector<32x8xf32>
    %302 = arith.mulf %92, %261 : vector<32x8xf32>
    %303 = arith.mulf %104, %266 : vector<32x8xf32>
    %304 = arith.subf %302, %303 : vector<32x8xf32>
    %cst_83 = arith.constant 0.833333313 : f32
    %305 = vector.broadcast %cst_83 : f32 to vector<32x8xf32>
    %306 = arith.mulf %304, %305 : vector<32x8xf32>
    %307 = arith.mulf %95, %266 : vector<32x8xf32>
    %308 = arith.mulf %107, %271 : vector<32x8xf32>
    %309 = arith.subf %307, %308 : vector<32x8xf32>
    %cst_84 = arith.constant 0.833333313 : f32
    %310 = vector.broadcast %cst_84 : f32 to vector<32x8xf32>
    %311 = arith.mulf %309, %310 : vector<32x8xf32>
    %312 = arith.mulf %98, %271 : vector<32x8xf32>
    %313 = arith.mulf %110, %276 : vector<32x8xf32>
    %314 = arith.subf %312, %313 : vector<32x8xf32>
    %cst_85 = arith.constant 0.833333313 : f32
    %315 = vector.broadcast %cst_85 : f32 to vector<32x8xf32>
    %316 = arith.mulf %314, %315 : vector<32x8xf32>
    %317 = arith.mulf %101, %276 : vector<32x8xf32>
    %318 = arith.mulf %113, %281 : vector<32x8xf32>
    %319 = arith.subf %317, %318 : vector<32x8xf32>
    %cst_86 = arith.constant 0.833333313 : f32
    %320 = vector.broadcast %cst_86 : f32 to vector<32x8xf32>
    %321 = arith.mulf %319, %320 : vector<32x8xf32>
    %322 = arith.mulf %104, %281 : vector<32x8xf32>
    %323 = arith.mulf %116, %286 : vector<32x8xf32>
    %324 = arith.subf %322, %323 : vector<32x8xf32>
    %cst_87 = arith.constant 0.833333313 : f32
    %325 = vector.broadcast %cst_87 : f32 to vector<32x8xf32>
    %326 = arith.mulf %324, %325 : vector<32x8xf32>
    %327 = arith.mulf %107, %286 : vector<32x8xf32>
    %328 = arith.mulf %119, %291 : vector<32x8xf32>
    %329 = arith.subf %327, %328 : vector<32x8xf32>
    %cst_88 = arith.constant 0.833333313 : f32
    %330 = vector.broadcast %cst_88 : f32 to vector<32x8xf32>
    %331 = arith.mulf %329, %330 : vector<32x8xf32>
    %332 = tpu.concatenate %296, %301, %306, %311, %316, %321, %326, %331 in 0 : vector<32x8xf32>, vector<32x8xf32>, vector<32x8xf32>, vector<32x8xf32>, vector<32x8xf32>, vector<32x8xf32>, vector<32x8xf32>, vector<32x8xf32> -> vector<256x8xf32>
    %cst_89 = arith.constant 0.000000e+00 : f32
    %333 = vector.broadcast %cst_89 : f32 to vector<32x8xf32>
    %334 = arith.subf %333, %82 : vector<32x8xf32>
    %335 = math.exp %334 : vector<32x8xf32>
    %cst_90 = arith.constant 1.000000e+00 : f32
    %336 = vector.broadcast %cst_90 : f32 to vector<32x8xf32>
    %337 = arith.addf %336, %335 : vector<32x8xf32>
    %cst_91 = arith.constant 1.000000e+00 : f32
    %338 = vector.broadcast %cst_91 : f32 to vector<32x8xf32>
    %339 = arith.divf %338, %337 : vector<32x8xf32>
    %340 = arith.mulf %82, %339 : vector<32x8xf32>
    %c0_92 = arith.constant 0 : index
    %c0_93 = arith.constant 0 : index
    %341 = vector.load %arg15[%c0_92, %c0_93] : memref<10x32xbf16, #tpu.memory_space<vmem>>, vector<10x32xbf16>
    %342 = arith.truncf %340 : vector<32x8xf32> to vector<32x8xbf16>
    %cst_94 = arith.constant dense<0.000000e+00> : vector<10x8xf32>
    %343 = tpu.matmul %341, %342, %cst_94 {dimension_numbers = #tpu.dot_dimension_numbers<[1], [0], [0], [1], [0, 0, 1, 1], [], []>} : vector<10x32xbf16>, vector<32x8xbf16>, vector<10x8xf32> -> vector<10x8xf32>
    %c0_95 = arith.constant 0 : index
    %c0_96 = arith.constant 0 : index
    %344 = vector.load %arg16[%c0_95, %c0_96] : memref<10x256xbf16, #tpu.memory_space<vmem>>, vector<10x256xbf16>
    %345 = arith.truncf %332 : vector<256x8xf32> to vector<256x8xbf16>
    %cst_97 = arith.constant dense<0.000000e+00> : vector<10x8xf32>
    %346 = tpu.matmul %344, %345, %cst_97 {dimension_numbers = #tpu.dot_dimension_numbers<[1], [0], [0], [1], [0, 0, 1, 1], [], []>} : vector<10x256xbf16>, vector<256x8xbf16>, vector<10x8xf32> -> vector<10x8xf32>
    %347 = arith.addf %343, %346 : vector<10x8xf32>
    %c0_98 = arith.constant 0 : index
    %c0_99 = arith.constant 0 : index
    %348 = vector.load %arg17[%c0_98, %c0_99] : memref<10x12xf32, #tpu.memory_space<vmem>>, vector<10x12xf32>
    %349 = vector.extract_strided_slice %348 {offsets = [0, 0], sizes = [10, 1], strides = [1, 1]} : vector<10x12xf32> to vector<10x1xf32>
    %350 = vector.broadcast %349 : vector<10x1xf32> to vector<10x8xf32>
    %351 = arith.subf %347, %350 : vector<10x8xf32>
    %352 = vector.extract_strided_slice %348 {offsets = [0, 1], sizes = [10, 1], strides = [1, 1]} : vector<10x12xf32> to vector<10x1xf32>
    %353 = vector.broadcast %352 : vector<10x1xf32> to vector<10x8xf32>
    %354 = arith.subf %347, %353 : vector<10x8xf32>
    %355 = vector.extract_strided_slice %348 {offsets = [0, 2], sizes = [10, 1], strides = [1, 1]} : vector<10x12xf32> to vector<10x1xf32>
    %356 = vector.broadcast %355 : vector<10x1xf32> to vector<10x8xf32>
    %357 = arith.subf %347, %356 : vector<10x8xf32>
    %358 = vector.extract_strided_slice %348 {offsets = [0, 3], sizes = [10, 1], strides = [1, 1]} : vector<10x12xf32> to vector<10x1xf32>
    %359 = vector.broadcast %358 : vector<10x1xf32> to vector<10x8xf32>
    %360 = arith.subf %347, %359 : vector<10x8xf32>
    %361 = vector.extract_strided_slice %348 {offsets = [0, 4], sizes = [10, 1], strides = [1, 1]} : vector<10x12xf32> to vector<10x1xf32>
    %362 = vector.broadcast %361 : vector<10x1xf32> to vector<10x8xf32>
    %363 = arith.subf %347, %362 : vector<10x8xf32>
    %364 = vector.extract_strided_slice %348 {offsets = [0, 5], sizes = [10, 1], strides = [1, 1]} : vector<10x12xf32> to vector<10x1xf32>
    %365 = vector.broadcast %364 : vector<10x1xf32> to vector<10x8xf32>
    %366 = arith.subf %347, %365 : vector<10x8xf32>
    %367 = vector.extract_strided_slice %348 {offsets = [0, 6], sizes = [10, 1], strides = [1, 1]} : vector<10x12xf32> to vector<10x1xf32>
    %368 = vector.broadcast %367 : vector<10x1xf32> to vector<10x8xf32>
    %369 = arith.subf %347, %368 : vector<10x8xf32>
    %370 = vector.extract_strided_slice %348 {offsets = [0, 7], sizes = [10, 1], strides = [1, 1]} : vector<10x12xf32> to vector<10x1xf32>
    %371 = vector.broadcast %370 : vector<10x1xf32> to vector<10x8xf32>
    %372 = arith.subf %347, %371 : vector<10x8xf32>
    %373 = vector.extract_strided_slice %348 {offsets = [0, 8], sizes = [10, 1], strides = [1, 1]} : vector<10x12xf32> to vector<10x1xf32>
    %374 = vector.broadcast %373 : vector<10x1xf32> to vector<10x8xf32>
    %375 = arith.subf %347, %374 : vector<10x8xf32>
    %376 = vector.extract_strided_slice %348 {offsets = [0, 9], sizes = [10, 1], strides = [1, 1]} : vector<10x12xf32> to vector<10x1xf32>
    %377 = vector.broadcast %376 : vector<10x1xf32> to vector<10x8xf32>
    %378 = arith.subf %347, %377 : vector<10x8xf32>
    %379 = vector.extract_strided_slice %348 {offsets = [0, 10], sizes = [10, 1], strides = [1, 1]} : vector<10x12xf32> to vector<10x1xf32>
    %380 = vector.broadcast %379 : vector<10x1xf32> to vector<10x8xf32>
    %381 = arith.subf %347, %380 : vector<10x8xf32>
    %382 = vector.extract_strided_slice %348 {offsets = [0, 11], sizes = [10, 1], strides = [1, 1]} : vector<10x12xf32> to vector<10x1xf32>
    %383 = vector.broadcast %382 : vector<10x1xf32> to vector<10x8xf32>
    %384 = arith.subf %347, %383 : vector<10x8xf32>
    %cst_100 = arith.constant 0.000000e+00 : f32
    %385 = vector.broadcast %cst_100 : f32 to vector<10x8xf32>
    %386 = arith.cmpf oge, %351, %385 : vector<10x8xf32>
    %cst_101 = arith.constant 0.000000e+00 : f32
    %387 = vector.broadcast %cst_101 : f32 to vector<10x8xf32>
    %388 = arith.cmpf olt, %354, %387 : vector<10x8xf32>
    %389 = arith.andi %386, %388 : vector<10x8xi1>
    %390 = arith.extui %389 : vector<10x8xi1> to vector<10x8xi32>
    %391 = arith.sitofp %390 : vector<10x8xi32> to vector<10x8xf32>
    %cst_102 = arith.constant 0.000000e+00 : f32
    %392 = vector.broadcast %cst_102 : f32 to vector<10x8xf32>
    %393 = arith.cmpf oge, %354, %392 : vector<10x8xf32>
    %cst_103 = arith.constant 0.000000e+00 : f32
    %394 = vector.broadcast %cst_103 : f32 to vector<10x8xf32>
    %395 = arith.cmpf olt, %357, %394 : vector<10x8xf32>
    %396 = arith.andi %393, %395 : vector<10x8xi1>
    %397 = arith.extui %396 : vector<10x8xi1> to vector<10x8xi32>
    %398 = arith.sitofp %397 : vector<10x8xi32> to vector<10x8xf32>
    %cst_104 = arith.constant 0.000000e+00 : f32
    %399 = vector.broadcast %cst_104 : f32 to vector<10x8xf32>
    %400 = arith.cmpf oge, %357, %399 : vector<10x8xf32>
    %cst_105 = arith.constant 0.000000e+00 : f32
    %401 = vector.broadcast %cst_105 : f32 to vector<10x8xf32>
    %402 = arith.cmpf olt, %360, %401 : vector<10x8xf32>
    %403 = arith.andi %400, %402 : vector<10x8xi1>
    %404 = arith.extui %403 : vector<10x8xi1> to vector<10x8xi32>
    %405 = arith.sitofp %404 : vector<10x8xi32> to vector<10x8xf32>
    %cst_106 = arith.constant 0.000000e+00 : f32
    %406 = vector.broadcast %cst_106 : f32 to vector<10x8xf32>
    %407 = arith.cmpf oge, %360, %406 : vector<10x8xf32>
    %cst_107 = arith.constant 0.000000e+00 : f32
    %408 = vector.broadcast %cst_107 : f32 to vector<10x8xf32>
    %409 = arith.cmpf olt, %363, %408 : vector<10x8xf32>
    %410 = arith.andi %407, %409 : vector<10x8xi1>
    %411 = arith.extui %410 : vector<10x8xi1> to vector<10x8xi32>
    %412 = arith.sitofp %411 : vector<10x8xi32> to vector<10x8xf32>
    %cst_108 = arith.constant 0.000000e+00 : f32
    %413 = vector.broadcast %cst_108 : f32 to vector<10x8xf32>
    %414 = arith.cmpf oge, %363, %413 : vector<10x8xf32>
    %cst_109 = arith.constant 0.000000e+00 : f32
    %415 = vector.broadcast %cst_109 : f32 to vector<10x8xf32>
    %416 = arith.cmpf olt, %366, %415 : vector<10x8xf32>
    %417 = arith.andi %414, %416 : vector<10x8xi1>
    %418 = arith.extui %417 : vector<10x8xi1> to vector<10x8xi32>
    %419 = arith.sitofp %418 : vector<10x8xi32> to vector<10x8xf32>
    %cst_110 = arith.constant 0.000000e+00 : f32
    %420 = vector.broadcast %cst_110 : f32 to vector<10x8xf32>
    %421 = arith.cmpf oge, %366, %420 : vector<10x8xf32>
    %cst_111 = arith.constant 0.000000e+00 : f32
    %422 = vector.broadcast %cst_111 : f32 to vector<10x8xf32>
    %423 = arith.cmpf olt, %369, %422 : vector<10x8xf32>
    %424 = arith.andi %421, %423 : vector<10x8xi1>
    %425 = arith.extui %424 : vector<10x8xi1> to vector<10x8xi32>
    %426 = arith.sitofp %425 : vector<10x8xi32> to vector<10x8xf32>
    %cst_112 = arith.constant 0.000000e+00 : f32
    %427 = vector.broadcast %cst_112 : f32 to vector<10x8xf32>
    %428 = arith.cmpf oge, %369, %427 : vector<10x8xf32>
    %cst_113 = arith.constant 0.000000e+00 : f32
    %429 = vector.broadcast %cst_113 : f32 to vector<10x8xf32>
    %430 = arith.cmpf olt, %372, %429 : vector<10x8xf32>
    %431 = arith.andi %428, %430 : vector<10x8xi1>
    %432 = arith.extui %431 : vector<10x8xi1> to vector<10x8xi32>
    %433 = arith.sitofp %432 : vector<10x8xi32> to vector<10x8xf32>
    %cst_114 = arith.constant 0.000000e+00 : f32
    %434 = vector.broadcast %cst_114 : f32 to vector<10x8xf32>
    %435 = arith.cmpf oge, %372, %434 : vector<10x8xf32>
    %cst_115 = arith.constant 0.000000e+00 : f32
    %436 = vector.broadcast %cst_115 : f32 to vector<10x8xf32>
    %437 = arith.cmpf olt, %375, %436 : vector<10x8xf32>
    %438 = arith.andi %435, %437 : vector<10x8xi1>
    %439 = arith.extui %438 : vector<10x8xi1> to vector<10x8xi32>
    %440 = arith.sitofp %439 : vector<10x8xi32> to vector<10x8xf32>
    %cst_116 = arith.constant 0.000000e+00 : f32
    %441 = vector.broadcast %cst_116 : f32 to vector<10x8xf32>
    %442 = arith.cmpf oge, %375, %441 : vector<10x8xf32>
    %cst_117 = arith.constant 0.000000e+00 : f32
    %443 = vector.broadcast %cst_117 : f32 to vector<10x8xf32>
    %444 = arith.cmpf olt, %378, %443 : vector<10x8xf32>
    %445 = arith.andi %442, %444 : vector<10x8xi1>
    %446 = arith.extui %445 : vector<10x8xi1> to vector<10x8xi32>
    %447 = arith.sitofp %446 : vector<10x8xi32> to vector<10x8xf32>
    %cst_118 = arith.constant 0.000000e+00 : f32
    %448 = vector.broadcast %cst_118 : f32 to vector<10x8xf32>
    %449 = arith.cmpf oge, %378, %448 : vector<10x8xf32>
    %cst_119 = arith.constant 0.000000e+00 : f32
    %450 = vector.broadcast %cst_119 : f32 to vector<10x8xf32>
    %451 = arith.cmpf olt, %381, %450 : vector<10x8xf32>
    %452 = arith.andi %449, %451 : vector<10x8xi1>
    %453 = arith.extui %452 : vector<10x8xi1> to vector<10x8xi32>
    %454 = arith.sitofp %453 : vector<10x8xi32> to vector<10x8xf32>
    %cst_120 = arith.constant 0.000000e+00 : f32
    %455 = vector.broadcast %cst_120 : f32 to vector<10x8xf32>
    %456 = arith.cmpf oge, %381, %455 : vector<10x8xf32>
    %cst_121 = arith.constant 0.000000e+00 : f32
    %457 = vector.broadcast %cst_121 : f32 to vector<10x8xf32>
    %458 = arith.cmpf olt, %384, %457 : vector<10x8xf32>
    %459 = arith.andi %456, %458 : vector<10x8xi1>
    %460 = arith.extui %459 : vector<10x8xi1> to vector<10x8xi32>
    %461 = arith.sitofp %460 : vector<10x8xi32> to vector<10x8xf32>
    %462 = arith.mulf %351, %391 : vector<10x8xf32>
    %463 = arith.mulf %357, %398 : vector<10x8xf32>
    %464 = arith.subf %462, %463 : vector<10x8xf32>
    %cst_122 = arith.constant 2.500000e+00 : f32
    %465 = vector.broadcast %cst_122 : f32 to vector<10x8xf32>
    %466 = arith.mulf %464, %465 : vector<10x8xf32>
    %467 = arith.mulf %354, %398 : vector<10x8xf32>
    %468 = arith.mulf %360, %405 : vector<10x8xf32>
    %469 = arith.subf %467, %468 : vector<10x8xf32>
    %cst_123 = arith.constant 2.500000e+00 : f32
    %470 = vector.broadcast %cst_123 : f32 to vector<10x8xf32>
    %471 = arith.mulf %469, %470 : vector<10x8xf32>
    %472 = arith.mulf %357, %405 : vector<10x8xf32>
    %473 = arith.mulf %363, %412 : vector<10x8xf32>
    %474 = arith.subf %472, %473 : vector<10x8xf32>
    %cst_124 = arith.constant 2.500000e+00 : f32
    %475 = vector.broadcast %cst_124 : f32 to vector<10x8xf32>
    %476 = arith.mulf %474, %475 : vector<10x8xf32>
    %477 = arith.mulf %360, %412 : vector<10x8xf32>
    %478 = arith.mulf %366, %419 : vector<10x8xf32>
    %479 = arith.subf %477, %478 : vector<10x8xf32>
    %cst_125 = arith.constant 2.500000e+00 : f32
    %480 = vector.broadcast %cst_125 : f32 to vector<10x8xf32>
    %481 = arith.mulf %479, %480 : vector<10x8xf32>
    %482 = arith.mulf %363, %419 : vector<10x8xf32>
    %483 = arith.mulf %369, %426 : vector<10x8xf32>
    %484 = arith.subf %482, %483 : vector<10x8xf32>
    %cst_126 = arith.constant 2.500000e+00 : f32
    %485 = vector.broadcast %cst_126 : f32 to vector<10x8xf32>
    %486 = arith.mulf %484, %485 : vector<10x8xf32>
    %487 = arith.mulf %366, %426 : vector<10x8xf32>
    %488 = arith.mulf %372, %433 : vector<10x8xf32>
    %489 = arith.subf %487, %488 : vector<10x8xf32>
    %cst_127 = arith.constant 2.500000e+00 : f32
    %490 = vector.broadcast %cst_127 : f32 to vector<10x8xf32>
    %491 = arith.mulf %489, %490 : vector<10x8xf32>
    %492 = arith.mulf %369, %433 : vector<10x8xf32>
    %493 = arith.mulf %375, %440 : vector<10x8xf32>
    %494 = arith.subf %492, %493 : vector<10x8xf32>
    %cst_128 = arith.constant 2.500000e+00 : f32
    %495 = vector.broadcast %cst_128 : f32 to vector<10x8xf32>
    %496 = arith.mulf %494, %495 : vector<10x8xf32>
    %497 = arith.mulf %372, %440 : vector<10x8xf32>
    %498 = arith.mulf %378, %447 : vector<10x8xf32>
    %499 = arith.subf %497, %498 : vector<10x8xf32>
    %cst_129 = arith.constant 2.500000e+00 : f32
    %500 = vector.broadcast %cst_129 : f32 to vector<10x8xf32>
    %501 = arith.mulf %499, %500 : vector<10x8xf32>
    %502 = arith.mulf %375, %447 : vector<10x8xf32>
    %503 = arith.mulf %381, %454 : vector<10x8xf32>
    %504 = arith.subf %502, %503 : vector<10x8xf32>
    %cst_130 = arith.constant 2.500000e+00 : f32
    %505 = vector.broadcast %cst_130 : f32 to vector<10x8xf32>
    %506 = arith.mulf %504, %505 : vector<10x8xf32>
    %507 = arith.mulf %378, %454 : vector<10x8xf32>
    %508 = arith.mulf %384, %461 : vector<10x8xf32>
    %509 = arith.subf %507, %508 : vector<10x8xf32>
    %cst_131 = arith.constant 2.500000e+00 : f32
    %510 = vector.broadcast %cst_131 : f32 to vector<10x8xf32>
    %511 = arith.mulf %509, %510 : vector<10x8xf32>
    %512 = arith.mulf %351, %466 : vector<10x8xf32>
    %513 = arith.mulf %360, %471 : vector<10x8xf32>
    %514 = arith.subf %512, %513 : vector<10x8xf32>
    %cst_132 = arith.constant 1.250000e+00 : f32
    %515 = vector.broadcast %cst_132 : f32 to vector<10x8xf32>
    %516 = arith.mulf %514, %515 : vector<10x8xf32>
    %517 = arith.mulf %354, %471 : vector<10x8xf32>
    %518 = arith.mulf %363, %476 : vector<10x8xf32>
    %519 = arith.subf %517, %518 : vector<10x8xf32>
    %cst_133 = arith.constant 1.250000e+00 : f32
    %520 = vector.broadcast %cst_133 : f32 to vector<10x8xf32>
    %521 = arith.mulf %519, %520 : vector<10x8xf32>
    %522 = arith.mulf %357, %476 : vector<10x8xf32>
    %523 = arith.mulf %366, %481 : vector<10x8xf32>
    %524 = arith.subf %522, %523 : vector<10x8xf32>
    %cst_134 = arith.constant 1.250000e+00 : f32
    %525 = vector.broadcast %cst_134 : f32 to vector<10x8xf32>
    %526 = arith.mulf %524, %525 : vector<10x8xf32>
    %527 = arith.mulf %360, %481 : vector<10x8xf32>
    %528 = arith.mulf %369, %486 : vector<10x8xf32>
    %529 = arith.subf %527, %528 : vector<10x8xf32>
    %cst_135 = arith.constant 1.250000e+00 : f32
    %530 = vector.broadcast %cst_135 : f32 to vector<10x8xf32>
    %531 = arith.mulf %529, %530 : vector<10x8xf32>
    %532 = arith.mulf %363, %486 : vector<10x8xf32>
    %533 = arith.mulf %372, %491 : vector<10x8xf32>
    %534 = arith.subf %532, %533 : vector<10x8xf32>
    %cst_136 = arith.constant 1.250000e+00 : f32
    %535 = vector.broadcast %cst_136 : f32 to vector<10x8xf32>
    %536 = arith.mulf %534, %535 : vector<10x8xf32>
    %537 = arith.mulf %366, %491 : vector<10x8xf32>
    %538 = arith.mulf %375, %496 : vector<10x8xf32>
    %539 = arith.subf %537, %538 : vector<10x8xf32>
    %cst_137 = arith.constant 1.250000e+00 : f32
    %540 = vector.broadcast %cst_137 : f32 to vector<10x8xf32>
    %541 = arith.mulf %539, %540 : vector<10x8xf32>
    %542 = arith.mulf %369, %496 : vector<10x8xf32>
    %543 = arith.mulf %378, %501 : vector<10x8xf32>
    %544 = arith.subf %542, %543 : vector<10x8xf32>
    %cst_138 = arith.constant 1.250000e+00 : f32
    %545 = vector.broadcast %cst_138 : f32 to vector<10x8xf32>
    %546 = arith.mulf %544, %545 : vector<10x8xf32>
    %547 = arith.mulf %372, %501 : vector<10x8xf32>
    %548 = arith.mulf %381, %506 : vector<10x8xf32>
    %549 = arith.subf %547, %548 : vector<10x8xf32>
    %cst_139 = arith.constant 1.250000e+00 : f32
    %550 = vector.broadcast %cst_139 : f32 to vector<10x8xf32>
    %551 = arith.mulf %549, %550 : vector<10x8xf32>
    %552 = arith.mulf %375, %506 : vector<10x8xf32>
    %553 = arith.mulf %384, %511 : vector<10x8xf32>
    %554 = arith.subf %552, %553 : vector<10x8xf32>
    %cst_140 = arith.constant 1.250000e+00 : f32
    %555 = vector.broadcast %cst_140 : f32 to vector<10x8xf32>
    %556 = arith.mulf %554, %555 : vector<10x8xf32>
    %557 = arith.mulf %351, %516 : vector<10x8xf32>
    %558 = arith.mulf %363, %521 : vector<10x8xf32>
    %559 = arith.subf %557, %558 : vector<10x8xf32>
    %cst_141 = arith.constant 0.833333313 : f32
    %560 = vector.broadcast %cst_141 : f32 to vector<10x8xf32>
    %561 = arith.mulf %559, %560 : vector<10x8xf32>
    %562 = arith.mulf %354, %521 : vector<10x8xf32>
    %563 = arith.mulf %366, %526 : vector<10x8xf32>
    %564 = arith.subf %562, %563 : vector<10x8xf32>
    %cst_142 = arith.constant 0.833333313 : f32
    %565 = vector.broadcast %cst_142 : f32 to vector<10x8xf32>
    %566 = arith.mulf %564, %565 : vector<10x8xf32>
    %567 = arith.mulf %357, %526 : vector<10x8xf32>
    %568 = arith.mulf %369, %531 : vector<10x8xf32>
    %569 = arith.subf %567, %568 : vector<10x8xf32>
    %cst_143 = arith.constant 0.833333313 : f32
    %570 = vector.broadcast %cst_143 : f32 to vector<10x8xf32>
    %571 = arith.mulf %569, %570 : vector<10x8xf32>
    %572 = arith.mulf %360, %531 : vector<10x8xf32>
    %573 = arith.mulf %372, %536 : vector<10x8xf32>
    %574 = arith.subf %572, %573 : vector<10x8xf32>
    %cst_144 = arith.constant 0.833333313 : f32
    %575 = vector.broadcast %cst_144 : f32 to vector<10x8xf32>
    %576 = arith.mulf %574, %575 : vector<10x8xf32>
    %577 = arith.mulf %363, %536 : vector<10x8xf32>
    %578 = arith.mulf %375, %541 : vector<10x8xf32>
    %579 = arith.subf %577, %578 : vector<10x8xf32>
    %cst_145 = arith.constant 0.833333313 : f32
    %580 = vector.broadcast %cst_145 : f32 to vector<10x8xf32>
    %581 = arith.mulf %579, %580 : vector<10x8xf32>
    %582 = arith.mulf %366, %541 : vector<10x8xf32>
    %583 = arith.mulf %378, %546 : vector<10x8xf32>
    %584 = arith.subf %582, %583 : vector<10x8xf32>
    %cst_146 = arith.constant 0.833333313 : f32
    %585 = vector.broadcast %cst_146 : f32 to vector<10x8xf32>
    %586 = arith.mulf %584, %585 : vector<10x8xf32>
    %587 = arith.mulf %369, %546 : vector<10x8xf32>
    %588 = arith.mulf %381, %551 : vector<10x8xf32>
    %589 = arith.subf %587, %588 : vector<10x8xf32>
    %cst_147 = arith.constant 0.833333313 : f32
    %590 = vector.broadcast %cst_147 : f32 to vector<10x8xf32>
    %591 = arith.mulf %589, %590 : vector<10x8xf32>
    %592 = arith.mulf %372, %551 : vector<10x8xf32>
    %593 = arith.mulf %384, %556 : vector<10x8xf32>
    %594 = arith.subf %592, %593 : vector<10x8xf32>
    %cst_148 = arith.constant 0.833333313 : f32
    %595 = vector.broadcast %cst_148 : f32 to vector<10x8xf32>
    %596 = arith.mulf %594, %595 : vector<10x8xf32>
    %597 = tpu.concatenate %561, %566, %571, %576, %581, %586, %591, %596 in 0 : vector<10x8xf32>, vector<10x8xf32>, vector<10x8xf32>, vector<10x8xf32>, vector<10x8xf32>, vector<10x8xf32>, vector<10x8xf32>, vector<10x8xf32> -> vector<80x8xf32>
    %cst_149 = arith.constant 0.000000e+00 : f32
    %598 = vector.broadcast %cst_149 : f32 to vector<10x8xf32>
    %599 = arith.subf %598, %347 : vector<10x8xf32>
    %600 = math.exp %599 : vector<10x8xf32>
    %cst_150 = arith.constant 1.000000e+00 : f32
    %601 = vector.broadcast %cst_150 : f32 to vector<10x8xf32>
    %602 = arith.addf %601, %600 : vector<10x8xf32>
    %cst_151 = arith.constant 1.000000e+00 : f32
    %603 = vector.broadcast %cst_151 : f32 to vector<10x8xf32>
    %604 = arith.divf %603, %602 : vector<10x8xf32>
    %605 = arith.mulf %347, %604 : vector<10x8xf32>
    %c0_152 = arith.constant 0 : index
    %c0_153 = arith.constant 0 : index
    %606 = vector.load %arg18[%c0_152, %c0_153] : memref<8x10xbf16, #tpu.memory_space<vmem>>, vector<8x10xbf16>
    %607 = arith.truncf %605 : vector<10x8xf32> to vector<10x8xbf16>
    %cst_154 = arith.constant dense<0.000000e+00> : vector<8x8xf32>
    %608 = tpu.matmul %606, %607, %cst_154 {dimension_numbers = #tpu.dot_dimension_numbers<[1], [0], [0], [1], [0, 0, 1, 1], [], []>} : vector<8x10xbf16>, vector<10x8xbf16>, vector<8x8xf32> -> vector<8x8xf32>
    %c0_155 = arith.constant 0 : index
    %c0_156 = arith.constant 0 : index
    %609 = vector.load %arg19[%c0_155, %c0_156] : memref<8x80xbf16, #tpu.memory_space<vmem>>, vector<8x80xbf16>
    %610 = arith.truncf %597 : vector<80x8xf32> to vector<80x8xbf16>
    %cst_157 = arith.constant dense<0.000000e+00> : vector<8x8xf32>
    %611 = tpu.matmul %609, %610, %cst_157 {dimension_numbers = #tpu.dot_dimension_numbers<[1], [0], [0], [1], [0, 0, 1, 1], [], []>} : vector<8x80xbf16>, vector<80x8xbf16>, vector<8x8xf32> -> vector<8x8xf32>
    %612 = arith.addf %608, %611 : vector<8x8xf32>
    %c0_158 = arith.constant 0 : index
    %c0_159 = arith.constant 0 : index
    %613 = vector.load %arg20[%c0_158, %c0_159] : memref<8x8xf32, #tpu.memory_space<vmem>>, vector<8x8xf32>
    tpu.vector_store %arg20[%c0_158, %c0_159], %612 {strides = array<i32>} : memref<8x8xf32, #tpu.memory_space<vmem>>, vector<8x8xf32>,
    return
  }
  func.func @transform_0(%arg0: i32) -> (i32, i32, i32) {
    %c0_i32 = arith.constant 0 : i32
    %c0_i32_0 = arith.constant 0 : i32
    %c0_i32_1 = arith.constant 0 : i32
    return %c0_i32, %c0_i32_0, %arg0 : i32, i32, i32
  }
  func.func @transform_1(%arg0: i32) -> (i32, i32) {
    %c0_i32 = arith.constant 0 : i32
    %c0_i32_0 = arith.constant 0 : i32
    %c0_i32_1 = arith.constant 0 : i32
    return %c0_i32, %c0_i32_0 : i32, i32
  }
  func.func @transform_2(%arg0: i32) -> (i32, i32) {
    %c0_i32 = arith.constant 0 : i32
    %c0_i32_0 = arith.constant 0 : i32
    %c0_i32_1 = arith.constant 0 : i32
    return %c0_i32, %c0_i32_0 : i32, i32
  }
  func.func @transform_3(%arg0: i32) -> (i32, i32) {
    %c0_i32 = arith.constant 0 : i32
    %c0_i32_0 = arith.constant 0 : i32
    %c0_i32_1 = arith.constant 0 : i32
    return %c0_i32, %c0_i32_0 : i32, i32
  }
  func.func @transform_4(%arg0: i32) -> (i32, i32) {
    %c0_i32 = arith.constant 0 : i32
    %c0_i32_0 = arith.constant 0 : i32
    %c0_i32_1 = arith.constant 0 : i32
    return %c0_i32, %c0_i32_0 : i32, i32
  }
  func.func @transform_5(%arg0: i32) -> (i32, i32) {
    %c0_i32 = arith.constant 0 : i32
    %c0_i32_0 = arith.constant 0 : i32
    %c0_i32_1 = arith.constant 0 : i32
    return %c0_i32, %c0_i32_0 : i32, i32
  }
  func.func @transform_6(%arg0: i32) -> (i32, i32) {
    %c0_i32 = arith.constant 0 : i32
    %c0_i32_0 = arith.constant 0 : i32
    %c0_i32_1 = arith.constant 0 : i32
    return %c0_i32, %c0_i32_0 : i32, i32
  }
  func.func @transform_7(%arg0: i32) -> (i32, i32) {
    %c0_i32 = arith.constant 0 : i32
    %c0_i32_0 = arith.constant 0 : i32
    %c0_i32_1 = arith.constant 0 : i32
    return %c0_i32, %c0_i32_0 : i32, i32
  }
  func.func @transform_8(%arg0: i32) -> (i32, i32) {
    %c0_i32 = arith.constant 0 : i32
    %c0_i32_0 = arith.constant 0 : i32
    %c0_i32_1 = arith.constant 0 : i32
    return %c0_i32, %c0_i32_0 : i32, i32
  }
  func.func @transform_9(%arg0: i32) -> (i32, i32) {
    %c0_i32 = arith.constant 0 : i32
    %c0_i32_0 = arith.constant 0 : i32
    %c0_i32_1 = arith.constant 0 : i32
    return %c0_i32, %c0_i32_0 : i32, i32
  }
  func.func @transform_10(%arg0: i32) -> (i32, i32) {
    %c0_i32 = arith.constant 0 : i32
    %c0_i32_0 = arith.constant 0 : i32
    %c0_i32_1 = arith.constant 0 : i32
    return %c0_i32, %c0_i32_0 : i32, i32
  }
  func.func @transform_11(%arg0: i32) -> (i32, i32) {
    %c0_i32 = arith.constant 0 : i32
    %c0_i32_0 = arith.constant 0 : i32
    %c0_i32_1 = arith.constant 0 : i32
    return %c0_i32, %c0_i32_0 : i32, i32
  }
  func.func @transform_12(%arg0: i32) -> (i32, i32) {
    %c0_i32 = arith.constant 0 : i32
    %c0_i32_0 = arith.constant 0 : i32
    %c0_i32_1 = arith.constant 0 : i32
    return %c0_i32, %c0_i32_0 : i32, i32
  }
  func.func @transform_13(%arg0: i32) -> (i32, i32) {
    %c0_i32 = arith.constant 0 : i32
    %c0_i32_0 = arith.constant 0 : i32
    %c0_i32_1 = arith.constant 0 : i32
    return %c0_i32, %c0_i32_0 : i32, i32
  }
  func.func @transform_14(%arg0: i32) -> (i32, i32) {
    %c0_i32 = arith.constant 0 : i32
    %c0_i32_0 = arith.constant 0 : i32
    %c0_i32_1 = arith.constant 0 : i32
    return %c0_i32, %c0_i32_0 : i32, i32
  }
  func.func @transform_15(%arg0: i32) -> (i32, i32) {
    %c0_i32 = arith.constant 0 : i32
    %c0_i32_0 = arith.constant 0 : i32
    %c0_i32_1 = arith.constant 0 : i32
    return %c0_i32, %c0_i32_0 : i32, i32
  }
  func.func @transform_16(%arg0: i32) -> (i32, i32) {
    %c0_i32 = arith.constant 0 : i32
    %c0_i32_0 = arith.constant 0 : i32
    %c0_i32_1 = arith.constant 0 : i32
    return %c0_i32, %c0_i32_0 : i32, i32
  }
  func.func @transform_17(%arg0: i32) -> (i32, i32) {
    %c0_i32 = arith.constant 0 : i32
    %c0_i32_0 = arith.constant 0 : i32
    %c0_i32_1 = arith.constant 0 : i32
    return %c0_i32, %c0_i32_0 : i32, i32
  }
  func.func @transform_18(%arg0: i32) -> (i32, i32) {
    %c0_i32 = arith.constant 0 : i32
    %c0_i32_0 = arith.constant 0 : i32
    %c0_i32_1 = arith.constant 0 : i32
    return %c0_i32, %c0_i32_0 : i32, i32
  }
  func.func @transform_19(%arg0: i32) -> (i32, i32) {
    %c0_i32 = arith.constant 0 : i32
    %c0_i32_0 = arith.constant 0 : i32
    return %c0_i32, %arg0 : i32, i32
  }
}

</mosaic_0001>

<bundles_post_ra>
// kernel: _lambda_.1
= control target key start
LH: loop header
LB: loop body
LE: loop exit
PB: predicated region body
PF: predicated region fallthrough
CT: control target
= control target key end

     0   :  { %vm80_vm0 = vcmask 1041409   ;;  %vm83_vm1 = vcmask 1042434   ;;  %vm86_vm2 = vcmask 1043459   ;;  %vm89_vm3 = vcmask 1044484   ;;  %s2540_s21 = smov 16   ;;  %s2545_s22 = smov 120   ;;  %s4326_s0 = inlined_call_operand.vmem [shape: f32[8,4,8], index: 0, kind: input, shape index: {}]   ;;  %s4327_s2 = inlined_call_operand.vmem [shape: f32[3,1], index: 2, kind: input, shape index: {}]   ;;  %s4328_s1 = inlined_call_operand.vmem [shape: bf16[3,24], index: 1, kind: input, shape index: {}]   ;;  %s4329_s6 = inlined_call_operand.vmem [shape: f32[3,1], index: 6, kind: input, shape index: {}]   ;;  %s4330_s4 = inlined_call_operand.vmem [shape: f32[3,1], index: 4, kind: input, shape index: {}]   ;;  %s4331_s3 = inlined_call_operand.vmem [shape: bf16[3,9], index: 3, kind: input, shape index: {}]   ;;  %s4332_s5 = inlined_call_operand.vmem [shape: bf16[3,8], index: 5, kind: input, shape index: {}]   ;;  %s4333_s8 = inlined_call_operand.vmem [shape: f32[3,1], index: 8, kind: input, shape index: {}]   ;;  %s4334_s7 = inlined_call_operand.vmem [shape: bf16[3,9], index: 7, kind: input, shape index: {}]   ;;  %s4335_s11 = inlined_call_operand.vmem [shape: bf16[8,3], index: 11, kind: input, shape index: {}]   ;;  %s4336_s12 = inlined_call_operand.vmem [shape: f32[8,1], index: 12, kind: input, shape index: {}]   ;;  %s4337_s10 = inlined_call_operand.vmem [shape: f32[8,1], index: 10, kind: input, shape index: {}]   ;;  %s4338_s13 = inlined_call_operand.vmem [shape: f32[32,12], index: 13, kind: input, shape index: {}]   ;;  %s4339_s9 = inlined_call_operand.vmem [shape: bf16[8,9], index: 9, kind: input, shape index: {}]   ;;  %s4340_s15 = inlined_call_operand.vmem [shape: bf16[10,256], index: 15, kind: input, shape index: {}]   ;;  %s4341_s14 = inlined_call_operand.vmem [shape: bf16[10,32], index: 14, kind: input, shape index: {}]   ;;  %s4342_s16 = inlined_call_operand.vmem [shape: f32[10,12], index: 16, kind: input, shape index: {}]   ;;  %s4343_s18 = inlined_call_operand.vmem [shape: bf16[8,80], index: 18, kind: input, shape index: {}]   ;;  %s4344_s17 = inlined_call_operand.vmem [shape: bf16[8,10], index: 17, kind: input, shape index: {}]   ;;  %s4345_s19 = inlined_call_operand.vmem [shape: f32[8,8], index: 19, kind: output, shape index: {}]  }
   0x1   :  { %4410 = sst [smem:[#allocation45_spill]] %s4326_s0  ;;  %vm92_vm4 = vcmask 1045509   ;;  %vm95_vm5 = vcmask 1046534   ;;  %vm98_vm6 = vcmask 1047559   ;;  %vm4347_vm7 = vcmask 64512  }
   0x2   :  { %4411 = sst [smem:[#allocation46_spill]] %s4327_s2  ;;  %s2541_s2 = smov 24   ;;  %vm154_vm8 = vcmask 130048   ;;  %vm156_vm9 = vcmask 195584   ;;  %vm4360_vm10 = vmmov 0   ;;  %vm4359_vm11 = vcmask 1043456  }
   0x3   :  { %4412 = sst [smem:[#allocation47_spill]] %s4328_s1  ;;  %s2546_s1 = smov 112   ;;  %vm2237_vm12 = vmneg %vm154_vm8  ;;  %vm2547_vm13 = vmmov 1   ;;  %vm241_vm15 = vcmask 1042432  }
   0x4   :  { %4413 = sst [smem:[#allocation48_spill]] %s4329_s6  ;;  %vm2238_vm14 = vmpackc.low %vm2547_vm13, %vm2237_vm12 }
   0x5   :  { %s4414_s20 = sld [smem:[#allocation45_spill]] }
   0x6   :  { %s4415_s25 = sld [smem:[#allocation46_spill]] }
   0x7   :  { %s4416_s27 = sld [smem:[#allocation47_spill]] }
   0x8   :  { %s4417_s0 = sld [smem:[#allocation48_spill]] }
   0xb   :  { %v63_v0 = vld [vmem:[%s4414_s20] sm:$0xf]  ;;  %v64_v1 = vld [vmem:[%s4414_s20 + $0x4] sm:$0xf]  ;;  %v2672_v2 = vld [vmem:[%s4414_s20 + $0x8] sm:$0xf] }
   0xc   :  { %v2677_v3 = vld [vmem:[%s4414_s20 + $0xc] sm:$0xf]  ;;  %v2682_v4 = vld [vmem:[%s4414_s20 + $0x10] sm:$0xf]  ;;  %v2687_v5 = vld [vmem:[%s4414_s20 + $0x14] sm:$0xf] }
   0xd   :  { %v2692_v6 = vld [vmem:[%s4414_s20 + $0x18] sm:$0xf]  ;;  %v2697_v7 = vld [vmem:[%s4414_s20 + $0x1c] sm:$0xf]  ;;  %v101_v8 = vrot.slane %v63_v0, 1  ;;  %v103_v9 = vrot.slane %v2672_v2, 7 }
   0xe   :  { %v105_v10 = vrot.slane %v2677_v3, 6  ;;  %v107_v11 = vrot.slane %v2682_v4, 5  ;;  %v109_v12 = vrot.slane %v2687_v5, 4  ;;  %v111_v13 = vrot.slane %v2692_v6, 3  ;;  %s2539_s20 = smov 8  }
   0xf   :  { %v113_v14 = vrot.slane %v2697_v7, 2  ;;  %v102_v15 = vsel %vm80_vm0, %v64_v1, %v101_v8  ;;  %v118_v16 = vrot.slane %v63_v0, 2  ;;  %v119_v17 = vrot.slane %v64_v1, 1 }
  0x10   :  { %v122_v18 = vrot.slane %v2677_v3, 7  ;;  %v104_v19 = vsel %vm83_vm1, %v103_v9, %v102_v15  ;;  %v124_v20 = vrot.slane %v2682_v4, 6  ;;  %v126_v21 = vrot.slane %v2687_v5, 5 }
  0x11   :  { %v128_v22 = vrot.slane %v2692_v6, 4  ;;  %v106_v23 = vsel %vm86_vm2, %v105_v10, %v104_v19  ;;  %v120_v24 = vsel %vm80_vm0, %v119_v17, %v118_v16  ;;  %v130_v25 = vrot.slane %v2697_v7, 3  ;;  %v173_v10 = vld [vmem:[%s4415_s25] sm:$0x7] }
  0x12   :  { %v135_v26 = vrot.slane %v63_v0, 3  ;;  %v108_v27 = vsel %vm89_vm3, %v107_v11, %v106_v23  ;;  %v121_v28 = vsel %vm83_vm1, %v2672_v2, %v120_v24  ;;  %v136_v29 = vrot.slane %v64_v1, 2  ;;  %v170_v16 = vld [vmem:[%s4416_s27] sm:$0x3] }
  0x13   :  { %v138_v30 = vrot.slane %v2672_v2, 1  ;;  %v110_v31 = vsel %vm92_vm4, %v109_v12, %v108_v27  ;;  %v123_v32 = vsel %vm86_vm2, %v122_v18, %v121_v28  ;;  %v141_v33 = vrot.slane %v2682_v4, 7  ;;  %v306_v28 = vld [vmem:[%s4417_s0] sm:$0x7] }
  0x14   :  { %v143_v34 = vrot.slane %v2687_v5, 6  ;;  %v112_v35 = vsel %vm95_vm5, %v111_v13, %v110_v31  ;;  %v125_v36 = vsel %vm89_vm3, %v124_v20, %v123_v32  ;;  %v137_v37 = vsel %vm80_vm0, %v136_v29, %v135_v26  ;;  %v247_v29 = vld [vmem:[%s4330_s4] sm:$0x7] }
  0x15   :  { %v145_v38 = vrot.slane %v2692_v6, 5  ;;  %v114_v39 = vsel %vm98_vm6, %v113_v14, %v112_v35  ;;  %v127_v40 = vsel %vm92_vm4, %v126_v21, %v125_v36  ;;  %v139_v41 = vsel %vm83_vm1, %v138_v30, %v137_v37 }
  0x16   :  { %v147_v42 = vrot.slane %v2697_v7, 4  ;;  %115 = vrot.lane.b32.xlu0 %v114_v39, %s2539_s20  ;;  %v129_v43 = vsel %vm95_vm5, %v128_v22, %v127_v40  ;;  %v140_v44 = vsel %vm86_vm2, %v2677_v3, %v139_v41  ;;  %v79_v45 = vrot.slane %v64_v1, 7  ;;  %v245_v40 = vld [vmem:[%s4331_s3] sm:$0x3]  ;;  %s2549_s3 = smov 32  }
  0x17   :  { %v82_v46 = vrot.slane %v2672_v2, 6  ;;  %v131_v47 = vsel %vm98_vm6, %v130_v25, %v129_v43  ;;  %v142_v48 = vsel %vm89_vm3, %v141_v33, %v140_v44  ;;  %v85_v49 = vrot.slane %v2677_v3, 5 }
  0x18   :  { %v144_v50 = vsel %vm92_vm4, %v143_v34, %v142_v48  ;;  %v88_v51 = vrot.slane %v2682_v4, 4  ;;  %v91_v53 = vrot.slane %v2687_v5, 3  ;;  %v81_v54 = vsel %vm80_vm0, %v79_v45, %v63_v0 }
  0x19   :  { %v146_v52 = vsel %vm95_vm5, %v145_v38, %v144_v50  ;;  %v94_v56 = vrot.slane %v2692_v6, 2  ;;  %v84_v57 = vsel %vm83_vm1, %v82_v46, %v81_v54  ;;  %v97_v58 = vrot.slane %v2697_v7, 1 }
  0x1a   :  { %132 = vrot.lane.b32.xlu0 %v131_v47, %s2540_s21  ;;  %v148_v55 = vsel %vm98_vm6, %v147_v42, %v146_v52  ;;  %v87_v59 = vsel %vm86_vm2, %v85_v49, %v84_v57  ;;  %v4373_v6 = vmov 0.0   ;;  %v4362_v8 = vmov 0   ;;  %v304_v42 = vld [vmem:[%s4332_s5] sm:$0x3]  ;;  %s2550_s5 = smov 96  }
  0x1b   :  { %149 = vrot.lane.b32.xlu1 %v148_v55, %s2541_s2  ;;  %v90_v60 = vsel %vm89_vm3, %v88_v51, %v87_v59  ;;  %2365 = vmatprep.subr.bf16.mxu0 %v4373_v6  ;;  %vm4358_vm0 = vcmask 1045504   ;;  %vm4348_vm1 = vcmask 1044480   ;;  %v2548_v30 = vmov 65535  }
  0x1c   :  { %v93_v61 = vsel %vm92_vm4, %v91_v53, %v90_v60  ;;  %2373 = vmatprep.subr.bf16.mxu1 %v4373_v6  ;;  %2369 = vmatprep.mubr.msk.bf16.mxu0 %vm4360_vm10, %v4373_v6  ;;  %v258_v31 = vsel %vm4359_vm11, 4294967295, %v2548_v30  ;;  %vm253_vm2 = vcmask 72704   ;;  %vm513_vm3 = vcmask 1040384  }
  0x1d   :  { %v96_v62 = vsel %vm95_vm5, %v94_v56, %v93_v61  ;;  %2375 = vmatprep.mubr.msk.bf16.mxu1 %vm4360_vm10, %v4373_v6  ;;  %2455 = vset.pattern.permute.xlu0 %v4362_v8  ;;  %v2797_v36 = vsel %vm4348_vm1, %v258_v31, 0  ;;  %v515_v51 = vsel %vm513_vm3, 4294967295, %v2548_v30  ;;  %vm4357_vm4 = vcmask 1041408  }
  0x1e   :  { %v99_v63 = vsel %vm98_vm6, %v97_v58, %v96_v62  ;;  %2456 = vset.pattern.permute.xlu1 %v4362_v8  ;;  %v516_v56 = vsel %vm4357_vm4, %v515_v51, 0  ;;  %vm363_vm5 = vcmask 261120   ;;  %vm509_vm6 = vcmask 23552   ;;  %v447_v51 = vld [vmem:[%s4339_s9] sm:$0xf]  ;;  %s2562_s9 = smov 104  }
  0x1f   :  { %v4372_v30 = vmov 7   ;;  %v4364_v31 = vmov 5  }
  0x88   :  { %v116_v0 = vpop.permute.xlu0 %115 }
  0x89   :  { %v153_v1 = vsel %vm4347_vm7, %v99_v63, %v116_v0 }
  0x8c   :  { %v133_v2 = vpop.permute.xlu0 %132 }
  0x8d   :  { %v155_v3 = vsel %vm154_vm8, %v153_v1, %v133_v2  ;;  %v150_v4 = vpop.permute.xlu1 %149  ;;  %v378_v1 = vld [vmem:[%s4333_s8] sm:$0x7] }
  0x8e   :  { %v2755_v5 = vsel %vm156_vm9, %v155_v3, %v150_v4 }
  0x8f   :  { %159 = vrot.lane.b32.xlu1 %v2755_v5, %s2540_s21  ;;  %v305_v39 = vpack.c.bf16 %v2755_v5, %v2755_v5 }
  0x91   :  { %v316_v41 = vsel %vm4359_vm11, %v305_v39, 0  ;;  %v4366_v39 = vmov 11  }
 0x101   :  { %v160_v7 = vpop.permute.xlu1 %159 }
 0x102   :  { %v162_v9 = vsel %vm154_vm8, 0.0, %v160_v7 }
 0x103   :  { %164 = vrot.lane.b32.xlu1 %v162_v9, %s2545_s22  ;;  %167 = vrot.lane.b32.xlu0 %v162_v9, %s2546_s1 }
 0x107   :  { %176 = vperm.xlu0 %2455, %v173_v10   ;;  %v376_v10 = vld [vmem:[%s4334_s7] sm:$0x3] }
 0x175   :  { %v168_v11 = vpop.permute.xlu0 %167  ;;  %v165_v13 = vpop.permute.xlu1 %164 }
 0x176   :  { %v172_v12 = vpack.c.bf16 %v168_v11, %v168_v11  ;;  %v2239_v15 = vpack.c.bf16 %v165_v13, %v160_v7  ;;  %v501_v11 = vld [vmem:[%s4335_s11] sm:$0xf] }
 0x178   :  { %v184_v14 = vsel %vm4359_vm11, %v172_v12, 0 }
 0x179   :  { %2366 = vmatpush3.bf16.msra.mxu0 %v184_v14 }
 0x17a   :  { %2367 = vmatprep.subr.bf16.mxu0 %v4373_v6 }
 0x17d   :  { %2368 = vmatpush3.bf16.msk.msra.mxu0 %vm2238_vm14, %v2239_v15 }
 0x17e   :  { %2385 = vmatprep.subr.bf16.mxu0 %v4373_v6 }
 0x180   :  { %2370 = vmatmul.mubr.msk.bf16.vlgmr.msra.gmra.mxu0 %vm156_vm9, %v170_v16 }
 0x181   :  { %2387 = vmatprep.mubr.msk.bf16.mxu0 %vm4360_vm10, %v4373_v6 }
 0x182   :  { %v177_v17 = vpop.permute.xlu0 %176 }
 0x240   :  { %v220_v18 = vpop.f32.mrf.mxu0 }
 0x241   :  { %v221_v19 = vadd.f32 %v220_v18, %v177_v17 }
 0x242   :  { %v2371_v20 = vpop.f32.mrf.mxu0 }
 0x243   :  { %v226_v21 = vmax.f32 %v221_v19, 0.0 }
 0x244   :  { %v223_v22 = vpop.f32.mrf.mxu0 }
 0x245   :  { %228 = vrot.lane.b32.xlu1 %v226_v21, %s2540_s21 }
 0x246   :  { %v2372_v23 = vpop.f32.mrf.mxu0 }
 0x2b7   :  { %v229_v24 = vpop.permute.xlu1 %228 }
 0x2b8   :  { %v231_v25 = vsel %vm154_vm8, 0.0, %v229_v24  ;;  %v503_v24 = vld [vmem:[%s4336_s12] sm:$0xff] }
 0x2b9   :  { %v237_v26 = vrot.slane %v231_v25, 2  ;;  %v233_v27 = vrot.slane %v231_v25, 5 }
 0x2bb   :  { %238 = vrot.lane.b32.xlu0 %v237_v26, %s2546_s1  ;;  %234 = vrot.lane.b32.xlu1 %v233_v27, %s2545_s22 }
 0x2bf   :  { %309 = vperm.xlu0 %2455, %v306_v28   ;;  %250 = vperm.xlu1 %2456, %v247_v29   ;;  %v2860_v29 = vld [vmem:[%s4338_s13 + $0x18] sm:$0xff] }
 0x32d   :  { %v239_v32 = vpop.permute.xlu0 %238  ;;  %v235_v33 = vpop.permute.xlu1 %234 }
 0x32e   :  { %v242_v34 = vsel %vm241_vm15, %v231_v25, %v235_v33  ;;  %v449_v25 = vld [vmem:[%s4337_s10] sm:$0xff]  ;;  %v4370_v33 = vmov 8  }
 0x32f   :  { %v244_v35 = vsel %vm4358_vm0, %v242_v34, %v239_v32  ;;  %v2878_v34 = vld [vmem:[%s4338_s13] sm:$0xff] }
 0x330   :  { %v246_v37 = vpack.c.bf16 %v239_v32, %v244_v35  ;;  %v2869_v32 = vld [vmem:[%s4338_s13 + $0x10] sm:$0xff]  ;;  %v4368_v35 = vmov 9  }
 0x332   :  { %v261_v38 = vand.u32 %v2797_v36, %v246_v37  ;;  %v2889_v37 = vld [vmem:[%s4338_s13 + $0x8] sm:$0xff] }
 0x334   :  { %2374 = vmatpush3.bf16.msra.mxu1 %v261_v38  ;;  %v4356_v38 = vmov 10  }
 0x335   :  { %2379 = vmatprep.subr.bf16.mxu1 %v4373_v6 }
 0x337   :  { %2376 = vmatmul.mubr.msk.bf16.vlgmr.msra.gmra.mxu1 %vm253_vm2, %v245_v40  ;;  %v4354_v40 = vmov 3  }
 0x338   :  { %2380 = vmatpush3.bf16.msra.mxu1 %v316_v41  ;;  %2381 = vmatprep.mubr.msk.bf16.mxu1 %vm4360_vm10, %v4373_v6  ;;  %v4350_v41 = vmov 4  }
 0x339   :  { %2391 = vmatprep.subr.bf16.mxu1 %v4373_v6 }
 0x33a   :  { %v251_v44 = vpop.permute.xlu1 %250  ;;  %v310_v49 = vpop.permute.xlu0 %309 }
 0x33f   :  { %2382 = vmatmul.mubr.msk.bf16.vlgmr.msra.gmra.mxu1 %vm4347_vm7, %v304_v42  ;;  %v2559_v42 = vmov 6  }
 0x340   :  { %2393 = vmatprep.mubr.msk.bf16.mxu1 %vm4360_vm10, %v4373_v6 }
 0x3f7   :  { %v297_v43 = vpop.f32.mrf.mxu1 }
 0x3f8   :  { %v298_v47 = vadd.f32 %v297_v43, %v251_v44  ;;  %v4349_v43 = vmov 2   ;;  %v4352_v44 = vmov 1  }
 0x3f9   :  { %v2377_v45 = vpop.f32.mrf.mxu1 }
 0x3fa   :  { %v303_v52 = vmax.f32 %v298_v47, 0.0 }
 0x3fb   :  { %v300_v46 = vpop.f32.mrf.mxu1 }
 0x3fd   :  { %v2378_v48 = vpop.f32.mrf.mxu1 }
 0x3ff   :  { %v352_v50 = vpop.f32.mrf.mxu1 }
 0x400   :  { %v353_v53 = vadd.f32 %v352_v50, %v310_v49 }
 0x401   :  { %v2383_v54 = vpop.f32.mrf.mxu1 }
 0x402   :  { %v358_v55 = vadd.f32 %v353_v53, %v303_v52 }
 0x403   :  { %v355_v57 = vpop.f32.mrf.mxu1 }
 0x404   :  { %v502_v58 = vpack.c.bf16 %v358_v55, %v358_v55  ;;  %360 = vrot.lane.b32.xlu1 %v358_v55, %s2549_s3 }
 0x405   :  { %v2384_v59 = vpop.f32.mrf.mxu1 }
 0x406   :  { %v518_v60 = vand.u32 %v516_v56, %v502_v58 }
 0x476   :  { %v361_v61 = vpop.permute.xlu1 %360 }
 0x477   :  { %v364_v62 = vsel %vm363_vm5, 0.0, %v361_v61 }
 0x478   :  { %v370_v63 = vrot.slane %v364_v62, 2  ;;  %v366_v0 = vrot.slane %v364_v62, 5 }
 0x47a   :  { %371 = vrot.lane.b32.xlu1 %v370_v63, %s2550_s5  ;;  %367 = vrot.lane.b32.xlu0 %v366_v0, %s2546_s1 }
 0x47e   :  { %381 = vperm.xlu0 %2455, %v378_v1  }
 0x4ec   :  { %v372_v2 = vpop.permute.xlu1 %371  ;;  %v368_v3 = vpop.permute.xlu0 %367 }
 0x4ed   :  { %v374_v4 = vsel %vm241_vm15, %v364_v62, %v368_v3 }
 0x4ee   :  { %v375_v5 = vsel %vm4358_vm0, %v374_v4, %v372_v2 }
 0x4ef   :  { %v377_v7 = vpack.c.bf16 %v372_v2, %v375_v5 }
 0x4f1   :  { %v388_v9 = vand.u32 %v377_v7, %v2797_v36 }
 0x4f3   :  { %2386 = vmatpush3.bf16.msra.mxu0 %v388_v9 }
 0x4f4   :  { %2397 = vmatprep.subr.bf16.mxu0 %v4373_v6 }
 0x4f6   :  { %2388 = vmatmul.mubr.msk.bf16.vlgmr.msra.gmra.mxu0 %vm253_vm2, %v376_v10 }
 0x4f7   :  { %2398 = vmatpush3.bf16.msra.mxu0 %v518_v60  ;;  %2399 = vmatprep.mubr.msk.bf16.mxu0 %vm4360_vm10, %v4373_v6 }
 0x4f8   :  { %2403 = vmatprep.subr.bf16.mxu0 %v4373_v6 }
 0x4f9   :  { %v382_v12 = vpop.permute.xlu0 %381 }
 0x4fe   :  { %2400 = vmatmul.mubr.msk.bf16.vlgmr.msra.gmra.mxu0 %vm509_vm6, %v501_v11 }
 0x4ff   :  { %2407 = vmatprep.mubr.msk.bf16.mxu0 %vm4360_vm10, %v4373_v6 }
 0x5b6   :  { %v424_v13 = vpop.f32.mrf.mxu0 }
 0x5b7   :  { %v425_v14 = vadd.f32 %v424_v13, %v382_v12 }
 0x5b8   :  { %v2389_v15 = vpop.f32.mrf.mxu0 }
 0x5b9   :  { %v430_v16 = vmax.f32 %v425_v14, 0.0 }
 0x5ba   :  { %v427_v17 = vpop.f32.mrf.mxu0 }
 0x5bb   :  { %432 = vrot.lane.b32.xlu1 %v430_v16, %s2549_s3 }
 0x5bc   :  { %v2390_v18 = vpop.f32.mrf.mxu0 }
 0x5be   :  { %v2847_v23 = vpop.f32.mrf.mxu0 }
 0x5c0   :  { %v2401_v26 = vpop.f32.mrf.mxu0 }
 0x5c2   :  { %v557_v27 = vpop.f32.mrf.mxu0 }
 0x5c4   :  { %v2402_v28 = vpop.f32.mrf.mxu0 }
 0x62d   :  { %v433_v19 = vpop.permute.xlu1 %432 }
 0x62e   :  { %v2843_v20 = vsel %vm363_vm5, 0.0, %v433_v19 }
 0x62f   :  { %v441_v21 = vrot.slane %v2843_v20, 2  ;;  %v437_v22 = vrot.slane %v2843_v20, 5 }
 0x631   :  { %442 = vrot.lane.b32.xlu1 %v441_v21, %s2550_s5  ;;  %438 = vrot.lane.b32.xlu0 %v437_v22, %s2546_s1 }
 0x635   :  { %506 = vperm.xlu1 %2456, %v503_v24   ;;  %452 = vperm.xlu0 %2455, %v449_v25  }
 0x639   :  { %2457 = vset.pattern.permute.xlu1 %v4372_v30  ;;  %2465 = vset.pattern.permute.xlu0 %v4364_v31 }
 0x63a   :  { %732 = vperm.xlu1 %2457, %v2860_v29   ;;  %692 = vperm.xlu0 %2465, %v2860_v29  }
 0x63e   :  { %2458 = vset.pattern.permute.xlu1 %v4370_v33  ;;  %2466 = vset.pattern.permute.xlu0 %v4372_v30 }
 0x63f   :  { %748 = vperm.xlu1 %2458, %v2869_v32   ;;  %728 = vperm.xlu0 %2466, %v2869_v32  }
 0x643   :  { %2459 = vset.pattern.permute.xlu1 %v4368_v35  ;;  %720 = vperm.xlu0 %2466, %v2878_v34  }
 0x644   :  { %768 = vperm.xlu1 %2459, %v2869_v32  }
 0x647   :  { %2468 = vset.pattern.permute.xlu0 %v4370_v33 }
 0x648   :  { %772 = vperm.xlu1 %2459, %v2860_v29   ;;  %752 = vperm.xlu0 %2468, %v2860_v29  }
 0x64c   :  { %2460 = vset.pattern.permute.xlu1 %v4356_v38  ;;  %744 = vperm.xlu0 %2468, %v2889_v37  }
 0x64d   :  { %792 = vperm.xlu1 %2460, %v2860_v29  }
 0x650   :  { %2471 = vset.pattern.permute.xlu0 %v4356_v38 }
 0x651   :  { %2461 = vset.pattern.permute.xlu1 %v4366_v39  ;;  %788 = vperm.xlu0 %2471, %v2869_v32  }
 0x652   :  { %808 = vperm.xlu1 %2461, %v2869_v32  }
 0x655   :  { %780 = vperm.xlu0 %2471, %v2878_v34  }
 0x656   :  { %2462 = vset.pattern.permute.xlu1 %v4354_v40 }
 0x657   :  { %648 = vperm.xlu1 %2462, %v2869_v32  }
 0x659   :  { %2473 = vset.pattern.permute.xlu0 %v4366_v39 }
 0x65a   :  { %812 = vperm.xlu0 %2473, %v2860_v29  }
 0x65b   :  { %652 = vperm.xlu1 %2462, %v2860_v29  }
 0x65e   :  { %804 = vperm.xlu0 %2473, %v2889_v37  }
 0x65f   :  { %2463 = vset.pattern.permute.xlu1 %v4350_v41 }
 0x660   :  { %672 = vperm.xlu1 %2463, %v2860_v29  }
 0x662   :  { %2476 = vset.pattern.permute.xlu0 %v4354_v40 }
 0x663   :  { %640 = vperm.xlu0 %2476, %v2878_v34  }
 0x664   :  { %2464 = vset.pattern.permute.xlu1 %v4364_v31 }
 0x665   :  { %688 = vperm.xlu1 %2464, %v2869_v32  }
 0x667   :  { %2477 = vset.pattern.permute.xlu0 %v4350_v41 }
 0x668   :  { %668 = vperm.xlu0 %2477, %v2869_v32  }
 0x669   :  { %2467 = vset.pattern.permute.xlu1 %v2559_v42 }
 0x66a   :  { %708 = vperm.xlu1 %2467, %v2869_v32  }
 0x66c   :  { %664 = vperm.xlu0 %2477, %v2889_v37  }
 0x66e   :  { %712 = vperm.xlu1 %2467, %v2860_v29  }
 0x670   :  { %2481 = vset.pattern.permute.xlu0 %v2559_v42 }
 0x671   :  { %700 = vperm.xlu0 %2481, %v2878_v34  }
 0x672   :  { %2469 = vset.pattern.permute.xlu1 %v4372_v30 }
 0x673   :  { %724 = vperm.xlu1 %2469, %v2889_v37  }
 0x675   :  { %2483 = vset.pattern.permute.xlu0 %v4349_v43 }
 0x676   :  { %628 = vperm.xlu0 %2483, %v2869_v32  }
 0x677   :  { %2470 = vset.pattern.permute.xlu1 %v4370_v33 }
 0x678   :  { %740 = vperm.xlu1 %2470, %v2878_v34  }
 0x67a   :  { %624 = vperm.xlu0 %2483, %v2889_v37  }
 0x67c   :  { %2472 = vset.pattern.permute.xlu1 %v4368_v35 }
 0x67d   :  { %760 = vperm.xlu1 %2472, %v2878_v34  }
 0x67e   :  { %2486 = vset.pattern.permute.xlu0 %v4352_v44 }
 0x67f   :  { %612 = vperm.xlu0 %2486, %v2860_v29  }
 0x681   :  { %764 = vperm.xlu1 %2472, %v2889_v37  }
 0x683   :  { %2487 = vset.pattern.permute.xlu0 %v4362_v8 }
 0x684   :  { %587 = vperm.xlu0 %2487, %v2869_v32  }
 0x685   :  { %2474 = vset.pattern.permute.xlu1 %v4356_v38 }
 0x686   :  { %784 = vperm.xlu1 %2474, %v2889_v37  }
 0x688   :  { %582 = vperm.xlu0 %2487, %v2889_v37  }
 0x68a   :  { %2475 = vset.pattern.permute.xlu1 %v4366_v39 }
 0x68b   :  { %800 = vperm.xlu1 %2475, %v2878_v34  }
 0x68c   :  { %2490 = vset.pattern.permute.xlu0 %v2559_v42 }
 0x68f   :  { %2478 = vset.pattern.permute.xlu1 %v4354_v40 }
 0x690   :  { %644 = vperm.xlu1 %2478, %v2889_v37  }
 0x694   :  { %2479 = vset.pattern.permute.xlu1 %v4350_v41 }
 0x695   :  { %660 = vperm.xlu1 %2479, %v2878_v34  }
 0x699   :  { %2480 = vset.pattern.permute.xlu1 %v4364_v31 }
 0x69a   :  { %680 = vperm.xlu1 %2480, %v2878_v34  }
 0x69e   :  { %684 = vperm.xlu1 %2480, %v2889_v37  }
 0x6a2   :  { %2482 = vset.pattern.permute.xlu1 %v2559_v42 }
 0x6a3   :  { %v443_v45 = vpop.permute.xlu1 %442  ;;  %v439_v46 = vpop.permute.xlu0 %438  ;;  %704 = vperm.xlu1 %2482, %v2889_v37  }
 0x6a4   :  { %v445_v47 = vsel %vm241_vm15, %v2843_v20, %v439_v46 }
 0x6a5   :  { %v446_v48 = vsel %vm4358_vm0, %v445_v47, %v443_v45 }
 0x6a6   :  { %v448_v49 = vpack.c.bf16 %v443_v45, %v446_v48 }
 0x6a7   :  { %2484 = vset.pattern.permute.xlu1 %v4349_v43 }
 0x6a8   :  { %v459_v50 = vand.u32 %v448_v49, %v2797_v36  ;;  %632 = vperm.xlu1 %2484, %v2860_v29  }
 0x6aa   :  { %2392 = vmatpush3.bf16.msra.mxu1 %v459_v50 }
 0x6ac   :  { %620 = vperm.xlu1 %2484, %v2878_v34  }
 0x6ad   :  { %2394 = vmatmul.mubr.msk.bf16.vlgmr.msra.gmra.mxu1 %vm253_vm2, %v447_v51 }
 0x6b0   :  { %2485 = vset.pattern.permute.xlu1 %v4352_v44  ;;  %v507_v52 = vpop.permute.xlu1 %506  ;;  %v453_v59 = vpop.permute.xlu0 %452 }
 0x6b1   :  { %v555_v22 = vadd.f32 %v2847_v23, %v507_v52 }
 0x6b5   :  { %v2960_v53 = vpop.permute.xlu1 %732  ;;  %v2976_v61 = vpop.permute.xlu0 %692 }
 0x6ba   :  { %v2962_v54 = vpop.permute.xlu1 %748  ;;  %v2980_v63 = vpop.permute.xlu0 %728 }
 0x6be   :  { %v721_v1 = vpop.permute.xlu0 %720 }
 0x6bf   :  { %v2964_v55 = vpop.permute.xlu1 %768 }
 0x6c3   :  { %v2966_v36 = vpop.permute.xlu1 %772  ;;  %v2986_v3 = vpop.permute.xlu0 %752 }
 0x6c7   :  { %v2990_v5 = vpop.permute.xlu0 %744 }
 0x6c8   :  { %v2968_v56 = vpop.permute.xlu1 %792 }
 0x6cc   :  { %v2994_v9 = vpop.permute.xlu0 %788 }
 0x6cd   :  { %v2970_v57 = vpop.permute.xlu1 %808 }
 0x6d0   :  { %v2996_v11 = vpop.permute.xlu0 %780 }
 0x6d2   :  { %v2972_v58 = vpop.permute.xlu1 %648 }
 0x6d5   :  { %v3000_v13 = vpop.permute.xlu0 %812 }
 0x6d6   :  { %v2974_v60 = vpop.permute.xlu1 %652 }
 0x6d9   :  { %v3004_v15 = vpop.permute.xlu0 %804 }
 0x6da   :  { %4418 = vst [vmem:[#allocation2_spill] sm:$0xff] %v3004_v15 }
 0x6db   :  { %v2978_v62 = vpop.permute.xlu1 %672 }
 0x6de   :  { %v3008_v17 = vpop.permute.xlu0 %640 }
 0x6e0   :  { %v2982_v0 = vpop.permute.xlu1 %688 }
 0x6e3   :  { %v3012_v19 = vpop.permute.xlu0 %668 }
 0x6e5   :  { %v2984_v2 = vpop.permute.xlu1 %708 }
 0x6e7   :  { %v3017_v25 = vpop.permute.xlu0 %664 }
 0x6e8   :  { %4420 = vst [vmem:[#allocation4_spill] sm:$0xff] %v3017_v25 }
 0x6e9   :  { %v2988_v4 = vpop.permute.xlu1 %712 }
 0x6ec   :  { %v701_v49 = vpop.permute.xlu0 %700 }
 0x6ee   :  { %v2992_v7 = vpop.permute.xlu1 %724 }
 0x6f3   :  { %v741_v10 = vpop.permute.xlu1 %740 }
 0x6f8   :  { %v2998_v12 = vpop.permute.xlu1 %760 }
 0x6fc   :  { %v3002_v14 = vpop.permute.xlu1 %764 }
 0x701   :  { %v3006_v16 = vpop.permute.xlu1 %784 }
 0x702   :  { %4419 = vst [vmem:[#allocation3_spill] sm:$0xff] %v3006_v16 }
 0x706   :  { %v3010_v18 = vpop.permute.xlu1 %800 }
 0x70b   :  { %v3014_v20 = vpop.permute.xlu1 %644 }
 0x710   :  { %v661_v28 = vpop.permute.xlu1 %660 }
 0x715   :  { %v681_v23 = vpop.permute.xlu1 %680 }
 0x76d   :  { %v495_v21 = vpop.f32.mrf.mxu1 }
 0x76e   :  { %v496_v24 = vadd.f32 %v495_v21, %v453_v59 }
 0x76f   :  { %v2395_v26 = vpop.f32.mrf.mxu1 }
 0x770   :  { %v3019_v27 = vadd.f32 %v555_v22, %v496_v24 }
 0x771   :  { %v498_v45 = vpop.f32.mrf.mxu1 }
 0x772   :  { %565 = vrot.lane.b32.xlu1 %v3019_v27, %s2546_s1  ;;  %v3024_v47 = vsub.f32 %v3019_v27, %v721_v1  ;;  %v3027_v48 = vsub.f32 %v3019_v27, %v741_v10  ;;  %v3031_v50 = vsub.f32 %v3019_v27, %v661_v28  ;;  %v3034_v51 = vsub.f32 %v3019_v27, %v701_v49 }
 0x773   :  { %v2396_v46 = vpop.f32.mrf.mxu1  ;;  %v3039_v52 = vsub.f32 %v3019_v27, %v681_v23 }
 0x774   :  { %4421 = vst [vmem:[#allocation5_spill] sm:$0xff] %v3031_v50  ;;  %vm959_vm8 = vcmp.ge.f32.partialorder %v3024_v47, 0.0  ;;  %vm963_vm9 = vcmp.lt.f32.partialorder %v3027_v48, 0.0  ;;  %vm899_vm12 = vcmp.ge.f32.partialorder %v3031_v50, 0.0  ;;  %vm923_vm3 = vcmp.lt.f32.partialorder %v3034_v51, 0.0 }
 0x775   :  { %vm967_vm13 = vmand %vm959_vm8, %vm963_vm9  ;;  %vm903_vm14 = vcmp.lt.f32.partialorder %v3039_v52, 0.0  ;;  %vm919_vm2 = vcmp.ge.f32.partialorder %v3039_v52, 0.0  ;;  %vm939_vm6 = vcmp.ge.f32.partialorder %v3034_v51, 0.0  ;;  %vm943_vm1 = vcmp.lt.f32.partialorder %v3024_v47, 0.0 }
 0x776   :  { %568 = vrot.lane.b32.xlu1 %v3019_v27, %s2562_s9  ;;  %vm907_vm15 = vmand %vm899_vm12, %vm903_vm14  ;;  %v2275_v10 = vsel %vm967_vm13, 1.0, %v4373_v6 }
 0x777   :  { %v3049_v59 = vsel %vm907_vm15, 1.0, %v4373_v6  ;;  %vm927_vm7 = vmand %vm919_vm2, %vm923_vm3  ;;  %v1139_v46 = vmul.f32 %v2275_v10, %v3027_v48  ;;  %vm883_vm3 = vcmp.lt.f32.partialorder %v3031_v50, 0.0 }
 0x778   :  { %v2267_v1 = vsel %vm927_vm7, 1.0, %v4373_v6  ;;  %vm947_vm8 = vmand %vm939_vm6, %vm943_vm1  ;;  %v1103_v22 = vmul.f32 %v3049_v59, %v3031_v50  ;;  %vm979_vm7 = vcmp.ge.f32.partialorder %v3027_v48, 0.0  ;;  %v1091_v39 = vmul.f32 %v3049_v59, %v3039_v52 }
 0x779   :  { %v2271_v21 = vsel %vm947_vm8, 1.0, %v4373_v6  ;;  %v1107_v24 = vmul.f32 %v2267_v1, %v3034_v51  ;;  %v1119_v26 = vmul.f32 %v2267_v1, %v3039_v52  ;;  %v1471_v59 = vsub.f32 0.0, %v3019_v27 }
 0x77a   :  { %562 = vrot.lane.b32.xlu1 %v3019_v27, %s2545_s22  ;;  %v1123_v28 = vmul.f32 %v2271_v21, %v3024_v47  ;;  %v1135_v45 = vmul.f32 %v2271_v21, %v3034_v51 }
 0x77c   :  { %v1127_v49 = vsub.f32 %v1119_v26, %v1123_v28  ;;  %v1143_v43 = vsub.f32 %v1135_v45, %v1139_v46  ;;  %v3101_v28 = vsub.f32 %v3019_v27, %v2998_v12  ;;  %v3105_v45 = vsub.f32 %v3019_v27, %v2996_v11 }
 0x77e   :  { %608 = vperm.xlu1 %2485, %v2869_v32   ;;  %v1111_v32 = vsub.f32 %v1103_v22, %v1107_v24  ;;  %v1131_v41 = vmul.f32 2.5, %v1127_v49  ;;  %v3069_v1 = vmul.f32 2.5, %v1143_v43  ;;  %vm983_vm1 = vcmp.lt.f32.partialorder %v3101_v28, 0.0 }
 0x77f   :  { %vm999_vm9 = vcmp.ge.f32.partialorder %v3101_v28, 0.0  ;;  %vm1003_vm12 = vcmp.lt.f32.partialorder %v3105_v45, 0.0  ;;  %vm1019_vm13 = vcmp.ge.f32.partialorder %v3105_v45, 0.0  ;;  %vm987_vm15 = vmand %vm979_vm7, %vm983_vm1 }
 0x780   :  { %v3064_v23 = vmul.f32 2.5, %v1111_v32  ;;  %v1267_v40 = vmul.f32 %v1131_v41, %v3024_v47  ;;  %v1279_v21 = vmul.f32 %v1131_v41, %v3039_v52  ;;  %v1283_v22 = vmul.f32 %v3069_v1, %v3027_v48  ;;  %vm1007_vm4 = vmand %vm999_vm9, %vm1003_vm12 }
 0x781   :  { %v3109_v32 = vsub.f32 %v3019_v27, %v3010_v18  ;;  %v2279_v11 = vsel %vm987_vm15, 1.0, %v4373_v6  ;;  %v2283_v12 = vsel %vm1007_vm4, 1.0, %v4373_v6 }
 0x782   :  { %600 = vperm.xlu1 %2485, %v2878_v34   ;;  %v1263_v44 = vmul.f32 %v3064_v23, %v3031_v50  ;;  %v1183_v41 = vmul.f32 %v2283_v12, %v3101_v28 }
 0x783   :  { %vm1023_vm14 = vcmp.lt.f32.partialorder %v3109_v32, 0.0 }
 0x784   :  { %v1271_v38 = vsub.f32 %v1263_v44, %v1267_v40  ;;  %vm1027_vm0 = vmand %vm1019_vm13, %vm1023_vm14 }
 0x786   :  { %604 = vperm.xlu1 %2485, %v2889_v37   ;;  %v3077_v24 = vmul.f32 1.25, %v1271_v38  ;;  %v1287_v37 = vsub.f32 %v1279_v21, %v1283_v22  ;;  %v1151_v21 = vmul.f32 %v2275_v10, %v3024_v47  ;;  %v1155_v22 = vmul.f32 %v2279_v11, %v3101_v28 }
 0x788   :  { %v3079_v26 = vmul.f32 1.25, %v1287_v37  ;;  %v3083_v43 = vmul.f32 %v3077_v24, %v3031_v50  ;;  %v1167_v37 = vmul.f32 %v2279_v11, %v3027_v48  ;;  %v1159_v10 = vsub.f32 %v1151_v21, %v1155_v22 }
 0x78a   :  { %2488 = vset.pattern.permute.xlu1 %v4362_v8  ;;  %4422 = vst [vmem:[#allocation6_spill] sm:$0xff] %v3083_v43  ;;  %v3088_v40 = vmul.f32 %v3079_v26, %v3027_v48  ;;  %v1163_v43 = vmul.f32 2.5, %v1159_v10 }
 0x78b   :  { %592 = vperm.xlu1 %2488, %v2860_v29   ;;  %v3093_v29 = vpop.permute.xlu1 %684 }
 0x78c   :  { %4423 = vst [vmem:[#allocation7_spill] sm:$0xff] %v3088_v40  ;;  %4424 = vst [vmem:[#allocation8_spill] sm:$0xff] %v3093_v29 }
 0x78f   :  { %577 = vperm.xlu1 %2488, %v2878_v34   ;;  %v3095_v38 = vpop.permute.xlu1 %704 }
 0x790   :  { %4425 = vst [vmem:[#allocation9_spill] sm:$0xff] %v3095_v38 }
 0x793   :  { %2489 = vset.pattern.permute.xlu1 %v2559_v42  ;;  %v3097_v44 = vpop.permute.xlu1 %632  ;;  %v3113_v42 = vsub.f32 %v3019_v27, %v3008_v17  ;;  %v2287_v17 = vsel %vm1027_vm0, 1.0, %v4373_v6 }
 0x794   :  { %v1187_v8 = vmul.f32 %v2287_v17, %v3109_v32  ;;  %v1311_v17 = vmul.f32 %v1163_v43, %v3024_v47 }
 0x795   :  { %vm879_vm2 = vcmp.ge.f32.partialorder %v3113_v42, 0.0  ;;  %vm863_vm8 = vcmp.lt.f32.partialorder %v3113_v42, 0.0 }
 0x796   :  { %vm887_vm11 = vmand %vm879_vm2, %vm883_vm3 }
 0x797   :  { %v621_v34 = vpop.permute.xlu1 %620  ;;  %v2259_v18 = vsel %vm887_vm11, 1.0, %v4373_v6 }
 0x798   :  { %v3116_v46 = vsub.f32 %v3019_v27, %v621_v34  ;;  %v1171_v34 = vmul.f32 %v2283_v12, %v3105_v45  ;;  %v1087_v31 = vmul.f32 %v2259_v18, %v3113_v42  ;;  %v1075_v33 = vmul.f32 %v2259_v18, %v3031_v50 }
 0x79a   :  { %vm859_vm6 = vcmp.ge.f32.partialorder %v3116_v46, 0.0  ;;  %v1175_v30 = vsub.f32 %v1167_v37, %v1171_v34  ;;  %v1095_v40 = vsub.f32 %v1087_v31, %v1091_v39  ;;  %v629_v31 = vpop.permute.xlu0 %628  ;;  %v1475_v39 = vmul.f32 1.442695, %v1471_v59 }
 0x79b   :  { %vm867_vm10 = vmand %vm859_vm6, %vm863_vm8 }
 0x79c   :  { %v2255_v49 = vsel %vm867_vm10, 1.0, %v4373_v6  ;;  %v1191_v6 = vsub.f32 %v1183_v41, %v1187_v8  ;;  %v1179_v38 = vmul.f32 2.5, %v1175_v30  ;;  %v1099_v12 = vmul.f32 2.5, %v1095_v40 }
 0x79d   :  { %v1071_v35 = vmul.f32 %v2255_v49, %v3116_v46  ;;  %v1251_v8 = vmul.f32 %v3064_v23, %v3034_v51  ;;  %v1299_v30 = vmul.f32 %v1163_v43, %v3101_v28  ;;  %2515 = vpow2.f32 %v1475_v39 }
 0x79e   :  { %v1195_v29 = vmul.f32 2.5, %v1191_v6  ;;  %v1315_v15 = vmul.f32 %v1179_v38, %v3105_v45  ;;  %v1327_v16 = vmul.f32 %v1179_v38, %v3027_v48  ;;  %v1247_v21 = vmul.f32 %v1099_v12, %v3113_v42  ;;  %v3157_v22 = vpop.permute.xlu0 %624 }
 0x79f   :  { %v1079_v11 = vsub.f32 %v1071_v35, %v1075_v33  ;;  %v1295_v6 = vmul.f32 %v3069_v1, %v3034_v51  ;;  %v1235_v35 = vmul.f32 %v1099_v12, %v3039_v52 }
 0x7a0   :  { %v1331_v18 = vmul.f32 %v1195_v29, %v3109_v32  ;;  %v1319_v40 = vsub.f32 %v1311_v17, %v1315_v15  ;;  %v1255_v41 = vsub.f32 %v1247_v21, %v1251_v8  ;;  %v1395_v15 = vmul.f32 %v3077_v24, %v3024_v47 }
 0x7a1   :  { %v1083_v25 = vmul.f32 2.5, %v1079_v11  ;;  %v1303_v29 = vsub.f32 %v1295_v6, %v1299_v30  ;;  %v1423_v8 = vmul.f32 %v3079_v26, %v3039_v52  ;;  %v3174_v24 = vmul.f32 %v2255_v49, %v3113_v42 }
 0x7a2   :  { %v1335_v48 = vsub.f32 %v1327_v16, %v1331_v18  ;;  %v1323_v23 = vmul.f32 1.25, %v1319_v40  ;;  %v1259_v34 = vmul.f32 1.25, %v1255_v41  ;;  %v3166_v59 = vpop.permute.xlu0 %612 }
 0x7a3   :  { %v1231_v33 = vmul.f32 %v1083_v25, %v3116_v46  ;;  %v1307_v1 = vmul.f32 1.25, %v1303_v29  ;;  %v3183_v26 = vmul.f32 %v1083_v25, %v3031_v50 }
 0x7a4   :  { %v1339_v37 = vmul.f32 1.25, %v1335_v48  ;;  %v1455_v43 = vmul.f32 %v1323_v23, %v3024_v47  ;;  %v1391_v12 = vmul.f32 %v1259_v34, %v3113_v42  ;;  %v1443_v17 = vmul.f32 %v1323_v23, %v3105_v45 }
 0x7a5   :  { %v1239_v38 = vsub.f32 %v1231_v33, %v1235_v35  ;;  %v1439_v16 = vmul.f32 %v1307_v1, %v3034_v51  ;;  %v1379_v21 = vmul.f32 %v1259_v34, %v3034_v51  ;;  %4428 = vst [vmem:[#allocation12_spill] sm:$0xff] %v3183_v26 }
 0x7a6   :  { %v1459_v11 = vmul.f32 %v1339_v37, %v3109_v32  ;;  %v1427_v32 = vmul.f32 %v1307_v1, %v3101_v28  ;;  %v1399_v30 = vsub.f32 %v1391_v12, %v1395_v15  ;;  %v588_v39 = vpop.permute.xlu0 %587 }
 0x7a7   :  { %v1243_v10 = vmul.f32 1.25, %v1239_v38  ;;  %v1447_v33 = vsub.f32 %v1439_v16, %v1443_v17 }
 0x7a8   :  { %v1463_v6 = vsub.f32 %v1455_v43, %v1459_v11  ;;  %v1431_v47 = vsub.f32 %v1423_v8, %v1427_v32  ;;  %v3180_v51 = vmul.f32 0.8333333, %v1399_v30 }
 0x7a9   :  { %v1375_v18 = vmul.f32 %v1243_v10, %v3116_v46  ;;  %v3186_v28 = vmul.f32 %v1243_v10, %v3039_v52  ;;  %v3199_v38 = vmul.f32 0.8333333, %v1447_v33 }
 0x7aa   :  { %v2516_v45 = vpop.eup %2515  ;;  %v3178_v48 = vmul.f32 0.8333333, %v1463_v6  ;;  %4427 = vst [vmem:[#allocation11_spill] sm:$0xff] %v3180_v51  ;;  %v3211_v23 = vmul.f32 0.8333333, %v1431_v47 }
 0x7ab   :  { %v1383_v35 = vsub.f32 %v1375_v18, %v1379_v21  ;;  %4429 = vst [vmem:[#allocation13_spill] sm:$0xff] %v3186_v28  ;;  %4432 = vst [vmem:[#allocation16_spill] sm:$0xff] %v3199_v38 }
 0x7ac   :  { %4434 = vst [vmem:[#allocation18_spill] sm:$0xff] %v3211_v23 }
 0x7e4   :  { %v3176_v40 = vpop.permute.xlu1 %565 }
 0x7e5   :  { %4426 = vst [vmem:[#allocation10_spill] sm:$0xff] %v3176_v40  ;;  %v3189_v41 = vsub.f32 %v3176_v40, %v629_v31  ;;  %v3193_v49 = vsub.f32 %v3176_v40, %v2972_v58  ;;  %v3197_v29 = vsub.f32 %v3176_v40, %v2980_v63  ;;  %v3203_v25 = vsub.f32 %v3176_v40, %v2962_v54 }
 0x7e6   :  { %v3207_v52 = vsub.f32 %v3176_v40, %v2964_v55  ;;  %v3209_v31 = vmul.f32 0.8333333, %v1383_v35  ;;  %v3214_v58 = vsub.f32 %v3176_v40, %v588_v39  ;;  %v3218_v63 = vadd.f32 1.0, %v2516_v45 }
 0x7e7   :  { %4430 = vst [vmem:[#allocation14_spill] sm:$0xff] %v3189_v41  ;;  %4431 = vst [vmem:[#allocation15_spill] sm:$0xff] %v3193_v49  ;;  %vm861_vm10 = vcmp.ge.f32.partialorder %v3189_v41, 0.0  ;;  %vm865_vm11 = vcmp.lt.f32.partialorder %v3193_v49, 0.0  ;;  %vm961_vm4 = vcmp.ge.f32.partialorder %v3197_v29, 0.0  ;;  %vm965_vm7 = vcmp.lt.f32.partialorder %v3203_v25, 0.0 }
 0x7e8   :  { %4433 = vst [vmem:[#allocation17_spill] sm:$0xff] %v3209_v31  ;;  %4435 = vst [vmem:[#allocation19_spill] sm:$0xff] %v3214_v58  ;;  %v3220_v37 = vpop.permute.xlu1 %568  ;;  %vm981_vm1 = vcmp.ge.f32.partialorder %v3203_v25, 0.0  ;;  %vm985_vm9 = vcmp.lt.f32.partialorder %v3207_v52, 0.0  ;;  %v4438_v54 = vmov 0.0   ;;  %v3244_v11 = vsub.f32 %v3176_v40, %v2994_v9 }
 0x7e9   :  { %4436 = vst [vmem:[#allocation20_spill] sm:$0xff] %v3218_v63  ;;  %4437 = vst [vmem:[#allocation21_spill] sm:$0xff] %v3220_v37  ;;  %v3229_v34 = vsub.f32 %v3220_v37, %v2960_v53  ;;  %v3233_v1 = vsub.f32 %v3220_v37, %v2986_v3  ;;  %v3237_v10 = vsub.f32 %v3220_v37, %v2966_v36  ;;  %v583_v36 = vpop.permute.xlu0 %582  ;;  %vm1001_vm8 = vcmp.ge.f32.partialorder %v3207_v52, 0.0 }
 0x7ea   :  { %vm869_vm0 = vmand %vm861_vm10, %vm865_vm11  ;;  %v3248_v53 = vsub.f32 %v3220_v37, %v2968_v56  ;;  %v3252_v3 = vsub.f32 %v3176_v40, %v2970_v57  ;;  %v3268_v57 = vsub.f32 %v3220_v37, %v3000_v13 }
 0x7eb   :  { %v2257_v55 = vsel %vm869_vm0, 1.0, %v4438_v54  ;;  %vm969_vm12 = vmand %vm961_vm4, %vm965_vm7  ;;  %vm962_vm14 = vcmp.ge.f32.partialorder %v3229_v34, 0.0  ;;  %vm966_vm15 = vcmp.lt.f32.partialorder %v3233_v1, 0.0  ;;  %vm982_vm2 = vcmp.ge.f32.partialorder %v3233_v1, 0.0 }
 0x7ec   :  { %v3240_v43 = vmul.f32 %v2257_v55, %v3193_v49  ;;  %vm3254_vm13 = vmand %vm981_vm1, %vm985_vm9  ;;  %v3259_v15 = vmul.f32 %v2257_v55, %v3189_v41  ;;  %v3264_v56 = vpop.permute.xlu1 %562  ;;  %v3271_v9 = vsel %vm969_vm12, 1.0, %v4438_v54  ;;  %vm986_vm6 = vcmp.lt.f32.partialorder %v3237_v10, 0.0 }
 0x7ed   :  { %4442 = vst [vmem:[#allocation23_spill] sm:$0xff] %v3264_v56  ;;  %vm970_vm3 = vmand %vm962_vm14, %vm966_vm15  ;;  %v3277_v16 = vsub.f32 %v3264_v56, %v3157_v22  ;;  %v3281_v17 = vsub.f32 %v3264_v56, %v3014_v20  ;;  %v2281_v13 = vsel %vm3254_vm13, 1.0, %v4438_v54  ;;  %vm1002_vm11 = vcmp.ge.f32.partialorder %v3237_v10, 0.0 }
 0x7ee   :  { %4441 = vst [vmem:[#allocation22_spill] sm:$0xff] %v3259_v15  ;;  %vm990_vm10 = vmand %vm982_vm2, %vm986_vm6  ;;  %v3288_v18 = vsub.f32 %v3264_v56, %v583_v36  ;;  %v3291_v21 = vsel %vm970_vm3, 1.0, %v4438_v54  ;;  %vm1005_vm0 = vcmp.lt.f32.partialorder %v3244_v11, 0.0  ;;  %vm1006_vm4 = vcmp.lt.f32.partialorder %v3248_v53, 0.0 }
 0x7ef   :  { %4443 = vst [vmem:[#allocation24_spill] sm:$0xff] %v3277_v16  ;;  %vm860_vm7 = vcmp.ge.f32.partialorder %v3277_v16, 0.0  ;;  %vm864_vm1 = vcmp.lt.f32.partialorder %v3281_v17, 0.0  ;;  %v2282_v20 = vsel %vm990_vm10, 1.0, %v4438_v54  ;;  %vm1009_vm9 = vmand %vm1001_vm8, %vm1005_vm0  ;;  %vm1021_vm12 = vcmp.ge.f32.partialorder %v3244_v11, 0.0 }
 0x7f0   :  { %4444 = vst [vmem:[#allocation25_spill] sm:$0xff] %v3288_v18  ;;  %vm868_vm13 = vmand %vm860_vm7, %vm864_vm1  ;;  %v2285_v22 = vsel %vm1009_vm9, 1.0, %v4438_v54  ;;  %vm1022_vm14 = vcmp.ge.f32.partialorder %v3248_v53, 0.0  ;;  %vm1025_vm15 = vcmp.lt.f32.partialorder %v3252_v3, 0.0  ;;  %vm1026_vm2 = vcmp.lt.f32.partialorder %v3268_v57, 0.0 }
 0x7f1   :  { %v2256_v8 = vsel %vm868_vm13, 1.0, %v4438_v54  ;;  %vm1010_vm3 = vmand %vm1002_vm11, %vm1006_vm4  ;;  %v1153_v32 = vmul.f32 %v3271_v9, %v3197_v29  ;;  %v1154_v6 = vmul.f32 %v3291_v21, %v3229_v34  ;;  %v1157_v30 = vmul.f32 %v2281_v13, %v3207_v52 }
 0x7f2   :  { %v3312_v33 = vmul.f32 %v2256_v8, %v3281_v17  ;;  %v3315_v35 = vmul.f32 %v2256_v8, %v3277_v16  ;;  %v2286_v47 = vsel %vm1010_vm3, 1.0, %v4438_v54  ;;  %vm1029_vm6 = vmand %vm1021_vm12, %vm1025_vm15  ;;  %v1158_v45 = vmul.f32 %v2282_v20, %v3237_v10 }
 0x7f3   :  { %vm1030_vm8 = vmand %vm1022_vm14, %vm1026_vm2  ;;  %v2289_v39 = vsel %vm1029_vm6, 1.0, %v4438_v54  ;;  %v1161_v55 = vsub.f32 %v1153_v32, %v1157_v30  ;;  %v1169_v12 = vmul.f32 %v2281_v13, %v3203_v25  ;;  %v1170_v36 = vmul.f32 %v2282_v20, %v3233_v1 }
 0x7f4   :  { %4445 = vst [vmem:[#allocation26_spill] sm:$0xff] %v3315_v35  ;;  %vm821_vm10 = vcmp.ge.f32.partialorder %v3214_v58, 0.0  ;;  %v2290_v50 = vsel %vm1030_vm8, 1.0, %v4438_v54  ;;  %v1162_v63 = vsub.f32 %v1154_v6, %v1158_v45  ;;  %v1173_v8 = vmul.f32 %v2285_v22, %v3244_v11 }
 0x7f5   :  { %v1174_v23 = vmul.f32 %v2286_v47, %v3248_v53  ;;  %vm845_vm11 = vcmp.lt.f32.partialorder %v3189_v41, 0.0  ;;  %v3327_v28 = vmul.f32 2.5, %v1161_v55  ;;  %v1185_v26 = vmul.f32 %v2285_v22, %v3207_v52 }
 0x7f6   :  { %v1186_v32 = vmul.f32 %v2286_v47, %v3237_v10  ;;  %v1189_v13 = vmul.f32 %v2289_v39, %v3252_v3  ;;  %v3332_v20 = vmul.f32 2.5, %v1162_v63  ;;  %v1177_v30 = vsub.f32 %v1169_v12, %v1173_v8 }
 0x7f7   :  { %v1178_v31 = vsub.f32 %v1170_v36, %v1174_v23  ;;  %v1190_v6 = vmul.f32 %v2290_v50, %v3268_v57  ;;  %v1313_v38 = vmul.f32 %v3327_v28, %v3197_v29  ;;  %v3339_v55 = vsub.f32 %v3220_v37, %v2974_v60 }
 0x7f8   :  { %v1193_v45 = vsub.f32 %v1185_v26, %v1189_v13  ;;  %v3343_v22 = vsub.f32 %v3176_v40, %v3012_v19  ;;  %vm843_vm0 = vcmp.lt.f32.partialorder %v3116_v46, 0.0  ;;  %v1181_v63 = vmul.f32 2.5, %v1177_v30  ;;  %v2513_v26 = vld [vmem:[%s4340_s15 + $0x4] ss:$8 sps:$4 sm:$0x1f]  }
 0x7f9   :  { %v1182_v47 = vmul.f32 2.5, %v1178_v31  ;;  %v1194_v39 = vsub.f32 %v1186_v32, %v1190_v6  ;;  %v1314_v50 = vmul.f32 %v3332_v20, %v3229_v34  ;;  %v609_v23 = vpop.permute.xlu1 %608  ;;  %v3353_v60 = vsub.f32 %v3220_v37, %v2978_v62  ;;  %1563 = vmatprep.mubr.bf16.mxu1 %v2513_v26  ;;  %v3371_v62 = vld [vmem:[%s4342_s16] sm:$0xff] }
 0x7fa   :  { %v1197_v12 = vmul.f32 2.5, %v1193_v45  ;;  %v3357_v19 = vsub.f32 %v3176_v40, %v2982_v0  ;;  %v3361_v31 = vsub.f32 %v3220_v37, %v2976_v61  ;;  %v3364_v36 = vsub.f32 %v3176_v40, %v609_v23  ;;  %1686 = vperm.xlu1 %2489, %v3371_v62   ;;  %v3384_v45 = vld [vmem:[%s4342_s16 + $0x8] sm:$0x3] }
 0x7fb   :  { %v1198_v8 = vmul.f32 2.5, %v1194_v39  ;;  %v1317_v32 = vmul.f32 %v1181_v63, %v3244_v11  ;;  %v1318_v13 = vmul.f32 %v1182_v47, %v3248_v53  ;;  %v1329_v0 = vmul.f32 %v1181_v63, %v3203_v25  ;;  %1690 = vperm.xlu0 %2490, %v3384_v45  }
 0x7fc   :  { %4446 = vst [vmem:[#allocation27_spill] sm:$0xff] %v3364_v36  ;;  %v1330_v30 = vmul.f32 %v1182_v47, %v3233_v1  ;;  %v1333_v61 = vmul.f32 %v1197_v12, %v3252_v3  ;;  %v3378_v6 = vsub.f32 %v3176_v40, %v2984_v2  ;;  %vm825_vm4 = vcmp.lt.f32.partialorder %v3364_v36, 0.0 }
 0x7fd   :  { %vm841_vm7 = vcmp.ge.f32.partialorder %v3364_v36, 0.0  ;;  %vm820_vm1 = vcmp.ge.f32.partialorder %v3288_v18, 0.0  ;;  %v1321_v63 = vsub.f32 %v1313_v38, %v1317_v32  ;;  %v1322_v47 = vsub.f32 %v1314_v50, %v1318_v13  ;;  %vm829_vm9 = vmand %vm821_vm10, %vm825_vm4  ;;  %v601_v2 = vpop.permute.xlu1 %600 }
 0x7fe   :  { %vm844_vm12 = vcmp.lt.f32.partialorder %v3277_v16, 0.0  ;;  %v1334_v39 = vmul.f32 %v1198_v8, %v3268_v57  ;;  %v1337_v26 = vsub.f32 %v1329_v0, %v1333_v61  ;;  %v3396_v23 = vsub.f32 %v3220_v37, %v2988_v4  ;;  %vm849_vm14 = vmand %vm841_vm7, %vm845_vm11 }
 0x7ff   :  { %vm881_vm13 = vcmp.ge.f32.partialorder %v3193_v49, 0.0  ;;  %v2249_v38 = vsel %vm829_vm9, 1.0, %v4438_v54  ;;  %v3403_v50 = vsub.f32 %v3019_v27, %v601_v2  ;;  %v3405_v12 = vmul.f32 1.25, %v1321_v63 }
 0x800   :  { %v3407_v32 = vmul.f32 1.25, %v1322_v47  ;;  %v2253_v8 = vsel %vm849_vm14, 1.0, %v4438_v54  ;;  %v1041_v13 = vmul.f32 %v2249_v38, %v3214_v58  ;;  %v1338_v4 = vsub.f32 %v1330_v30, %v1334_v39 }
 0x801   :  { %v1341_v0 = vmul.f32 1.25, %v1337_v26  ;;  %v4447_v61 = vmov 7   ;;  %v1045_v40 = vmul.f32 %v2253_v8, %v3189_v41  ;;  %v1057_v35 = vmul.f32 %v2253_v8, %v3364_v36  ;;  %v605_v30 = vpop.permute.xlu1 %604 }
 0x802   :  { %2491 = vset.pattern.permute.xlu1 %v4447_v61  ;;  %vm839_vm15 = vcmp.ge.f32.partialorder %v3403_v50, 0.0  ;;  %v1457_v63 = vmul.f32 %v3405_v12, %v3197_v29  ;;  %v4448_v47 = vmov 8   ;;  %v1342_v2 = vmul.f32 1.25, %v1338_v4 }
 0x803   :  { %1696 = vperm.xlu1 %2491, %v3371_v62   ;;  %2492 = vset.pattern.permute.xlu0 %v4448_v47  ;;  %vm847_vm2 = vmand %vm839_vm15, %vm843_vm0  ;;  %v1458_v39 = vmul.f32 %v3407_v32, %v3229_v34  ;;  %v1461_v26 = vmul.f32 %v1341_v0, %v3252_v3  ;;  %vm882_vm3 = vcmp.ge.f32.partialorder %v3339_v55, 0.0  ;;  %v1049_v38 = vsub.f32 %v1041_v13, %v1045_v40 }
 0x804   :  { %1706 = vperm.xlu0 %2492, %v3371_v62   ;;  %v1065_v8 = vsub.f32 %v1057_v35, %v3240_v43  ;;  %v3428_v61 = vsel %vm847_vm2, 1.0, %v4438_v54  ;;  %v3431_v58 = vsub.f32 %v3264_v56, %v605_v30  ;;  %v1462_v51 = vmul.f32 %v1342_v2, %v3268_v57 }
 0x805   :  { %v1055_v4 = vmul.f32 %v3428_v61, %v3403_v50  ;;  %v1465_v41 = vsub.f32 %v1457_v63, %v1461_v26  ;;  %vm885_vm6 = vcmp.lt.f32.partialorder %v3343_v22, 0.0  ;;  %v3437_v3 = vmul.f32 2.5, %v1049_v38 }
 0x806   :  { %4449 = vst [vmem:[#allocation28_spill] sm:$0xff] %v3431_v58  ;;  %v3439_v0 = vmul.f32 2.5, %v1065_v8  ;;  %vm824_vm8 = vcmp.lt.f32.partialorder %v3431_v58, 0.0  ;;  %vm840_vm10 = vcmp.ge.f32.partialorder %v3431_v58, 0.0  ;;  %vm889_vm11 = vmand %vm881_vm13, %vm885_vm6  ;;  %v1466_v43 = vsub.f32 %v1458_v39, %v1462_v51 }
 0x807   :  { %4450 = vst [vmem:[#allocation29_spill] sm:$0xff] %v3437_v3  ;;  %1700 = vperm.xlu1 %2491, %v3384_v45   ;;  %v1063_v40 = vsub.f32 %v1055_v4, %v3174_v24  ;;  %vm828_vm0 = vmand %vm820_vm1, %vm824_vm8  ;;  %v1469_v57 = vmul.f32 0.8333333, %v1465_v41  ;;  %vm886_vm4 = vcmp.lt.f32.partialorder %v3353_v60, 0.0  ;;  %v4452_v35 = vmov 9  }
 0x808   :  { %4451 = vst [vmem:[#allocation30_spill] sm:$0xff] %v3439_v0  ;;  %2495 = vset.pattern.permute.xlu0 %v4452_v35  ;;  %v3453_v13 = vmul.f32 %v3439_v0, %v3364_v36  ;;  %v2248_v63 = vsel %vm828_vm0, 1.0, %v4438_v54  ;;  %vm848_vm7 = vmand %vm840_vm10, %vm844_vm12  ;;  %v3459_v24 = vsel %vm889_vm11, 1.0, %v4438_v54  ;;  %vm901_vm1 = vcmp.ge.f32.partialorder %v3343_v22, 0.0 }
 0x809   :  { %4454 = vst [vmem:[#allocation32_spill] sm:$0xff] %v3459_v24  ;;  %1720 = vperm.xlu0 %2495, %v3384_v45   ;;  %v3463_v51 = vmul.f32 2.5, %v1063_v40  ;;  %v2252_v41 = vsel %vm848_vm7, 1.0, %v4438_v54  ;;  %v1040_v30 = vmul.f32 %v2248_v63, %v3288_v18  ;;  %v1470_v2 = vmul.f32 0.8333333, %v1466_v43  ;;  %vm890_vm9 = vmand %vm882_vm3, %vm886_vm4 }
 0x80a   :  { %4453 = vst [vmem:[#allocation31_spill] sm:$0xff] %v3453_v13  ;;  %v1044_v39 = vmul.f32 %v2252_v41, %v3277_v16  ;;  %v1056_v26 = vmul.f32 %v2252_v41, %v3431_v58  ;;  %v3472_v38 = vsel %vm890_vm9, 1.0, %v4438_v54  ;;  %vm902_vm12 = vcmp.ge.f32.partialorder %v3353_v60, 0.0 }
 0x80b   :  { %4455 = vst [vmem:[#allocation33_spill] sm:$0xff] %v3472_v38  ;;  %2493 = vset.pattern.permute.xlu1 %v4448_v47  ;;  %v3478_v8 = vmul.f32 %v3463_v51, %v3403_v50  ;;  %v1520_v4 = vpack.c.bf16 %v1470_v2, %v1469_v57  ;;  %vm905_vm13 = vcmp.lt.f32.partialorder %v3357_v19, 0.0  ;;  %vm906_vm14 = vcmp.lt.f32.partialorder %v3361_v31, 0.0 }
 0x80c   :  { %1710 = vperm.xlu1 %2493, %v3384_v45   ;;  %v1048_v40 = vsub.f32 %v1040_v30, %v1044_v39  ;;  %v1064_v43 = vsub.f32 %v1056_v26, %v3312_v33  ;;  %vm909_vm15 = vmand %vm901_vm1, %vm905_vm13  ;;  %vm921_vm2 = vcmp.ge.f32.partialorder %v3357_v19, 0.0  ;;  %vm922_vm3 = vcmp.ge.f32.partialorder %v3361_v31, 0.0 }
 0x80d   :  { %4456 = vst [vmem:[#allocation34_spill] sm:$0xff] %v3478_v8  ;;  %v4457_v47 = vmov 11   ;;  %2332 = vmatprep.subr.bf16.mxu1 %v1520_v4  ;;  %vm910_vm6 = vmand %vm902_vm12, %vm906_vm14  ;;  %v2265_v57 = vsel %vm909_vm15, 1.0, %v4438_v54  ;;  %vm925_vm8 = vcmp.lt.f32.partialorder %v3378_v6, 0.0  ;;  %vm926_vm10 = vcmp.lt.f32.partialorder %v3396_v23, 0.0 }
 0x80e   :  { %2497 = vset.pattern.permute.xlu0 %v4457_v47  ;;  %vm941_vm11 = vcmp.ge.f32.partialorder %v3378_v6, 0.0  ;;  %v3494_v33 = vmul.f32 2.5, %v1048_v40  ;;  %v3496_v63 = vmul.f32 2.5, %v1064_v43  ;;  %v2266_v41 = vsel %vm910_vm6, 1.0, %v4438_v54  ;;  %vm929_vm0 = vmand %vm921_vm2, %vm925_vm8 }
 0x80f   :  { %1736 = vperm.xlu0 %2497, %v3371_v62   ;;  %vm942_vm4 = vcmp.ge.f32.partialorder %v3396_v23, 0.0  ;;  %vm930_vm7 = vmand %vm922_vm3, %vm926_vm10  ;;  %v2269_v30 = vsel %vm929_vm0, 1.0, %v4438_v54  ;;  %vm945_vm1 = vcmp.lt.f32.partialorder %v3197_v29, 0.0  ;;  %vm946_vm9 = vcmp.lt.f32.partialorder %v3229_v34, 0.0 }
 0x810   :  { %4458 = vst [vmem:[#allocation35_spill] sm:$0xff] %v3494_v33  ;;  %4459 = vst [vmem:[#allocation36_spill] sm:$0xff] %v3496_v63  ;;  %v1089_v2 = vmul.f32 %v3459_v24, %v3193_v49  ;;  %2494 = vset.pattern.permute.xlu1 %v4452_v35  ;;  %v3508_v39 = vmul.f32 %v3496_v63, %v3431_v58  ;;  %v2270_v26 = vsel %vm930_vm7, 1.0, %v4438_v54  ;;  %v4461_v18 = vmov 5  }
 0x811   :  { %vm949_vm12 = vmand %vm941_vm11, %vm945_vm1  ;;  %v1090_v4 = vmul.f32 %v3472_v38, %v3339_v55  ;;  %v1093_v40 = vmul.f32 %v2265_v57, %v3357_v19  ;;  %1716 = vperm.xlu1 %2494, %v3371_v62   ;;  %v1094_v35 = vmul.f32 %v2266_v41, %v3361_v31  ;;  %v1105_v63 = vmul.f32 %v2265_v57, %v3343_v22 }
 0x812   :  { %4460 = vst [vmem:[#allocation37_spill] sm:$0xff] %v3508_v39  ;;  %vm950_vm13 = vmand %vm942_vm4, %vm946_vm9  ;;  %v3518_v43 = vsel %vm949_vm12, 1.0, %v4438_v54  ;;  %v1106_v33 = vmul.f32 %v2266_v41, %v3353_v60  ;;  %v1109_v3 = vmul.f32 %v2269_v30, %v3378_v6  ;;  %v1110_v39 = vmul.f32 %v2270_v26, %v3396_v23 }
 0x813   :  { %2500 = vset.pattern.permute.xlu0 %v4461_v18  ;;  %v3525_v58 = vsel %vm950_vm13, 1.0, %v4438_v54  ;;  %v1097_v0 = vsub.f32 %v1089_v2, %v1093_v40  ;;  %v1098_v8 = vsub.f32 %v1090_v4, %v1094_v35  ;;  %v1121_v36 = vmul.f32 %v2269_v30, %v3357_v19 }
 0x814   :  { %1680 = vperm.xlu0 %2500, %v3384_v45   ;;  %v1122_v13 = vmul.f32 %v2270_v26, %v3361_v31  ;;  %v1125_v57 = vmul.f32 %v3518_v43, %v3197_v29  ;;  %v1113_v16 = vsub.f32 %v1105_v63, %v1109_v3  ;;  %v1114_v15 = vsub.f32 %v1106_v33, %v1110_v39 }
 0x815   :  { %v3534_v41 = vmul.f32 2.5, %v1097_v0  ;;  %v1126_v2 = vmul.f32 %v3525_v58, %v3229_v34  ;;  %v4462_v40 = vmov 10   ;;  %v3539_v38 = vmul.f32 2.5, %v1098_v8 }
 0x816   :  { %2496 = vset.pattern.permute.xlu1 %v4462_v40  ;;  %v1129_v24 = vsub.f32 %v1121_v36, %v1125_v57  ;;  %v3543_v30 = vsub.f32 %v3220_v37, %v3166_v59  ;;  %v3547_v26 = vsub.f32 %v3220_v37, %v3097_v44  ;;  %v1117_v3 = vmul.f32 2.5, %v1113_v16 }
 0x817   :  { %1726 = vperm.xlu1 %2496, %v3371_v62   ;;  %v1118_v0 = vmul.f32 2.5, %v1114_v15  ;;  %v1130_v33 = vsub.f32 %v1122_v13, %v1126_v2  ;;  %v1249_v63 = vmul.f32 %v3534_v41, %v3193_v49  ;;  %v4465_v39 = vmov 3   ;;  %v593_v13 = vpop.permute.xlu1 %592 }
 0x818   :  { %4463 = vst [vmem:[#allocation38_spill] sm:$0xff] %v3543_v30  ;;  %4464 = vst [vmem:[#allocation39_spill] sm:$0xff] %v3547_v26  ;;  %2503 = vset.pattern.permute.xlu0 %v4465_v39  ;;  %v3553_v8 = vmul.f32 2.5, %v1129_v24  ;;  %v1250_v59 = vmul.f32 %v3539_v38, %v3339_v55  ;;  %vm826_vm14 = vcmp.lt.f32.partialorder %v3543_v30, 0.0  ;;  %vm842_vm15 = vcmp.ge.f32.partialorder %v3543_v30, 0.0 }
 0x819   :  { %1660 = vperm.xlu0 %2503, %v3384_v45   ;;  %v3560_v44 = vmul.f32 2.5, %v1130_v33  ;;  %v1253_v15 = vmul.f32 %v1117_v3, %v3378_v6  ;;  %v1254_v16 = vmul.f32 %v1118_v0, %v3396_v23  ;;  %v1265_v36 = vmul.f32 %v1117_v3, %v3343_v22 }
 0x81a   :  { %4466 = vst [vmem:[#allocation40_spill] sm:$0xff] %v3553_v8  ;;  %v1266_v24 = vmul.f32 %v1118_v0, %v3353_v60  ;;  %v1269_v4 = vmul.f32 %v3553_v8, %v3197_v29  ;;  %vm846_vm2 = vcmp.lt.f32.partialorder %v3547_v26, 0.0  ;;  %vm862_vm3 = vcmp.ge.f32.partialorder %v3547_v26, 0.0 }
 0x81b   :  { %4467 = vst [vmem:[#allocation41_spill] sm:$0xff] %v3560_v44  ;;  %1730 = vperm.xlu1 %2496, %v3384_v45   ;;  %v1257_v35 = vsub.f32 %v1249_v63, %v1253_v15  ;;  %v1258_v57 = vsub.f32 %v1250_v59, %v1254_v16  ;;  %v1270_v2 = vmul.f32 %v3560_v44, %v3229_v34  ;;  %vm850_vm6 = vmand %vm842_vm15, %vm846_vm2  ;;  %vm866_vm8 = vcmp.lt.f32.partialorder %v3339_v55, 0.0 }
 0x81c   :  { %v1273_v40 = vsub.f32 %v1265_v36, %v1269_v4  ;;  %v2254_v3 = vsel %vm850_vm6, 1.0, %v4438_v54  ;;  %vm870_vm10 = vmand %vm862_vm3, %vm866_vm8  ;;  %v3578_v0 = vsub.f32 %v3220_v37, %v593_v13  ;;  %v3582_v33 = vsub.f32 %v3264_v56, %v2992_v7 }
 0x81d   :  { %v4468_v63 = vmov 1   ;;  %v3585_v59 = vmul.f32 1.25, %v1257_v35  ;;  %v3587_v15 = vmul.f32 1.25, %v1258_v57  ;;  %v1274_v16 = vsub.f32 %v1266_v24, %v1270_v2 }
 0x81e   :  { %2506 = vset.pattern.permute.xlu0 %v4468_v63  ;;  %v2258_v44 = vsel %vm870_vm10, 1.0, %v4438_v54  ;;  %v3591_v36 = vmul.f32 1.25, %v1273_v40  ;;  %v1046_v13 = vmul.f32 %v2254_v3, %v3547_v26  ;;  %v1058_v4 = vmul.f32 %v2254_v3, %v3543_v30 }
 0x81f   :  { %4469 = vst [vmem:[#allocation42_spill] sm:$0xff] %v3587_v15  ;;  %1640 = vperm.xlu0 %2506, %v3384_v45   ;;  %v1062_v7 = vmul.f32 %v2258_v44, %v3339_v55  ;;  %2498 = vset.pattern.permute.xlu1 %v4457_v47  ;;  %v3597_v8 = vmul.f32 1.25, %v1274_v16  ;;  %v1393_v35 = vmul.f32 %v3585_v59, %v3193_v49  ;;  %vm822_vm11 = vcmp.ge.f32.partialorder %v3578_v0, 0.0  ;;  %v4472_v49 = vld [vmem:[#allocation3_spill] sm:$0xff] }
 0x820   :  { %4470 = vst [vmem:[#allocation43_spill] sm:$0xff] %v3591_v36  ;;  %v1394_v24 = vmul.f32 %v3587_v15, %v3339_v55  ;;  %v3604_v57 = vmul.f32 %v2258_v44, %v3547_v26  ;;  %1740 = vperm.xlu1 %2498, %v3384_v45   ;;  %v1397_v2 = vmul.f32 %v3591_v36, %v3197_v29  ;;  %vm830_vm0 = vmand %vm822_vm11, %vm826_vm14  ;;  %vm960_vm4 = vcmp.ge.f32.partialorder %v3582_v33, 0.0  ;;  %v4479_v26 = vld [vmem:[#allocation8_spill] sm:$0xff]  ;;  %v4480_v15 = vld [vmem:[#allocation9_spill] sm:$0xff] }
 0x821   :  { %4471 = vst [vmem:[#allocation44_spill] sm:$0xff] %v3597_v8  ;;  %v1066_v40 = vsub.f32 %v1058_v4, %v1062_v7  ;;  %v3612_v3 = vsub.f32 %v3264_v56, %v2990_v5  ;;  %v1398_v16 = vmul.f32 %v3597_v8, %v3229_v34  ;;  %v3620_v44 = vsub.f32 %v3264_v56, %v3002_v14  ;;  %v4473_v4 = vld [vmem:[#allocation2_spill] sm:$0xff] }
 0x822   :  { %v3624_v29 = vsub.f32 %v3264_v56, %v4472_v49  ;;  %v3628_v7 = vsub.f32 %v3264_v56, %v4473_v4  ;;  %v4474_v5 = vmov 0   ;;  %v1401_v36 = vsub.f32 %v1393_v35, %v1397_v2 }
 0x823   :  { %2508 = vset.pattern.permute.xlu0 %v4474_v5  ;;  %v3631_v37 = vmul.f32 2.5, %v1066_v40  ;;  %v2250_v34 = vsel %vm830_vm0, 1.0, %v4438_v54  ;;  %v1402_v14 = vsub.f32 %v1394_v24, %v1398_v16  ;;  %vm964_vm7 = vcmp.lt.f32.partialorder %v3612_v3, 0.0 }
 0x824   :  { %1630 = vperm.xlu0 %2508, %v3384_v45   ;;  %v1042_v8 = vmul.f32 %v2250_v34, %v3578_v0  ;;  %vm980_vm1 = vcmp.ge.f32.partialorder %v3612_v3, 0.0  ;;  %2499 = vset.pattern.permute.xlu1 %v4461_v18  ;;  %v1405_v49 = vmul.f32 0.8333333, %v1401_v36  ;;  %vm968_vm9 = vmand %vm960_vm4, %vm964_vm7  ;;  %vm984_vm12 = vcmp.lt.f32.partialorder %v3620_v44, 0.0 }
 0x825   :  { %4475 = vst [vmem:[#allocation3_spill] sm:$0xff] %v3631_v37  ;;  %v1206_v35 = vmul.f32 %v3631_v37, %v3339_v55  ;;  %vm1000_vm13 = vcmp.ge.f32.partialorder %v3620_v44, 0.0  ;;  %1676 = vperm.xlu1 %2499, %v3371_v62   ;;  %v1406_v24 = vmul.f32 0.8333333, %v1402_v14  ;;  %v3646_v40 = vsel %vm968_vm9, 1.0, %v4438_v54  ;;  %vm988_vm14 = vmand %vm980_vm1, %vm984_vm12 }
 0x826   :  { %v1050_v2 = vsub.f32 %v1042_v8, %v1046_v13  ;;  %4476 = vst [vmem:[#allocation2_spill] sm:$0xff] %v3646_v40  ;;  %vm1004_vm15 = vcmp.lt.f32.partialorder %v3624_v29, 0.0  ;;  %v2280_v18 = vsel %vm988_vm14, 1.0, %v4438_v54  ;;  %vm1020_vm3 = vcmp.ge.f32.partialorder %v3624_v29, 0.0 }
 0x827   :  { %vm1008_vm2 = vmand %vm1000_vm13, %vm1004_vm15  ;;  %vm1024_vm6 = vcmp.lt.f32.partialorder %v3628_v7, 0.0  ;;  %v1152_v55 = vmul.f32 %v3646_v40, %v3582_v33  ;;  %v1512_v36 = vpack.c.bf16 %v1406_v24, %v1405_v49  ;;  %v1156_v16 = vmul.f32 %v2280_v18, %v3620_v44 }
 0x828   :  { %2510 = vset.pattern.permute.xlu0 %v4457_v47  ;;  %v1054_v8 = vmul.f32 2.5, %v1050_v2  ;;  %v2284_v13 = vsel %vm1008_vm2, 1.0, %v4438_v54  ;;  %vm1028_vm8 = vmand %vm1020_vm3, %vm1024_vm6  ;;  %v1168_v34 = vmul.f32 %v2280_v18, %v3612_v3  ;;  %v4477_v30 = vmov 4   ;;  %v4478_v2 = vld [vmem:[#allocation4_spill] sm:$0xff] }
 0x829   :  { %v2288_v4 = vsel %vm1028_vm8, 1.0, %v4438_v54  ;;  %v1172_v14 = vmul.f32 %v2284_v13, %v3624_v29  ;;  %v1184_v37 = vmul.f32 %v2284_v13, %v3620_v44  ;;  %2501 = vset.pattern.permute.xlu1 %v4477_v30  ;;  %2333 = vmatpush3.bf16.msra.mxu1 %v1512_v36  ;;  %v1160_v49 = vsub.f32 %v1152_v55, %v1156_v16 }
 0x82a   :  { %v1202_v47 = vmul.f32 %v1054_v8, %v3578_v0  ;;  %v1188_v24 = vmul.f32 %v2288_v4, %v3628_v7  ;;  %v3666_v5 = vsub.f32 %v3264_v56, %v4478_v2  ;;  %v3670_v18 = vsub.f32 %v3264_v56, %v4479_v26  ;;  %1670 = vperm.xlu1 %2501, %v3384_v45  }
 0x82b   :  { %v1176_v40 = vsub.f32 %v1168_v34, %v1172_v14  ;;  %v3674_v13 = vsub.f32 %v3264_v56, %v4480_v15  ;;  %vm880_vm10 = vcmp.ge.f32.partialorder %v3281_v17, 0.0  ;;  %v3678_v36 = vmul.f32 2.5, %v1160_v49 }
 0x82c   :  { %v1210_v55 = vsub.f32 %v1202_v47, %v1206_v35  ;;  %v1192_v8 = vsub.f32 %v1184_v37, %v1188_v24  ;;  %vm884_vm11 = vcmp.lt.f32.partialorder %v3666_v5, 0.0  ;;  %vm900_vm4 = vcmp.ge.f32.partialorder %v3666_v5, 0.0 }
 0x82d   :  { %v1180_v16 = vmul.f32 2.5, %v1176_v40  ;;  %vm888_vm0 = vmand %vm880_vm10, %vm884_vm11  ;;  %vm904_vm7 = vcmp.lt.f32.partialorder %v3670_v18, 0.0  ;;  %vm920_vm1 = vcmp.ge.f32.partialorder %v3670_v18, 0.0  ;;  %v1312_v4 = vmul.f32 %v3678_v36, %v3582_v33 }
 0x82e   :  { %v1214_v26 = vmul.f32 1.25, %v1210_v55  ;;  %v1196_v15 = vmul.f32 2.5, %v1192_v8  ;;  %v3687_v35 = vsel %vm888_vm0, 1.0, %v4438_v54  ;;  %vm908_vm9 = vmand %vm900_vm4, %vm904_vm7  ;;  %vm924_vm12 = vcmp.lt.f32.partialorder %v3674_v13, 0.0  ;;  %2502 = vset.pattern.permute.xlu1 %v4465_v39 }
 0x82f   :  { %v1316_v37 = vmul.f32 %v1180_v16, %v3624_v29  ;;  %v1328_v40 = vmul.f32 %v1180_v16, %v3612_v3  ;;  %v2264_v34 = vsel %vm908_vm9, 1.0, %v4438_v54  ;;  %vm928_vm13 = vmand %vm920_vm1, %vm924_vm12  ;;  %vm940_vm14 = vcmp.ge.f32.partialorder %v3674_v13, 0.0  ;;  %1656 = vperm.xlu1 %2502, %v3371_v62  }
 0x830   :  { %v3695_v14 = vmul.f32 %v1214_v26, %v3578_v0  ;;  %v1332_v47 = vmul.f32 %v1196_v15, %v3628_v7  ;;  %vm944_vm15 = vcmp.lt.f32.partialorder %v3582_v33, 0.0  ;;  %v2268_v24 = vsel %vm928_vm13, 1.0, %v4438_v54 }
 0x831   :  { %v1320_v49 = vsub.f32 %v1312_v4, %v1316_v37  ;;  %vm948_vm2 = vmand %vm940_vm14, %vm944_vm15  ;;  %v1088_v2 = vmul.f32 %v3687_v35, %v3281_v17  ;;  %v1092_v39 = vmul.f32 %v2264_v34, %v3670_v18  ;;  %v1104_v8 = vmul.f32 %v2264_v34, %v3666_v5 }
 0x832   :  { %4481 = vst [vmem:[#allocation4_spill] sm:$0xff] %v3695_v14  ;;  %v1336_v0 = vsub.f32 %v1328_v40, %v1332_v47  ;;  %v3706_v55 = vsel %vm948_vm2, 1.0, %v4438_v54  ;;  %v1108_v16 = vmul.f32 %v2268_v24, %v3674_v13  ;;  %v1120_v4 = vmul.f32 %v2268_v24, %v3670_v18 }
 0x833   :  { %v3710_v26 = vmul.f32 1.25, %v1320_v49  ;;  %v1096_v15 = vsub.f32 %v1088_v2, %v1092_v39  ;;  %v1124_v37 = vmul.f32 %v3706_v55, %v3582_v33  ;;  %v1137_v40 = vmul.f32 %v3518_v43, %v3378_v6  ;;  %2504 = vset.pattern.permute.xlu1 %v4477_v30 }
 0x834   :  { %v1340_v14 = vmul.f32 1.25, %v1336_v0  ;;  %v1112_v56 = vsub.f32 %v1104_v8, %v1108_v16  ;;  %v1138_v47 = vmul.f32 %v3525_v58, %v3396_v23  ;;  %v1141_v24 = vmul.f32 %v3271_v9, %v3203_v25  ;;  %1666 = vperm.xlu1 %2504, %v3371_v62  }
 0x835   :  { %v1456_v34 = vmul.f32 %v3710_v26, %v3582_v33  ;;  %v3722_v49 = vmul.f32 2.5, %v1096_v15  ;;  %v1128_v2 = vsub.f32 %v1120_v4, %v1124_v37  ;;  %v1142_v43 = vmul.f32 %v3291_v21, %v3233_v1 }
 0x836   :  { %v1460_v39 = vmul.f32 %v1340_v14, %v3628_v7  ;;  %v1116_v0 = vmul.f32 2.5, %v1112_v56  ;;  %v1301_v58 = vmul.f32 %v3327_v28, %v3207_v52  ;;  %v1145_v16 = vsub.f32 %v1137_v40, %v1141_v24  ;;  %v578_v14 = vpop.permute.xlu1 %577 }
 0x837   :  { %v3732_v30 = vmul.f32 2.5, %v1128_v2  ;;  %v1248_v8 = vmul.f32 %v3722_v49, %v3281_v17  ;;  %v1302_v9 = vmul.f32 %v3332_v20, %v3237_v10  ;;  %v1146_v7 = vsub.f32 %v1138_v47, %v1142_v43 }
 0x838   :  { %v1464_v15 = vsub.f32 %v1456_v34, %v1460_v39  ;;  %v1252_v4 = vmul.f32 %v1116_v0, %v3674_v13  ;;  %v1264_v56 = vmul.f32 %v1116_v0, %v3666_v5  ;;  %v3742_v28 = vmul.f32 2.5, %v1145_v16  ;;  %2505 = vset.pattern.permute.xlu1 %v4468_v63 }
 0x839   :  { %v1268_v21 = vmul.f32 %v3732_v30, %v3582_v33  ;;  %v1445_v37 = vmul.f32 %v3405_v12, %v3244_v11  ;;  %v1446_v40 = vmul.f32 %v3407_v32, %v3248_v53  ;;  %v3749_v2 = vmul.f32 2.5, %v1146_v7  ;;  %1636 = vperm.xlu1 %2505, %v3371_v62  }
 0x83a   :  { %v1468_v20 = vmul.f32 0.8333333, %v1464_v15  ;;  %v1256_v34 = vsub.f32 %v1248_v8, %v1252_v4  ;;  %vm823_vm3 = vcmp.lt.f32.partialorder %v3403_v50, 0.0  ;;  %v1297_v24 = vmul.f32 %v3742_v28, %v3378_v6  ;;  %v4482_v8 = vld [vmem:[#allocation32_spill] sm:$0xff] }
 0x83b   :  { %v1272_v47 = vsub.f32 %v1264_v56, %v1268_v21  ;;  %v3756_v39 = vsub.f32 %v3019_v27, %v578_v14  ;;  %v1043_v11 = vmul.f32 %v3428_v61, %v3116_v46  ;;  %v1298_v32 = vmul.f32 %v3749_v2, %v3396_v23  ;;  %v4484_v56 = vld [vmem:[#allocation22_spill] sm:$0xff] }
 0x83c   :  { %v1519_v53 = vpack.c.bf16 %v1468_v20, %v3178_v48  ;;  %v1260_v12 = vmul.f32 1.25, %v1256_v34  ;;  %v1203_v63 = vmul.f32 %v3463_v51, %v3113_v42  ;;  %v1305_v43 = vsub.f32 %v1297_v24, %v1301_v58  ;;  %v4483_v48 = vld [vmem:[#allocation33_spill] sm:$0xff] }
 0x83d   :  { %v3765_v0 = vmul.f32 1.25, %v1272_v47  ;;  %vm819_vm6 = vcmp.ge.f32.partialorder %v3756_v39, 0.0  ;;  %v1077_v16 = vmul.f32 %v4482_v8, %v3343_v22  ;;  %v1306_v61 = vsub.f32 %v1298_v32, %v1302_v9 }
 0x83e   :  { %2334 = vmatprep.subr.bf16.mxu1 %v1519_v53  ;;  %v1392_v46 = vmul.f32 %v1260_v12, %v3281_v17  ;;  %vm827_vm8 = vmand %vm819_vm6, %vm823_vm3  ;;  %v1078_v15 = vmul.f32 %v4483_v48, %v3353_v60  ;;  %v1237_v42 = vmul.f32 %v3534_v41, %v3357_v19  ;;  %v3779_v58 = vmul.f32 1.25, %v1305_v43 }
 0x83f   :  { %v1396_v51 = vmul.f32 %v3765_v0, %v3582_v33  ;;  %v2247_v4 = vsel %vm827_vm8, 1.0, %v4438_v54  ;;  %v1081_v7 = vsub.f32 %v4484_v56, %v1077_v16  ;;  %v4485_v14 = vmov 2   ;;  %v4490_v56 = vld [vmem:[#allocation11_spill] sm:$0xff] }
 0x840   :  { %2507 = vset.pattern.permute.xlu1 %v4485_v14  ;;  %v3784_v9 = vmul.f32 1.25, %v1306_v61  ;;  %v1039_v21 = vmul.f32 %v2247_v4, %v3756_v39  ;;  %v1082_v20 = vsub.f32 %v3604_v57, %v1078_v15  ;;  %v1238_v41 = vmul.f32 %v3539_v38, %v3361_v31  ;;  %v4486_v57 = vld [vmem:[#allocation42_spill] sm:$0xff] }
 0x841   :  { %1646 = vperm.xlu1 %2507, %v3371_v62   ;;  %v1400_v33 = vsub.f32 %v1392_v46, %v1396_v51  ;;  %v1441_v34 = vmul.f32 %v3779_v58, %v3378_v6  ;;  %v3793_v47 = vmul.f32 2.5, %v1081_v7  ;;  %v1381_v24 = vmul.f32 %v3585_v59, %v3378_v6  ;;  %v4487_v46 = vld [vmem:[#allocation14_spill] sm:$0xff]  ;;  %v4488_v6 = vld [vmem:[#allocation39_spill] sm:$0xff] }
 0x842   :  { %v1442_v53 = vmul.f32 %v3784_v9, %v3396_v23  ;;  %v1047_v32 = vsub.f32 %v1039_v21, %v1043_v11  ;;  %v3799_v43 = vmul.f32 2.5, %v1082_v20  ;;  %v1382_v38 = vmul.f32 %v4486_v57, %v3396_v23  ;;  %v4489_v11 = vld [vmem:[#allocation2_spill] sm:$0xff] }
 0x843   :  { %v1404_v8 = vmul.f32 0.8333333, %v1400_v33  ;;  %v1449_v16 = vsub.f32 %v1441_v34, %v1445_v37  ;;  %v1233_v61 = vmul.f32 %v3793_v47, %v4487_v46  ;;  %v1136_v48 = vmul.f32 %v3706_v55, %v3674_v13 }
 0x844   :  { %v1450_v15 = vsub.f32 %v1442_v53, %v1446_v40  ;;  %v1051_v51 = vmul.f32 2.5, %v1047_v32  ;;  %v1234_v59 = vmul.f32 %v3799_v43, %v4488_v6  ;;  %v1140_v4 = vmul.f32 %v4489_v11, %v3612_v3 }
 0x845   :  { %1650 = vperm.xlu1 %2507, %v3384_v45   ;;  %v1511_v23 = vpack.c.bf16 %v1404_v8, %v4490_v56  ;;  %v1453_v7 = vmul.f32 0.8333333, %v1449_v16  ;;  %v1241_v37 = vsub.f32 %v1233_v61, %v1237_v42  ;;  %v1300_v14 = vmul.f32 %v3678_v36, %v3620_v44  ;;  %v4492_v16 = vld [vmem:[#allocation26_spill] sm:$0xff] }
 0x846   :  { %v1454_v21 = vmul.f32 0.8333333, %v1450_v15  ;;  %v1199_v55 = vmul.f32 %v1051_v51, %v3756_v39  ;;  %v1242_v40 = vsub.f32 %v1234_v59, %v1238_v41  ;;  %v1144_v20 = vsub.f32 %v1136_v48, %v1140_v4  ;;  %v4493_v15 = vld [vmem:[#allocation10_spill] sm:$0xff]  ;;  %v4495_v4 = vld [vmem:[#allocation40_spill] sm:$0xff] }
 0x847   :  { %2335 = vmatpush3.bf16.msra.mxu1 %v1511_v23  ;;  %v1245_v33 = vmul.f32 1.25, %v1241_v37  ;;  %v1444_v34 = vmul.f32 %v3710_v26, %v3624_v29  ;;  %v1076_v45 = vmul.f32 %v3687_v35, %v3666_v5  ;;  %v1236_v53 = vmul.f32 %v3722_v49, %v3670_v18 }
 0x848   :  { %v1518_v42 = vpack.c.bf16 %v1454_v21, %v1453_v7  ;;  %v1207_v32 = vsub.f32 %v1199_v55, %v1203_v63  ;;  %v1246_v57 = vmul.f32 1.25, %v1242_v40  ;;  %v1148_v36 = vmul.f32 2.5, %v1144_v20  ;;  %v4494_v63 = vld [vmem:[#allocation21_spill] sm:$0xff]  ;;  %v4496_v21 = vld [vmem:[#allocation24_spill] sm:$0xff] }
 0x849   :  { %v4491_v8 = vmov 0   ;;  %v1377_v41 = vmul.f32 %v1245_v33, %v4487_v46  ;;  %v1080_v61 = vsub.f32 %v4492_v16, %v1076_v45  ;;  %v1380_v48 = vmul.f32 %v1260_v12, %v3674_v13  ;;  %v4497_v55 = vld [vmem:[#allocation41_spill] sm:$0xff]  ;;  %v4498_v16 = vld [vmem:[#allocation38_spill] sm:$0xff] }
 0x84a   :  { %2509 = vset.pattern.permute.xlu1 %v4491_v8  ;;  %v1473_v29 = vsub.f32 0.0, %v4493_v15  ;;  %2336 = vmatprep.subr.bf16.mxu1 %v1518_v42  ;;  %v1211_v35 = vmul.f32 1.25, %v1207_v32  ;;  %v1378_v26 = vmul.f32 %v1246_v57, %v4488_v6  ;;  %v1296_v49 = vmul.f32 %v1148_v36, %v3674_v13 }
 0x84b   :  { %1625 = vperm.xlu1 %2509, %v3371_v62   ;;  %v1474_v51 = vsub.f32 0.0, %v4494_v63  ;;  %v1385_v59 = vsub.f32 %v1377_v41, %v1381_v24  ;;  %v3831_v11 = vmul.f32 2.5, %v1080_v61  ;;  %v1281_v56 = vmul.f32 %v4495_v4, %v3357_v19  ;;  %v4499_v61 = vld [vmem:[#allocation3_spill] sm:$0xff] }
 0x84c   :  { %v1479_v46 = vmul.f32 1.442695, %v1473_v29  ;;  %v3836_v12 = vmul.f32 %v1211_v35, %v3756_v39  ;;  %v1386_v23 = vsub.f32 %v1378_v26, %v1382_v38  ;;  %v1304_v62 = vsub.f32 %v1296_v49, %v1300_v14  ;;  %v4500_v49 = vld [vmem:[#allocation31_spill] sm:$0xff] }
 0x84d   :  { %v1481_v7 = vmul.f32 1.442695, %v1474_v51  ;;  %v1389_v37 = vmul.f32 0.8333333, %v1385_v59  ;;  %v1232_v6 = vmul.f32 %v3831_v11, %v4496_v21  ;;  %v1282_v24 = vmul.f32 %v4497_v55, %v3361_v31 }
 0x84e   :  { %2517 = vpow2.f32 %v1479_v46  ;;  %v1390_v40 = vmul.f32 0.8333333, %v1386_v23  ;;  %v1308_v20 = vmul.f32 1.25, %v1304_v62  ;;  %v1285_v45 = vmul.f32 %v3742_v28, %v3203_v25 }
 0x84f   :  { %2519 = vpow2.f32 %v1481_v7  ;;  %v1240_v42 = vsub.f32 %v1232_v6, %v1236_v53  ;;  %v1286_v39 = vmul.f32 %v3749_v2, %v3233_v1  ;;  %v1429_v38 = vmul.f32 %v3779_v58, %v3207_v52 }
 0x850   :  { %v1430_v14 = vmul.f32 %v3784_v9, %v3237_v10  ;;  %v1510_v32 = vpack.c.bf16 %v1390_v40, %v1389_v37  ;;  %v1440_v8 = vmul.f32 %v1308_v20, %v3674_v13  ;;  %v1289_v41 = vsub.f32 %v1281_v56, %v1285_v45  ;;  %v4503_v40 = vld [vmem:[#allocation27_spill] sm:$0xff] }
 0x851   :  { %v1218_v29 = vmul.f32 %v4499_v61, %v4498_v16  ;;  %v1244_v35 = vmul.f32 1.25, %v1240_v42  ;;  %v1290_v26 = vsub.f32 %v1282_v24, %v1286_v39  ;;  %v1221_v28 = vmul.f32 %v3793_v47, %v3343_v22  ;;  %v4501_v47 = vld [vmem:[#allocation23_spill] sm:$0xff] }
 0x852   :  { %v1222_v2 = vmul.f32 %v3799_v43, %v3353_v60  ;;  %2337 = vmatpush3.bf16.msra.mxu1 %v1510_v32  ;;  %v1448_v52 = vsub.f32 %v1440_v8, %v1444_v34  ;;  %v1293_v58 = vmul.f32 1.25, %v1289_v41  ;;  %v1365_v10 = vmul.f32 %v1245_v33, %v3357_v19 }
 0x853   :  { %v1366_v9 = vmul.f32 %v1246_v57, %v3361_v31  ;;  %v1376_v13 = vmul.f32 %v1244_v35, %v4496_v21  ;;  %v1294_v53 = vmul.f32 1.25, %v1290_v26  ;;  %v1225_v51 = vsub.f32 %v4500_v49, %v1221_v28  ;;  %v4502_v57 = vld [vmem:[#allocation16_spill] sm:$0xff] }
 0x854   :  { %v1226_v59 = vsub.f32 %v1218_v29, %v1222_v2  ;;  %v1452_v46 = vmul.f32 0.8333333, %v1448_v52  ;;  %v1425_v4 = vmul.f32 %v1293_v58, %v3357_v19  ;;  %v1472_v56 = vsub.f32 0.0, %v4501_v47  ;;  %v4506_v29 = vld [vmem:[#allocation34_spill] sm:$0xff] }
 0x855   :  { %v1280_v43 = vmul.f32 %v3732_v30, %v3670_v18  ;;  %v1384_v34 = vsub.f32 %v1376_v13, %v1380_v48  ;;  %v1426_v23 = vmul.f32 %v1294_v53, %v3361_v31  ;;  %v1229_v33 = vmul.f32 1.25, %v1225_v51  ;;  %v4504_v48 = vld [vmem:[#allocation17_spill] sm:$0xff] }
 0x856   :  { %v1230_v62 = vmul.f32 1.25, %v1226_v59  ;;  %v1517_v7 = vpack.c.bf16 %v1452_v46, %v4502_v57  ;;  %v1433_v37 = vsub.f32 %v1425_v4, %v1429_v38  ;;  %v1477_v21 = vmul.f32 1.442695, %v1472_v56  ;;  %v4508_v59 = vld [vmem:[#allocation43_spill] sm:$0xff] }
 0x857   :  { %v1284_v6 = vmul.f32 %v1148_v36, %v3612_v3  ;;  %v1388_v55 = vmul.f32 0.8333333, %v1384_v34  ;;  %v1434_v24 = vsub.f32 %v1426_v23, %v1430_v14  ;;  %v1361_v19 = vmul.f32 %v1229_v33, %v4503_v40  ;;  %v4505_v14 = vld [vmem:[#allocation12_spill] sm:$0xff]  ;;  %v4510_v57 = vld [vmem:[#allocation19_spill] sm:$0xff] }
 0x858   :  { %v1362_v45 = vmul.f32 %v1230_v62, %v4498_v16  ;;  %2338 = vmatprep.subr.bf16.mxu1 %v1517_v7  ;;  %v1437_v42 = vmul.f32 0.8333333, %v1433_v37  ;;  %2521 = vpow2.f32 %v1477_v21  ;;  %v1428_v31 = vmul.f32 %v1308_v20, %v3620_v44  ;;  %v4511_v7 = vld [vmem:[#allocation29_spill] sm:$0xff]  ;;  %v4512_v21 = vld [vmem:[#allocation15_spill] sm:$0xff]  ;;  %v4514_v40 = vld [vmem:[#allocation28_spill] sm:$0xff] }
 0x859   :  { %v1288_v30 = vsub.f32 %v1280_v43, %v1284_v6  ;;  %v1509_v39 = vpack.c.bf16 %v1388_v55, %v4504_v48  ;;  %v1438_v32 = vmul.f32 0.8333333, %v1434_v24  ;;  %v1369_v8 = vsub.f32 %v1361_v19, %v1365_v10  ;;  %v4513_v6 = vld [vmem:[#allocation30_spill] sm:$0xff] }
 0x85a   :  { %v1370_v38 = vsub.f32 %v1362_v45, %v1366_v9  ;;  %v1220_v36 = vmul.f32 %v3831_v11, %v3666_v5  ;;  %v1223_v26 = vsub.f32 %v4506_v29, %v4505_v14  ;;  %v1364_v16 = vmul.f32 %v1244_v35, %v3670_v18  ;;  %v4507_v9 = vld [vmem:[#allocation37_spill] sm:$0xff]  ;;  %v4509_v35 = vld [vmem:[#allocation44_spill] sm:$0xff] }
 0x85b   :  { %v2518_v41 = vpop.eup %2517  ;;  %v1292_v61 = vmul.f32 1.25, %v1288_v30  ;;  %2339 = vmatpush3.bf16.msra.mxu1 %v1509_v39  ;;  %v1516_v52 = vpack.c.bf16 %v1438_v32, %v1437_v42  ;;  %v1373_v44 = vmul.f32 0.8333333, %v1369_v8  ;;  %v1409_v46 = vmul.f32 %v4508_v59, %v3343_v22  ;;  %v4515_v45 = vld [vmem:[#allocation13_spill] sm:$0xff]  ;;  %v4524_v59 = vld [vmem:[#allocation7_spill] sm:$0xff] }
 0x85c   :  { %v2520_v28 = vpop.eup %2519  ;;  %v1485_v2 = vadd.f32 1.0, %v2518_v41  ;;  %v1374_v20 = vmul.f32 0.8333333, %v1370_v38  ;;  %v1224_v49 = vsub.f32 %v4507_v9, %v1220_v36  ;;  %v1227_v51 = vmul.f32 1.25, %v1223_v26  ;;  %v4517_v36 = vld [vmem:[#allocation4_spill] sm:$0xff]  ;;  %v4519_v26 = vld [vmem:[#allocation35_spill] sm:$0xff] }
 0x85d   :  { %v1486_v13 = vadd.f32 1.0, %v2520_v28  ;;  %v1424_v10 = vmul.f32 %v1292_v61, %v3670_v18  ;;  %2340 = vmatprep.subr.bf16.mxu1 %v1516_v52  ;;  %v1410_v4 = vmul.f32 %v4509_v35, %v3353_v60  ;;  %v1413_v18 = vmul.f32 %v1293_v58, %v3203_v25  ;;  %v4516_v58 = vld [vmem:[#allocation18_spill] sm:$0xff] }
 0x85e   :  { %2523 = vrcp.f32 %v1485_v2  ;;  %v1508_v11 = vpack.c.bf16 %v1374_v20, %v1373_v44  ;;  %v1228_v43 = vmul.f32 1.25, %v1224_v49  ;;  %v1359_v34 = vmul.f32 %v1227_v51, %v3403_v50  ;;  %v4521_v2 = vld [vmem:[#allocation20_spill] sm:$0xff]  ;;  %v4522_v44 = vld [vmem:[#allocation5_spill] sm:$0xff] }
 0x85f   :  { %2525 = vrcp.f32 %v1486_v13  ;;  %v1432_v56 = vsub.f32 %v1424_v10, %v1428_v31  ;;  %v1414_v23 = vmul.f32 %v1294_v53, %v3233_v1  ;;  %v1201_v37 = vmul.f32 %v4511_v7, %v4510_v57 }
 0x860   :  { %2341 = vmatpush3.bf16.msra.mxu1 %v1508_v11  ;;  %v1205_v55 = vmul.f32 %v4513_v6, %v4512_v21  ;;  %v1360_v19 = vmul.f32 %v1228_v43, %v4514_v40  ;;  %v1367_v42 = vsub.f32 %v1359_v34, %v4515_v45  ;;  %v1349_v30 = vmul.f32 %v1229_v33, %v3343_v22  ;;  %v4518_v33 = vld [vmem:[#allocation25_spill] sm:$0xff]  ;;  %v2511_v40 = vld [vmem:[%s4340_s15] ss:$8 sps:$4 sm:$0x1f]  }
 0x861   :  { %v1436_v24 = vmul.f32 0.8333333, %v1432_v56  ;;  %v1417_v31 = vsub.f32 %v1409_v46, %v1413_v18  ;;  %v1418_v50 = vsub.f32 %v1410_v4, %v1414_v23  ;;  %v1350_v25 = vmul.f32 %v1230_v62, %v3353_v60  ;;  %v4520_v60 = vld [vmem:[#allocation36_spill] sm:$0xff] }
 0x862   :  { %v1209_v48 = vsub.f32 %v1201_v37, %v1205_v55  ;;  %v1368_v53 = vsub.f32 %v1360_v19, %v1364_v16  ;;  %v1371_v39 = vmul.f32 0.8333333, %v1367_v42  ;;  %v1408_v32 = vmul.f32 %v3765_v0, %v3666_v5 }
 0x863   :  { %v1515_v1 = vpack.c.bf16 %v1436_v24, %v4516_v58  ;;  %v1421_v8 = vmul.f32 0.8333333, %v1417_v31  ;;  %v1422_v38 = vmul.f32 0.8333333, %v1418_v50  ;;  %v1354_v14 = vsub.f32 %v4517_v36, %v1350_v25 }
 0x864   :  { %v1213_v41 = vmul.f32 1.25, %v1209_v48  ;;  %v1372_v29 = vmul.f32 0.8333333, %v1368_v53  ;;  %v1412_v22 = vmul.f32 %v1292_v61, %v3612_v3  ;;  %v1200_v28 = vmul.f32 %v4519_v26, %v4518_v33  ;;  %v4523_v61 = vld [vmem:[#allocation6_spill] sm:$0xff] }
 0x865   :  { %2342 = vmatprep.subr.bf16.mxu1 %v1515_v1  ;;  %v1204_v62 = vmul.f32 %v4520_v60, %v3281_v17  ;;  %v2522_v16 = vpop.eup %2521  ;;  %2527 = vrcp.f32 %v4521_v2  ;;  %v1514_v52 = vpack.c.bf16 %v1422_v38, %v1421_v8  ;;  %v1347_v20 = vmul.f32 %v1227_v51, %v4522_v44 }
 0x866   :  { %v1345_v0 = vmul.f32 %v1213_v41, %v4510_v57  ;;  %v1484_v13 = vadd.f32 1.0, %v2522_v16  ;;  %v1507_v10 = vpack.c.bf16 %v1372_v29, %v1371_v39  ;;  %v1416_v9 = vsub.f32 %v1408_v32, %v1412_v22 }
 0x867   :  { %v1208_v49 = vsub.f32 %v1200_v28, %v1204_v62  ;;  %v1358_v3 = vmul.f32 0.8333333, %v1354_v14  ;;  %v4525_v46 = vsub.f32 %v4523_v61, %v4524_v59  ;;  %v1348_v17 = vmul.f32 %v1228_v43, %v3666_v5 }
 0x868   :  { %v1353_v11 = vsub.f32 %v1345_v0, %v1349_v30  ;;  %2529 = vrcp.f32 %v1484_v13  ;;  %2343 = vmatpush3.bf16.msra.mxu1 %v1507_v10  ;;  %v1420_v4 = vmul.f32 0.8333333, %v1416_v9  ;;  %v1351_v34 = vsub.f32 %v3836_v12, %v1347_v20  ;;  %v2514_v30 = vld [vmem:[%s4341_s14] sm:$0x1f]  }
 0x869   :  { %v1419_v35 = vmul.f32 0.8333333, %v4525_v46  ;;  %v1212_v56 = vmul.f32 1.25, %v1208_v49  ;;  %2344 = vmatprep.subr.bf16.mxu1 %v1514_v52  ;;  %vm4526_vm10 = vmmov 0  }
 0x86a   :  { %v1357_v51 = vmul.f32 0.8333333, %v1353_v11  ;;  %v1355_v5 = vmul.f32 0.8333333, %v1351_v34 }
 0x86b   :  { %v2524_v18 = vpop.eup %2523  ;;  %v1513_v23 = vpack.c.bf16 %v1420_v4, %v1419_v35  ;;  %v1344_v57 = vmul.f32 %v1212_v56, %v4518_v33 }
 0x86c   :  { %v2526_v7 = vpop.eup %2525  ;;  %v1506_v37 = vpack.c.bf16 %v1358_v3, %v1357_v51  ;;  %v1497_v21 = vmul.f32 %v2524_v18, %v4493_v15 }
 0x86d   :  { %v1498_v6 = vmul.f32 %v2526_v7, %v4494_v63  ;;  %v1352_v55 = vsub.f32 %v1344_v57, %v1348_v17 }
 0x86e   :  { %2345 = vmatpush3.bf16.msra.mxu1 %v1506_v37 }
 0x86f   :  { %v1502_v43 = vpack.c.bf16 %v1498_v6, %v1497_v21  ;;  %2346 = vmatprep.subr.bf16.mxu1 %v1513_v23  ;;  %v1356_v24 = vmul.f32 0.8333333, %v1352_v55 }
 0x871   :  { %2404 = vmatpush3.bf16.msra.mxu0 %v1502_v43  ;;  %v1505_v12 = vpack.c.bf16 %v1356_v24, %v1355_v5 }
 0x872   :  { %2405 = vmatprep.subr.bf16.mxu0 %v4438_v54  ;;  %v2528_v19 = vpop.eup %2527 }
 0x873   :  { %2347 = vmatpush3.bf16.msra.mxu1 %v1505_v12  ;;  %v1495_v15 = vmul.f32 %v2528_v19, %v3019_v27 }
 0x875   :  { %v2530_v45 = vpop.eup %2529  ;;  %v1687_v31 = vpop.permute.xlu1 %1686 }
 0x876   :  { %1564 = vmatmul.mubr.bf16.vlgmr.msra.gmra.mxu1 %v2511_v40  ;;  %v1496_v63 = vmul.f32 %v2530_v45, %v4501_v47  ;;  %v3941_v39 = vpop.permute.xlu0 %1690 }
 0x878   :  { %v1501_v42 = vpack.c.bf16 %v1496_v63, %v1495_v15 }
 0x87a   :  { %2406 = vmatpush3.bf16.msra.mxu0 %v1501_v42 }
 0x87b   :  { %2411 = vmatprep.subr.bf16.mxu0 %v4438_v54 }
 0x87d   :  { %2408 = vmatmul.mubr.msk.bf16.vlgmr.msra.gmra.mxu0 %vm363_vm5, %v2514_v30 }
 0x87e   :  { %2421 = vmatprep.mubr.msk.bf16.mxu0 %vm4526_vm10, %v4438_v54  ;;  %v1697_v50 = vpop.permute.xlu1 %1696 }
 0x87f   :  { %v3943_v8 = vpop.permute.xlu0 %1706 }
 0x882   :  { %v3927_v48 = vpop.permute.xlu1 %1700 }
 0x884   :  { %v3945_v41 = vpop.permute.xlu0 %1720 }
 0x887   :  { %v3929_v27 = vpop.permute.xlu1 %1710 }
 0x88a   :  { %v3947_v14 = vpop.permute.xlu0 %1736 }
 0x88c   :  { %v3931_v47 = vpop.permute.xlu1 %1716 }
 0x88f   :  { %v3949_v22 = vpop.permute.xlu0 %1680 }
 0x892   :  { %v3933_v25 = vpop.permute.xlu1 %1726 }
 0x894   :  { %v1661_v28 = vpop.permute.xlu0 %1660 }
 0x896   :  { %v3935_v58 = vpop.permute.xlu1 %1730 }
 0x89a   :  { %v1641_v52 = vpop.permute.xlu0 %1640 }
 0x89b   :  { %v3937_v1 = vpop.permute.xlu1 %1740 }
 0x89f   :  { %v1631_v17 = vpop.permute.xlu0 %1630 }
 0x8a0   :  { %v3939_v53 = vpop.permute.xlu1 %1676 }
 0x8a5   :  { %v1671_v32 = vpop.permute.xlu1 %1670 }
 0x8aa   :  { %v1657_v38 = vpop.permute.xlu1 %1656 }
 0x8af   :  { %v1667_v36 = vpop.permute.xlu1 %1666 }
 0x8b4   :  { %v1637_v29 = vpop.permute.xlu1 %1636 }
 0x8bc   :  { %v1647_v33 = vpop.permute.xlu1 %1646 }
 0x8c0   :  { %v1651_v60 = vpop.permute.xlu1 %1650 }
 0x8c6   :  { %v1626_v20 = vpop.permute.xlu1 %1625 }
 0x936   :  { %v2348_v26 = vpop.f32.mrf.mxu1 }
 0x938   :  { %v2349_v62 = vpop.f32.mrf.mxu1 }
 0x939   :  { %v2350_v2 = vadd.f32 %v2349_v62, %v2348_v26 }
 0x93a   :  { %v2351_v16 = vpop.f32.mrf.mxu1 }
 0x93c   :  { %v2352_v0 = vpop.f32.mrf.mxu1 }
 0x93d   :  { %v1614_v44 = vpop.f32.mrf.mxu0  ;;  %v2353_v9 = vadd.f32 %v2352_v0, %v2351_v16 }
 0x93e   :  { %v3951_v13 = vadd.f32 %v2350_v2, %v1614_v44 }
 0x93f   :  { %v2409_v10 = vpop.f32.mrf.mxu0 }
 0x940   :  { %v3954_v49 = vsub.f32 %v3951_v13, %v1626_v20  ;;  %v3957_v11 = vsub.f32 %v3951_v13, %v1637_v29  ;;  %v3960_v3 = vsub.f32 %v3951_v13, %v1647_v33  ;;  %v3963_v61 = vsub.f32 %v3951_v13, %v1657_v38 }
 0x941   :  { %v3966_v59 = vsub.f32 %v3951_v13, %v1667_v36  ;;  %v1617_v46 = vpop.f32.mrf.mxu0  ;;  %v3982_v18 = vsub.f32 %v3951_v13, %v1687_v31  ;;  %v3985_v23 = vsub.f32 %v3951_v13, %v1697_v50  ;;  %v4025_v38 = vsub.f32 %v3951_v13, %v3943_v8 }
 0x942   :  { %vm1745_vm5 = vcmp.ge.f32.partialorder %v3954_v49, 0.0  ;;  %vm1747_vm11 = vcmp.lt.f32.partialorder %v3957_v11, 0.0  ;;  %vm1755_vm0 = vcmp.ge.f32.partialorder %v3957_v11, 0.0  ;;  %vm1757_vm4 = vcmp.lt.f32.partialorder %v3960_v3, 0.0 }
 0x943   :  { %vm1749_vm7 = vmand %vm1745_vm5, %vm1747_vm11  ;;  %vm1765_vm1 = vcmp.ge.f32.partialorder %v3960_v3, 0.0  ;;  %vm1767_vm9 = vcmp.lt.f32.partialorder %v3963_v61, 0.0  ;;  %vm1775_vm12 = vcmp.ge.f32.partialorder %v3963_v61, 0.0  ;;  %vm1777_vm13 = vcmp.lt.f32.partialorder %v3966_v59, 0.0  ;;  %v2410_v35 = vpop.f32.mrf.mxu0 }
 0x944   :  { %v2295_v4 = vsel %vm1749_vm7, 1.0, %v4438_v54  ;;  %vm1759_vm14 = vmand %vm1755_vm0, %vm1757_vm4  ;;  %v3977_v56 = vadd.f32 %v2353_v9, %v1617_v46  ;;  %v4043_v20 = vsub.f32 %v3951_v13, %v3931_v47  ;;  %v4047_v10 = vsub.f32 %v3951_v13, %v3933_v25 }
 0x945   :  { %v2297_v34 = vsel %vm1759_vm14, 1.0, %v4438_v54  ;;  %vm1769_vm15 = vmand %vm1765_vm1, %vm1767_vm9  ;;  %v1855_v51 = vmul.f32 %v2295_v4, %v3954_v49  ;;  %vm1805_vm14 = vcmp.ge.f32.partialorder %v3982_v18, 0.0 }
 0x946   :  { %v2299_v57 = vsel %vm1769_vm15, 1.0, %v4438_v54  ;;  %vm1779_vm2 = vmand %vm1775_vm12, %vm1777_vm13  ;;  %v1857_v7 = vmul.f32 %v2297_v34, %v3960_v3  ;;  %v1863_v37 = vmul.f32 %v2297_v34, %v3957_v11  ;;  %v3991_v21 = vsub.f32 %v3977_v56, %v1631_v17 }
 0x947   :  { %v3994_v6 = vsel %vm1779_vm2, 1.0, %v4438_v54  ;;  %v1865_v55 = vmul.f32 %v2299_v57, %v3963_v61  ;;  %v1871_v5 = vmul.f32 %v2299_v57, %v3960_v3  ;;  %v3999_v43 = vsub.f32 %v3977_v56, %v1641_v52 }
 0x948   :  { %v1859_v24 = vsub.f32 %v1855_v51, %v1857_v7  ;;  %v1873_v12 = vmul.f32 %v3994_v6, %v3966_v59  ;;  %v4004_v40 = vsub.f32 %v3977_v56, %v1651_v60  ;;  %v4007_v19 = vsub.f32 %v3977_v56, %v1661_v28 }
 0x949   :  { %v1867_v45 = vsub.f32 %v1863_v37, %v1865_v55  ;;  %v4010_v15 = vsub.f32 %v3977_v56, %v1671_v32  ;;  %vm1746_vm3 = vcmp.ge.f32.partialorder %v3991_v21, 0.0  ;;  %vm1748_vm6 = vcmp.lt.f32.partialorder %v3999_v43, 0.0 }
 0x94a   :  { %v1861_v63 = vmul.f32 2.5, %v1859_v24  ;;  %v1875_v42 = vsub.f32 %v1871_v5, %v1873_v12  ;;  %vm1750_vm8 = vmand %vm1746_vm3, %vm1748_vm6  ;;  %vm1756_vm5 = vcmp.ge.f32.partialorder %v3999_v43, 0.0  ;;  %vm1758_vm11 = vcmp.lt.f32.partialorder %v4004_v40, 0.0 }
 0x94b   :  { %v1869_v30 = vmul.f32 2.5, %v1867_v45  ;;  %v2296_v31 = vsel %vm1750_vm8, 1.0, %v4438_v54  ;;  %vm1760_vm0 = vmand %vm1756_vm5, %vm1758_vm11  ;;  %vm1766_vm4 = vcmp.ge.f32.partialorder %v4004_v40, 0.0  ;;  %vm1768_vm7 = vcmp.lt.f32.partialorder %v4007_v19, 0.0 }
 0x94c   :  { %v4019_v50 = vmul.f32 2.5, %v1875_v42  ;;  %v2298_v32 = vsel %vm1760_vm0, 1.0, %v4438_v54  ;;  %vm1770_vm1 = vmand %vm1766_vm4, %vm1768_vm7  ;;  %vm1776_vm9 = vcmp.ge.f32.partialorder %v4007_v19, 0.0  ;;  %v1935_v36 = vmul.f32 %v1861_v63, %v3954_v49 }
 0x94d   :  { %v1937_v29 = vmul.f32 %v1869_v30, %v3963_v61  ;;  %v2300_v33 = vsel %vm1770_vm1, 1.0, %v4438_v54  ;;  %vm1778_vm12 = vcmp.lt.f32.partialorder %v4010_v15, 0.0  ;;  %v1943_v26 = vmul.f32 %v1869_v30, %v3957_v11 }
 0x94e   :  { %vm1780_vm13 = vmand %vm1776_vm9, %vm1778_vm12  ;;  %v1856_v28 = vmul.f32 %v2296_v31, %v3991_v21  ;;  %v1858_v60 = vmul.f32 %v2298_v32, %v4004_v40  ;;  %v1864_v62 = vmul.f32 %v2298_v32, %v3999_v43  ;;  %v1945_v8 = vmul.f32 %v4019_v50, %v3966_v59 }
 0x94f   :  { %v2302_v16 = vsel %vm1780_vm13, 1.0, %v4438_v54  ;;  %v1866_v2 = vmul.f32 %v2300_v33, %v4007_v19  ;;  %v1872_v52 = vmul.f32 %v2300_v33, %v4004_v40  ;;  %v4051_v46 = vsub.f32 %v3977_v56, %v3941_v39 }
 0x950   :  { %v1860_v0 = vsub.f32 %v1856_v28, %v1858_v60  ;;  %v1874_v44 = vmul.f32 %v2302_v16, %v4010_v15  ;;  %v4055_v35 = vsub.f32 %v3977_v56, %v3927_v48  ;;  %v4059_v17 = vsub.f32 %v3951_v13, %v3947_v14 }
 0x951   :  { %v1868_v9 = vsub.f32 %v1864_v62, %v1866_v2  ;;  %v1939_v4 = vsub.f32 %v1935_v36, %v1937_v29  ;;  %v1947_v25 = vsub.f32 %v1943_v26, %v1945_v8  ;;  %v4063_v57 = vmul.f32 %v2302_v16, %v4007_v19 }
 0x952   :  { %v1862_v47 = vmul.f32 2.5, %v1860_v0  ;;  %v1876_v34 = vsub.f32 %v1872_v52, %v1874_v44  ;;  %v4067_v39 = vsub.f32 %v3977_v56, %v3929_v27  ;;  %v4072_v14 = vsub.f32 %v3977_v56, %v3945_v41 }
 0x953   :  { %v1870_v51 = vmul.f32 2.5, %v1868_v9  ;;  %vm1806_vm15 = vcmp.ge.f32.partialorder %v4051_v46, 0.0  ;;  %vm1807_vm2 = vcmp.lt.f32.partialorder %v3985_v23, 0.0  ;;  %vm1808_vm3 = vcmp.lt.f32.partialorder %v4055_v35, 0.0 }
 0x954   :  { %v1878_v48 = vmul.f32 2.5, %v1876_v34  ;;  %v1936_v7 = vmul.f32 %v1862_v47, %v3991_v21  ;;  %v4079_v5 = vmul.f32 1.25, %v1939_v4  ;;  %vm4084_vm6 = vmand %vm1805_vm14, %vm1807_vm2  ;;  %vm1815_vm8 = vcmp.ge.f32.partialorder %v3985_v23, 0.0 }
 0x955   :  { %v1938_v37 = vmul.f32 %v1870_v51, %v4007_v19  ;;  %v1944_v55 = vmul.f32 %v1870_v51, %v3999_v43  ;;  %vm1816_vm5 = vcmp.ge.f32.partialorder %v4055_v35, 0.0  ;;  %v4092_v12 = vsub.f32 %v3977_v56, %v3935_v58  ;;  %vm4094_vm11 = vmand %vm1806_vm15, %vm1808_vm3 }
 0x956   :  { %v1946_v27 = vmul.f32 %v1878_v48, %v4010_v15  ;;  %vm1817_vm0 = vcmp.lt.f32.partialorder %v4025_v38, 0.0  ;;  %vm1818_vm4 = vcmp.lt.f32.partialorder %v4067_v39, 0.0  ;;  %v4100_v63 = vmul.f32 1.25, %v1947_v25 }
 0x957   :  { %v1940_v41 = vsub.f32 %v1936_v7, %v1938_v37  ;;  %vm1819_vm7 = vmand %vm1815_vm8, %vm1817_vm0  ;;  %vm1825_vm1 = vcmp.ge.f32.partialorder %v4025_v38, 0.0  ;;  %vm1826_vm9 = vcmp.ge.f32.partialorder %v4067_v39, 0.0  ;;  %v4106_v58 = vsub.f32 %v3977_v56, %v3937_v1 }
 0x958   :  { %v1948_v42 = vsub.f32 %v1944_v55, %v1946_v27  ;;  %vm1820_vm12 = vmand %vm1816_vm5, %vm1818_vm4  ;;  %vm1827_vm13 = vcmp.lt.f32.partialorder %v4043_v20, 0.0  ;;  %vm1828_vm14 = vcmp.lt.f32.partialorder %v4072_v14, 0.0  ;;  %v4111_v31 = vmul.f32 %v1878_v48, %v4004_v40 }
 0x959   :  { %v1942_v30 = vmul.f32 1.25, %v1940_v41  ;;  %v4116_v32 = vsel %vm4084_vm6, 1.0, %v4438_v54  ;;  %vm1829_vm15 = vmand %vm1825_vm1, %vm1827_vm13  ;;  %vm1835_vm2 = vcmp.ge.f32.partialorder %v4043_v20, 0.0  ;;  %vm1836_vm3 = vcmp.ge.f32.partialorder %v4072_v14, 0.0 }
 0x95a   :  { %v4123_v1 = vsel %vm4094_vm11, 1.0, %v4438_v54  ;;  %v2309_v36 = vsel %vm1819_vm7, 1.0, %v4438_v54  ;;  %vm1830_vm8 = vmand %vm1826_vm9, %vm1828_vm14  ;;  %vm1837_vm5 = vcmp.lt.f32.partialorder %v4047_v10, 0.0  ;;  %vm1838_vm0 = vcmp.lt.f32.partialorder %v4092_v12, 0.0 }
 0x95b   :  { %v4128_v29 = vmul.f32 1.25, %v1948_v42  ;;  %v4131_v33 = vmul.f32 %v1942_v30, %v3991_v21  ;;  %v2310_v26 = vsel %vm1820_vm12, 1.0, %v4438_v54  ;;  %vm1839_vm6 = vmand %vm1835_vm2, %vm1837_vm5  ;;  %vm1845_vm4 = vcmp.ge.f32.partialorder %v4047_v10, 0.0 }
 0x95c   :  { %v2311_v28 = vsel %vm1829_vm15, 1.0, %v4438_v54  ;;  %vm1840_vm11 = vmand %vm1836_vm3, %vm1838_vm0  ;;  %vm1846_vm7 = vcmp.ge.f32.partialorder %v4092_v12, 0.0  ;;  %vm1847_vm1 = vcmp.lt.f32.partialorder %v4059_v17, 0.0  ;;  %vm1848_vm9 = vcmp.lt.f32.partialorder %v4106_v58, 0.0 }
 0x95d   :  { %v2312_v60 = vsel %vm1830_vm8, 1.0, %v4438_v54  ;;  %v2313_v62 = vsel %vm1839_vm6, 1.0, %v4438_v54  ;;  %vm1849_vm13 = vmand %vm1845_vm4, %vm1847_vm1  ;;  %v1903_v21 = vmul.f32 %v4116_v32, %v3982_v18  ;;  %v1904_v8 = vmul.f32 %v4123_v1, %v4051_v46 }
 0x95e   :  { %v2314_v16 = vsel %vm1840_vm11, 1.0, %v4438_v54  ;;  %vm1850_vm12 = vmand %vm1846_vm7, %vm1848_vm9  ;;  %v1905_v2 = vmul.f32 %v2309_v36, %v4025_v38  ;;  %v1906_v52 = vmul.f32 %v2310_v26, %v4067_v39  ;;  %v1911_v0 = vmul.f32 %v2309_v36, %v3985_v23 }
 0x95f   :  { %v2315_v44 = vsel %vm1849_vm13, 1.0, %v4438_v54  ;;  %v2316_v9 = vsel %vm1850_vm12, 1.0, %v4438_v54  ;;  %v1912_v4 = vmul.f32 %v2310_v26, %v4055_v35  ;;  %v1913_v47 = vmul.f32 %v2311_v28, %v4043_v20 }
 0x960   :  { %v1907_v34 = vsub.f32 %v1903_v21, %v1905_v2  ;;  %v1908_v25 = vsub.f32 %v1904_v8, %v1906_v52  ;;  %v1914_v51 = vmul.f32 %v2312_v60, %v4072_v14  ;;  %v1919_v48 = vmul.f32 %v2311_v28, %v4025_v38 }
 0x961   :  { %v1915_v7 = vsub.f32 %v1911_v0, %v1913_v47  ;;  %v1920_v37 = vmul.f32 %v2312_v60, %v4067_v39  ;;  %v1921_v55 = vmul.f32 %v2313_v62, %v4047_v10  ;;  %v1922_v27 = vmul.f32 %v2314_v16, %v4092_v12 }
 0x962   :  { %v4158_v24 = vmul.f32 2.5, %v1907_v34  ;;  %v4160_v41 = vmul.f32 2.5, %v1908_v25  ;;  %v1916_v45 = vsub.f32 %v1912_v4, %v1914_v51  ;;  %v1927_v42 = vmul.f32 %v2313_v62, %v4043_v20 }
 0x963   :  { %v1917_v30 = vmul.f32 2.5, %v1915_v7  ;;  %v1923_v36 = vsub.f32 %v1919_v48, %v1921_v55  ;;  %v1924_v26 = vsub.f32 %v1920_v37, %v1922_v27  ;;  %v1928_v21 = vmul.f32 %v2314_v16, %v4072_v14 }
 0x964   :  { %v1918_v28 = vmul.f32 2.5, %v1916_v45  ;;  %v1929_v8 = vmul.f32 %v2315_v44, %v4059_v17  ;;  %v1930_v60 = vmul.f32 %v2316_v9, %v4106_v58  ;;  %v1983_v2 = vmul.f32 %v4158_v24, %v3982_v18 }
 0x965   :  { %v1925_v52 = vmul.f32 2.5, %v1923_v36  ;;  %v1926_v0 = vmul.f32 2.5, %v1924_v26  ;;  %v1984_v4 = vmul.f32 %v4160_v41, %v4051_v46  ;;  %v1985_v62 = vmul.f32 %v1917_v30, %v4043_v20 }
 0x966   :  { %v1931_v47 = vsub.f32 %v1927_v42, %v1929_v8  ;;  %v1932_v34 = vsub.f32 %v1928_v21, %v1930_v60  ;;  %v1986_v25 = vmul.f32 %v1918_v28, %v4072_v14  ;;  %v1991_v16 = vmul.f32 %v1917_v30, %v3985_v23 }
 0x967   :  { %v1987_v51 = vsub.f32 %v1983_v2, %v1985_v62  ;;  %v1992_v44 = vmul.f32 %v1918_v28, %v4055_v35  ;;  %v1993_v9 = vmul.f32 %v1925_v52, %v4047_v10  ;;  %v1994_v48 = vmul.f32 %v1926_v0, %v4092_v12 }
 0x968   :  { %v1933_v7 = vmul.f32 2.5, %v1931_v47  ;;  %v1934_v37 = vmul.f32 2.5, %v1932_v34  ;;  %v1988_v55 = vsub.f32 %v1984_v4, %v1986_v25  ;;  %v1999_v27 = vmul.f32 %v1925_v52, %v4025_v38 }
 0x969   :  { %v4177_v45 = vmul.f32 1.25, %v1987_v51  ;;  %v1995_v42 = vsub.f32 %v1991_v16, %v1993_v9  ;;  %v1996_v36 = vsub.f32 %v1992_v44, %v1994_v48  ;;  %v2000_v26 = vmul.f32 %v1926_v0, %v4067_v39 }
 0x96a   :  { %v4180_v21 = vmul.f32 1.25, %v1988_v55  ;;  %v2001_v30 = vmul.f32 %v1933_v7, %v4059_v17  ;;  %v2002_v28 = vmul.f32 %v1934_v37, %v4106_v58  ;;  %v4186_v8 = vsub.f32 %v3951_v13, %v3939_v53 }
 0x96b   :  { %v1997_v60 = vmul.f32 1.25, %v1995_v42  ;;  %v1998_v2 = vmul.f32 1.25, %v1996_v36  ;;  %v2055_v52 = vmul.f32 %v4177_v45, %v3982_v18  ;;  %v4192_v4 = vsub.f32 %v3977_v56, %v3949_v22 }
 0x96c   :  { %v2003_v0 = vsub.f32 %v1999_v27, %v2001_v30  ;;  %v2004_v62 = vsub.f32 %v2000_v26, %v2002_v28  ;;  %v2056_v47 = vmul.f32 %v4180_v21, %v4051_v46  ;;  %vm1786_vm14 = vcmp.ge.f32.partialorder %v4010_v15, 0.0 }
 0x96d   :  { %v2057_v34 = vmul.f32 %v1997_v60, %v4047_v10  ;;  %v2058_v53 = vmul.f32 %v1998_v2, %v4092_v12  ;;  %v2063_v25 = vmul.f32 %v1997_v60, %v3985_v23  ;;  %v2064_v16 = vmul.f32 %v1998_v2, %v4055_v35 }
 0x96e   :  { %v2005_v51 = vmul.f32 1.25, %v2003_v0  ;;  %v2006_v44 = vmul.f32 1.25, %v2004_v62  ;;  %vm1788_vm15 = vcmp.lt.f32.partialorder %v4192_v4, 0.0  ;;  %vm1795_vm2 = vcmp.ge.f32.partialorder %v4186_v8, 0.0 }
 0x96f   :  { %v2059_v22 = vsub.f32 %v2055_v52, %v2057_v34  ;;  %v2060_v9 = vsub.f32 %v2056_v47, %v2058_v53  ;;  %vm1790_vm3 = vmand %vm1786_vm14, %vm1788_vm15  ;;  %vm1796_vm8 = vcmp.ge.f32.partialorder %v4192_v4, 0.0  ;;  %vm1797_vm5 = vcmp.lt.f32.partialorder %v3982_v18, 0.0 }
 0x970   :  { %v2065_v10 = vmul.f32 %v2005_v51, %v4059_v17  ;;  %v2066_v12 = vmul.f32 %v2006_v44, %v4106_v58  ;;  %v2304_v48 = vsel %vm1790_vm3, 1.0, %v4438_v54  ;;  %vm1798_vm0 = vcmp.lt.f32.partialorder %v4051_v46, 0.0  ;;  %vm1799_vm6 = vmand %vm1795_vm2, %vm1797_vm5 }
 0x971   :  { %v4209_v7 = vmul.f32 0.8333333, %v2059_v22  ;;  %v2062_v37 = vmul.f32 0.8333333, %v2060_v9  ;;  %vm1800_vm4 = vmand %vm1796_vm8, %vm1798_vm0  ;;  %v2305_v55 = vsel %vm1799_vm6, 1.0, %v4438_v54  ;;  %v1888_v27 = vmul.f32 %v2304_v48, %v4010_v15 }
 0x972   :  { %v2067_v42 = vsub.f32 %v2063_v25, %v2065_v10  ;;  %v2068_v36 = vsub.f32 %v2064_v16, %v2066_v12  ;;  %v2306_v26 = vsel %vm1800_vm4, 1.0, %v4438_v54  ;;  %v1895_v17 = vmul.f32 %v2305_v55, %v4186_v8 }
 0x973   :  { %v2101_v58 = vrot.slane %v4209_v7, 4  ;;  %v2102_v30 = vrot.slane %v2062_v37, 4  ;;  %v1890_v28 = vmul.f32 %v2306_v26, %v4051_v46  ;;  %v1896_v60 = vmul.f32 %v2306_v26, %v4192_v4 }
 0x974   :  { %v2069_v2 = vmul.f32 0.8333333, %v2067_v42  ;;  %v2070_v52 = vmul.f32 0.8333333, %v2068_v36  ;;  %v1897_v0 = vmul.f32 %v4116_v32, %v3985_v23  ;;  %v1898_v62 = vmul.f32 %v4123_v1, %v4055_v35 }
 0x975   :  { %v4224_v47 = vmul.f32 %v4128_v29, %v4010_v15  ;;  %v4228_v34 = vmul.f32 %v4128_v29, %v3999_v43  ;;  %vm4531_vm11 = vcmask 1043456   ;;  %v1892_v25 = vsub.f32 %v1888_v27, %v1890_v28 }
 0x976   :  { %v2103_v53 = vsel %vm4531_vm11, %v2101_v58, %v2102_v30  ;;  %v2108_v16 = vrot.slane %v2069_v2, 2  ;;  %v2109_v51 = vrot.slane %v2070_v52, 2  ;;  %v1899_v44 = vsub.f32 %v1895_v17, %v1897_v0  ;;  %vm4536_vm2 = vmmov %vm4531_vm11 }
 0x977   :  { %v1900_v32 = vsub.f32 %v1896_v60, %v1898_v62  ;;  %v1894_v22 = vmul.f32 2.5, %v1892_v25  ;;  %v1977_v1 = vmul.f32 %v4158_v24, %v4025_v38  ;;  %v1978_v9 = vmul.f32 %v4160_v41, %v4067_v39  ;;  %vm4539_vm5 = vmmov %vm4536_vm2 }
 0x978   :  { %vm1785_vm7 = vcmp.ge.f32.partialorder %v3966_v59, 0.0  ;;  %vm4532_vm1 = vcmask 1045504   ;;  %v1901_v10 = vmul.f32 2.5, %v1899_v44  ;;  %vm1787_vm13 = vcmp.lt.f32.partialorder %v4186_v8, 0.0  ;;  %vm4540_vm0 = vmmov %vm4536_vm2 }
 0x979   :  { %v2110_v43 = vsel %vm4532_vm1, %v2108_v16, %v2109_v51  ;;  %vm4533_vm9 = vmmov %vm4532_vm1  ;;  %v1902_v12 = vmul.f32 2.5, %v1900_v32  ;;  %v1968_v27 = vmul.f32 %v1894_v22, %v4010_v15  ;;  %v1879_v42 = vmul.f32 %v3994_v6, %v3963_v61 }
 0x97a   :  { %v2118_v29 = vsel %vm4533_vm9, %v2103_v53, %v2108_v16  ;;  %v1975_v41 = vmul.f32 %v1901_v10, %v4186_v8  ;;  %vm1789_vm12 = vmand %vm1785_vm7, %vm1787_vm13  ;;  %v1882_v26 = vmul.f32 %v2304_v48, %v4192_v4  ;;  %v2049_v17 = vmul.f32 %v4177_v45, %v4043_v20 }
 0x97b   :  { %v2140_v37 = vpack.c.bf16 %v2110_v43, %v2118_v29  ;;  %v1970_v24 = vmul.f32 %v1902_v12, %v4055_v35  ;;  %v1976_v36 = vmul.f32 %v1902_v12, %v4192_v4  ;;  %v2050_v30 = vmul.f32 %v4180_v21, %v4072_v14  ;;  %vm4537_vm3 = vmmov %vm4532_vm1 }
 0x97c   :  { %v2303_v28 = vsel %vm1789_vm12, 1.0, %v4438_v54  ;;  %v1889_v6 = vmul.f32 %v2305_v55, %v3982_v18  ;;  %v1979_v2 = vsub.f32 %v1975_v41, %v1977_v1  ;;  %v1884_v48 = vsub.f32 %v4063_v57, %v1882_v26  ;;  %vm4541_vm6 = vmmov %vm4532_vm1 }
 0x97d   :  { %2412 = vmatpush3.bf16.msra.mxu0 %v2140_v37  ;;  %v1972_v60 = vsub.f32 %v1968_v27, %v1970_v24  ;;  %v1980_v52 = vsub.f32 %v1976_v36, %v1978_v9  ;;  %v1881_v0 = vmul.f32 %v2303_v28, %v4186_v8  ;;  %v1887_v62 = vmul.f32 %v2303_v28, %v3966_v59 }
 0x97e   :  { %2413 = vmatprep.subr.bf16.mxu0 %v4438_v54  ;;  %v1962_v20 = vmul.f32 %v1894_v22, %v4051_v46  ;;  %v1969_v45 = vmul.f32 %v1901_v10, %v3985_v23  ;;  %v1981_v21 = vmul.f32 1.25, %v1979_v2  ;;  %v1886_v55 = vmul.f32 2.5, %v1884_v48 }
 0x97f   :  { %v1974_v14 = vmul.f32 1.25, %v1972_v60  ;;  %v1982_v53 = vmul.f32 1.25, %v1980_v52  ;;  %v1883_v25 = vsub.f32 %v1879_v42, %v1881_v0  ;;  %v1891_v16 = vsub.f32 %v1887_v62, %v1889_v6 }
 0x980   :  { %v1951_v51 = vmul.f32 %v4019_v50, %v3960_v3  ;;  %v2015_v44 = vmul.f32 %v4100_v63, %v3957_v11  ;;  %v2047_v22 = vmul.f32 %v1981_v21, %v4186_v8  ;;  %v1960_v29 = vmul.f32 %v1886_v55, %v4007_v19 }
 0x981   :  { %v2040_v57 = vmul.f32 %v1974_v14, %v4010_v15  ;;  %v2042_v32 = vmul.f32 %v1982_v53, %v4067_v39  ;;  %v2048_v1 = vmul.f32 %v1982_v53, %v4192_v4  ;;  %v1885_v9 = vmul.f32 2.5, %v1883_v25 }
 0x982   :  { %v1893_v43 = vmul.f32 2.5, %v1891_v16  ;;  %v2119_v10 = vsub.f32 0.0, %v3951_v13  ;;  %v2051_v37 = vsub.f32 %v2047_v22, %v2049_v17  ;;  %v2034_v27 = vmul.f32 %v1974_v14, %v4055_v35 }
 0x983   :  { %v2044_v12 = vsub.f32 %v2040_v57, %v2042_v32  ;;  %v2052_v50 = vsub.f32 %v2048_v1, %v2050_v30  ;;  %v1959_v11 = vmul.f32 %v1885_v9, %v3963_v61  ;;  %v1964_v39 = vsub.f32 %v1960_v29, %v1962_v20 }
 0x984   :  { %v1961_v15 = vmul.f32 %v1893_v43, %v3982_v18  ;;  %v1967_v42 = vmul.f32 %v1893_v43, %v3966_v59  ;;  %v2053_v41 = vmul.f32 0.8333333, %v2051_v37  ;;  %v1953_v26 = vmul.f32 %v1885_v9, %v4186_v8 }
 0x985   :  { %v2046_v24 = vmul.f32 0.8333333, %v2044_v12  ;;  %v2054_v36 = vmul.f32 0.8333333, %v2052_v50  ;;  %v1966_v6 = vmul.f32 1.25, %v1964_v39  ;;  %v1954_v17 = vmul.f32 %v1886_v55, %v4192_v4 }
 0x986   :  { %v1963_v28 = vsub.f32 %v1959_v11, %v1961_v15  ;;  %v1971_v60 = vsub.f32 %v1967_v42, %v1969_v45  ;;  %v2094_v30 = vrot.slane %v2053_v41, 6  ;;  %v2041_v35 = vmul.f32 %v1981_v21, %v4025_v38 }
 0x987   :  { %v2095_v2 = vrot.slane %v2054_v36, 6  ;;  %v1955_v52 = vsub.f32 %v1951_v51, %v1953_v26  ;;  %v2032_v62 = vmul.f32 %v1966_v6, %v4007_v19  ;;  %v1956_v20 = vsub.f32 %v4111_v31, %v1954_v17 }
 0x988   :  { %v1965_v0 = vmul.f32 1.25, %v1963_v28  ;;  %v1973_v48 = vmul.f32 1.25, %v1971_v60  ;;  %vm4534_vm14 = vcmask 1041408   ;;  %v2026_v45 = vmul.f32 %v1966_v6, %v4051_v46 }
 0x989   :  { %v2096_v14 = vsel %vm4534_vm14, %v2094_v30, %v2095_v2  ;;  %vm4535_vm15 = vmmov %vm4534_vm14  ;;  %v1957_v25 = vmul.f32 1.25, %v1955_v52  ;;  %v2036_v16 = vsub.f32 %v2032_v62, %v2034_v27  ;;  %v1958_v31 = vmul.f32 1.25, %v1956_v20 }
 0x98a   :  { %v2116_v53 = vsel %vm4535_vm15, %v2046_v24, %v2094_v30  ;;  %v2117_v55 = vsel %vm4536_vm2, %v2096_v14, %v2101_v58  ;;  %v2031_v38 = vmul.f32 %v1965_v0, %v3963_v61  ;;  %v2033_v21 = vmul.f32 %v1973_v48, %v3985_v23  ;;  %vm4538_vm8 = vmmov %vm4534_vm14  ;;  %v2135_v30 = vld [vmem:[%s4343_s18] sm:$0xf] }
 0x98b   :  { %v2139_v51 = vpack.c.bf16 %v2117_v55, %v2116_v53  ;;  %v2039_v19 = vmul.f32 %v1973_v48, %v3966_v59  ;;  %v2017_v57 = vmul.f32 %v1957_v25, %v4186_v8  ;;  %v2038_v22 = vmul.f32 0.8333333, %v2036_v16  ;;  %vm4542_vm4 = vmmov %vm4538_vm8 }
 0x98c   :  { %v2035_v32 = vsub.f32 %v2031_v38, %v2033_v21  ;;  %v2023_v1 = vmul.f32 %v1957_v25, %v3960_v3  ;;  %v2025_v46 = vmul.f32 %v1965_v0, %v3982_v18  ;;  %v2018_v58 = vmul.f32 %v1958_v31, %v4192_v4 }
 0x98d   :  { %2414 = vmatpush3.bf16.msra.mxu0 %v2139_v51  ;;  %v2043_v7 = vsub.f32 %v2039_v19, %v2041_v35  ;;  %v2019_v61 = vsub.f32 %v2015_v44, %v2017_v57  ;;  %v2024_v23 = vmul.f32 %v1958_v31, %v4004_v40  ;;  %v2007_v9 = vmul.f32 %v4079_v5, %v3954_v49 }
 0x98e   :  { %2415 = vmatprep.subr.bf16.mxu0 %v4438_v54  ;;  %v2037_v43 = vmul.f32 0.8333333, %v2035_v32  ;;  %v2088_v8 = vrot.slane %v2038_v22, 2  ;;  %v2027_v29 = vsub.f32 %v2023_v1, %v2025_v46  ;;  %v2012_v3 = vsub.f32 %v4131_v33, %v4224_v47 }
 0x98f   :  { %v2020_v18 = vsub.f32 %v4228_v34, %v2018_v58  ;;  %v2021_v12 = vmul.f32 0.8333333, %v2019_v61  ;;  %v2028_v37 = vsub.f32 %v2024_v23, %v2026_v45  ;;  %v2120_v44 = vsub.f32 0.0, %v3977_v56  ;;  %v2133_v45 = vld [vmem:[%s4344_s17] sm:$0xf] }
 0x990   :  { %v2087_v50 = vrot.slane %v2037_v43, 2  ;;  %v2029_v4 = vmul.f32 0.8333333, %v2027_v29  ;;  %v2121_v40 = vmul.f32 1.442695, %v2119_v10  ;;  %v2009_v5 = vmul.f32 %v4100_v63, %v3966_v59 }
 0x991   :  { %v2045_v27 = vmul.f32 0.8333333, %v2043_v7  ;;  %v2022_v11 = vmul.f32 0.8333333, %v2020_v18  ;;  %v2030_v49 = vmul.f32 0.8333333, %v2028_v37 }
 0x992   :  { %v2089_v15 = vsel %vm4537_vm3, %v2087_v50, %v2088_v8  ;;  %v2073_v39 = vrot.slane %v2021_v12, 6  ;;  %2531 = vpow2.f32 %v2121_v40  ;;  %v2123_v33 = vmul.f32 1.442695, %v2120_v44 }
 0x993   :  { %v2138_v47 = vpack.c.bf16 %v2045_v27, %v2089_v15  ;;  %v2074_v34 = vrot.slane %v2022_v11, 6  ;;  %v2080_v42 = vrot.slane %v2029_v4, 4  ;;  %v2081_v24 = vrot.slane %v2030_v49, 4 }
 0x994   :  { %v2014_v41 = vmul.f32 0.8333333, %v2012_v3  ;;  %2533 = vpow2.f32 %v2123_v33  ;;  %v2011_v26 = vsub.f32 %v2007_v9, %v2009_v5  ;;  %vm2141_vm11 = vcmask 654336  }
 0x995   :  { %2416 = vmatpush3.bf16.msra.mxu0 %v2138_v47  ;;  %v2075_v10 = vsel %vm4538_vm8, %v2073_v39, %v2074_v34  ;;  %v2082_v36 = vsel %vm4539_vm5, %v2080_v42, %v2081_v24  ;;  %vm4543_vm7 = vcmask 1044480   ;;  %vm2185_vm1 = vcmask 80896  }
 0x996   :  { %2417 = vmatprep.subr.bf16.mxu0 %v4438_v54  ;;  %v2114_v59 = vsel %vm4540_vm0, %v2075_v10, %v2080_v42  ;;  %v2115_v63 = vsel %vm4541_vm6, %v2082_v36, %v2087_v50  ;;  %v2113_v6 = vsel %vm4542_vm4, %v2014_v41, %v2073_v39  ;;  %v2013_v60 = vmul.f32 0.8333333, %v2011_v26 }
 0x997   :  { %v2137_v28 = vpack.c.bf16 %v2115_v63, %v2114_v59 }
 0x998   :  { %v2136_v17 = vpack.c.bf16 %v2113_v6, %v2013_v60 }
 0x999   :  { %2418 = vmatpush3.bf16.msra.mxu0 %v2137_v28 }
 0x99a   :  { %2419 = vmatprep.subr.bf16.mxu0 %v4438_v54 }
 0x99d   :  { %2420 = vmatpush3.bf16.msra.mxu0 %v2136_v17 }
 0x99e   :  { %2425 = vmatprep.subr.bf16.mxu0 %v4438_v54 }
 0x99f   :  { %v2532_v2 = vpop.eup %2531 }
 0x9a0   :  { %2422 = vmatmul.mubr.msk.bf16.vlgmr.msra.gmra.mxu0 %vm2141_vm11, %v2135_v30  ;;  %v2125_v35 = vadd.f32 1.0, %v2532_v2 }
 0x9a1   :  { %v2534_v52 = vpop.eup %2533  ;;  %2427 = vmatprep.mubr.msk.bf16.mxu0 %vm4526_vm10, %v4438_v54  ;;  %vm4544_vm10 = vcmask 64512  }
 0x9a2   :  { %v2126_v0 = vadd.f32 1.0, %v2534_v52  ;;  %2535 = vrcp.f32 %v2125_v35 }
 0x9a4   :  { %2537 = vrcp.f32 %v2126_v0 }
 0x9af   :  { %v2536_v48 = vpop.eup %2535 }
 0x9b0   :  { %v2131_v20 = vmul.f32 %v2536_v48, %v3951_v13 }
 0x9b1   :  { %v2538_v62 = vpop.eup %2537 }
 0x9b2   :  { %v2132_v14 = vmul.f32 %v2538_v62, %v3977_v56 }
 0x9b4   :  { %v2134_v53 = vpack.c.bf16 %v2132_v14, %v2131_v20 }
 0x9b6   :  { %v2190_v25 = vsel %vm4543_vm7, %v2134_v53, 0 }
 0x9b7   :  { %2426 = vmatpush3.bf16.msra.mxu0 %v2190_v25 }
 0x9ba   :  { %2428 = vmatmul.mubr.msk.bf16.vlgmr.msra.gmra.mxu0 %vm2185_vm1, %v2133_v45 }
 0xa60   :  { %v2179_v54 = vpop.f32.mrf.mxu0 }
 0xa62   :  { %v2423_v55 = vpop.f32.mrf.mxu0 }
 0xa64   :  { %v2182_v38 = vpop.f32.mrf.mxu0 }
 0xa66   :  { %v2424_v21 = vpop.f32.mrf.mxu0 }
 0xa7a   :  { %v2226_v16 = vpop.f32.mrf.mxu0 }
 0xa7b   :  { %v2227_v51 = vadd.f32 %v2226_v16, %v2179_v54 }
 0xa7c   :  { %v2429_v19 = vpop.f32.mrf.mxu0 }
 0xa7d   :  { %2232 = vst.msk [vmem:[%s4345_s19] sm:$0xff] %vm4544_vm10, %v2227_v51 }
 0xa7e   :  { %v2229_v13 = vpop.f32.mrf.mxu0 }
 0xa80   :  { %v2430_v56 = vpop.f32.mrf.mxu0 }

</bundles_post_ra>
